<compile_context>
chip_gen: v5e
topology: v5e:2x2
jax: 0.10.0
libtpu: 0.0.40
codegen_flags: <defaults>
</compile_context>

<pallas_src>
import jax
import jax.numpy as jnp
import numpy as np
from jax.experimental import pallas as pl
from jax.experimental.pallas import tpu as pltpu


def _round_up(n, m):
    return ((n + m - 1) // m) * m


# ---------------------------------------------------------------------------
# Fused Pallas kernel
# ---------------------------------------------------------------------------
def fused_gnn2d_kernel(x_ref, e_ref, rc_ref, bc_ref, m_ref, w_ref, o_ref, stk_ref):
    """Single-invocation fused forward.

    x   : [Cp, B*KK]      input activation (channel 0 = A, rest zero padding)
    e   : [1,  B*KK]      flattened eye(K) tiled over batch
    rc  : [B*KK, 2*BK]    [Rb | Cb]  (row-sum / col-sum low-rank selectors)
    bc  : [4*BK, B*KK]    [Rb.T*e ; Cb.T*e ; Rb.T*g ; Cb.T*g]  (masked bcast-back)
    m   : [B*KK, BKpad]   precombined readout matrix (E mask + Q1..Q5 folded in)
    w   : [L*Cp, 8*Cp]    per-layer packed weights
                          [P1 | P4 | .1P2 | .1P3 | .1P6 | .01P7 | .1P5 | .01P8]
    o   : [8, BKpad]      sigmoid outputs (row 0, first B*K lanes are real)
    stk : [8*Cp, B*KK]    persistent VMEM scratch (stacked activations)
    """
    CP = w_ref.shape[1] // 8
    BKK = x_ref.shape[1]
    BK = rc_ref.shape[1] // 2
    n_layers = w_ref.shape[0] // CP

    def dot(a, b):
        return jnp.dot(a, b, preferred_element_type=jnp.float32)

    rc = rc_ref[...]                                   # [BKK, 2*BK]
    bc = bc_ref[...]                                   # [4*BK, BKK]
    eb = jnp.broadcast_to(e_ref[...], (CP, BKK))       # hoisted E mask

    x = x_ref[...]                                     # [CP, BKK]
    for i in range(n_layers):
        w = w_ref[pl.ds(i * CP, CP), :]                # [CP, 8*CP]

        ea = x * eb                                    # E * A
        ga = x - ea                                    # G * A   (G = 1 - E)
        stk_ref[pl.ds(0, CP), :] = ea
        stk_ref[pl.ds(CP, CP), :] = ga

        # --- MXU 1: low-rank selector stage (row/col/diag sums) -------------
        sums = dot(stk_ref[pl.ds(0, 2 * CP), :], rc)   # [2*CP, 2*BK]
        dg = sums[:CP, :BK]                            # diag(A)
        rs = dg + sums[CP:, :BK]                       # rowsum(A) = diag + rowsum(G*A)
        cs = dg + sums[CP:, BK:]                       # colsum(A)

        # --- MXU 2: all six masked broadcast-backs in one matmul ------------
        z = jnp.zeros_like(rs)
        l6 = jnp.concatenate([
            jnp.concatenate([rs, z,  z,  z], axis=1),  # E * rowsum-bcast   (P2)
            jnp.concatenate([z,  cs, z,  z], axis=1),  # E * colsum-bcast   (P3)
            jnp.concatenate([z,  z,  dg, z], axis=1),  # G * diag-bcast-col (P6)
            jnp.concatenate([z,  z,  rs, z], axis=1),  # G * rowsum-bcast   (P7)
            jnp.concatenate([z,  z,  z, dg], axis=1),  # G * diag-bcast-row (P5)
            jnp.concatenate([z,  z,  z, cs], axis=1),  # G * colsum-bcast   (P8)
        ], axis=0)                                     # [6*CP, 4*BK]
        stk_ref[pl.ds(2 * CP, 6 * CP), :] = dot(l6, bc)

        # --- MXU 3: all eight P matmuls of the layer as ONE call ------------
        out = dot(w, stk_ref[...])                     # [CP, BKK]

        if i != n_layers - 1:
            # ReLU + BatchNorm2d (training mode: batch stats, biased var,
            # gamma=1, beta=0, eps=1e-5).  Two-pass variance kept on purpose
            # (bit-tight f32 reference check).
            out = jnp.maximum(out, 0.0)
            mean = jnp.mean(out, axis=1, keepdims=True)
            var = jnp.mean((out - mean) ** 2, axis=1, keepdims=True)
            out = (out - mean) * jax.lax.rsqrt(var + 1e-5)
        x = out

    # Readout + sigmoid: ONE precombined, lane-dense matmul.
    y = dot(x[:o_ref.shape[0], :], m_ref[...])         # [8, BKpad]
    o_ref[...] = jax.nn.sigmoid(y).astype(o_ref.dtype)


# ---------------------------------------------------------------------------
# Constant selector matrices (low-rank factors, masks folded in)
# ---------------------------------------------------------------------------
def _build_constants(B, K):
    KK = K * K
    eyeK = np.eye(K, dtype=np.float32)
    e_flat = eyeK.reshape(KK)
    g_flat = (1.0 - e_flat).astype(np.float32)
    e_b = np.tile(e_flat, B)                                  # [B*KK]
    g_b = np.tile(g_flat, B)

    R = np.kron(eyeK, np.ones((K, 1), np.float32))            # [KK, K] row-sum
    Cm = np.kron(np.ones((K, 1), np.float32), eyeK)           # [KK, K] col-sum
    eyeB = np.eye(B, dtype=np.float32)
    Rb = np.kron(eyeB, R)                                     # [B*KK, B*K]
    Cb = np.kron(eyeB, Cm)                                    # [B*KK, B*K]

    rc = np.concatenate([Rb, Cb], axis=1)                     # [B*KK, 2*B*K]
    bc = np.concatenate([Rb.T * e_b, Cb.T * e_b,
                         Rb.T * g_b, Cb.T * g_b], axis=0)     # [4*B*K, B*KK]

    Sb = np.kron(eyeB, np.ones((K, K), np.float32))           # per-batch total bcast
    RbSb = Rb @ Sb                                            # [B*KK, B*K]
    return e_b.reshape(1, B * KK), rc, bc, Rb, Cb, RbSb


def _pack_weights(params, CP):
    """Pack P1..P8 of every layer (scales folded in) into one [L*CP, 8*CP]."""
    order = [0, 3, 1, 2, 5, 6, 4, 7]          # P1, P4, P2, P3, P6, P7, P5, P8
    scale = [1.0, 1.0, 0.1, 0.1, 0.1, 0.01, 0.1, 0.01]
    ws = []
    for p_stack in params["P"]:
        d_out, d_in = p_stack.shape[1], p_stack.shape[2]
        w = jnp.zeros((CP, 8 * CP), jnp.float32)
        for j, (idx, s) in enumerate(zip(order, scale)):
            w = w.at[:d_out, j * CP:j * CP + d_in].set(s * p_stack[idx])
        ws.append(w)
    return jnp.concatenate(ws, axis=0)


# ---------------------------------------------------------------------------
# Forward wrapper
# ---------------------------------------------------------------------------
def gnn2d_forward(A, params):
    """A: [B, K, K] float32.  Returns y: [B, K] sigmoid outputs."""
    B, K, _ = A.shape
    KK = K * K
    CP = _round_up(max(max(p.shape[1], p.shape[2]) for p in params["P"]), 8)
    BKpad = _round_up(B * K, 128)                      # lane-dense readout/output

    e_b, rc, bc, Rb, Cb, RbSb = _build_constants(B, K)

    w_all = _pack_weights(params, CP)                  # [L*CP, 8*CP]

    # Precombined readout matrix: E mask and Q1..Q5 (with 0.1/0.05/0.01) folded.
    Q = params["Q"]
    m = (e_b.reshape(-1, 1) * (Q[0] * Rb + 0.05 * Q[3] * RbSb)
         + 0.1 * Q[1] * Rb + 0.1 * Q[2] * Cb + 0.01 * Q[4] * RbSb)   # [B*KK, B*K]
    m = jnp.pad(m.astype(jnp.float32), ((0, 0), (0, BKpad - B * K)))

    # Channel 0 carries A (flat index = b*KK + r*K + c), remaining rows zero.
    x0 = jnp.zeros((CP, B * KK), jnp.float32).at[0].set(A.reshape(B * KK))

    vmem_spec = pl.BlockSpec(memory_space=pltpu.MemorySpace.VMEM)
    y = pl.pallas_call(
        fused_gnn2d_kernel,
        out_shape=jax.ShapeDtypeStruct((8, BKpad), jnp.float32),
        in_specs=[vmem_spec] * 6,
        out_specs=vmem_spec,
        scratch_shapes=[pltpu.VMEM((8 * CP, B * KK), jnp.float32)],
    )(x0, jnp.asarray(e_b), jnp.asarray(rc), jnp.asarray(bc), m, w_all)
    return y[0, :B * K].reshape(B, K)


# ---------------------------------------------------------------------------
# Parameters (mimicking the PyTorch uniform(-ini, ini) init)
# ---------------------------------------------------------------------------
def init_params(key, dims):
    Ps = []
    for i in range(len(dims) - 1):
        d_in, d_out = dims[i], dims[i + 1]
        ini = 3.0 / float(np.sqrt(d_out * d_in))
        key, sub = jax.random.split(key)
        Ps.append(jax.random.uniform(sub, (8, d_out, d_in), jnp.float32,
                                     minval=-ini, maxval=ini))
    ini = 3.0 / float(np.sqrt(dims[-1] * dims[-2]))
    key, sub = jax.random.split(key)
    Q = jax.random.uniform(sub, (5,), jnp.float32, minval=-ini, maxval=ini)
    return {"P": Ps, "Q": Q}


# ---------------------------------------------------------------------------
# Pure-JAX reference (direct transcription of the PyTorch forward)
# ---------------------------------------------------------------------------
def reference_forward(A, params):
    B, K, _ = A.shape
    E = jnp.eye(K, dtype=jnp.float32)
    F = jnp.ones((K, K), jnp.float32)
    G = F - E
    x = A[:, None, :, :].astype(jnp.float32)   # [B, 1, K, K]
    n = len(params["P"])
    for i, p_stack in enumerate(params["P"]):
        d_out, d_in = p_stack.shape[1], p_stack.shape[2]
        P1, P2, P3, P4, P5, P6, P7, P8 = (p_stack[j] for j in range(8))
        mm = lambda P, X: jnp.einsum('oc,bcn->bon', P, X)
        A1 = mm(P1, (E * x).reshape(B, d_in, -1)).reshape(B, d_out, K, K)
        A2 = E * mm(P2, jnp.sum(x, -1).reshape(B, d_in, -1)).reshape(B, d_out, K, 1)
        A3 = E * mm(P3, jnp.sum(x, -2).reshape(B, d_in, -1)).reshape(B, d_out, 1, K)
        A4 = mm(P4, (G * x).reshape(B, d_in, -1)).reshape(B, d_out, K, K)
        X5 = mm(P5, (E * x).reshape(B, d_in, -1)).reshape(B, d_out, K, K)
        A5 = G * jnp.einsum('rk,bokc->borc', F, X5)
        X6 = mm(P6, (E * x).reshape(B, d_in, -1)).reshape(B, d_out, K, K)
        A6 = G * jnp.einsum('bork,kc->borc', X6, F)
        A7 = G * mm(P7, jnp.sum(x, -1).reshape(B, d_in, -1)).reshape(B, d_out, K, 1)
        A8 = G * mm(P8, jnp.sum(x, -2).reshape(B, d_in, -1)).reshape(B, d_out, 1, K)
        x = A1 + 0.1 * A2 + 0.1 * A3 + A4 + 0.1 * A5 + 0.1 * A6 + 0.01 * A7 + 0.01 * A8
        if i != n - 1:
            x = jnp.maximum(x, 0.0)
            mean = jnp.mean(x, axis=(0, 2, 3), keepdims=True)
            var = jnp.mean((x - mean) ** 2, axis=(0, 2, 3), keepdims=True)
            x = (x - mean) * jax.lax.rsqrt(var + 1e-5)
    Q = params["Q"]
    diag = jnp.diagonal(x, axis1=-1, axis2=-2).reshape(B, K)
    y = (Q[0] * diag
         + 0.1 * Q[1] * jnp.sum(x, -1).reshape(B, K)
         + 0.1 * Q[2] * jnp.sum(x, -2).reshape(B, K)
         + 0.05 * Q[3] * jnp.sum(diag, -1, keepdims=True)
         + 0.01 * Q[4] * jnp.sum(x, axis=(-1, -2)))
    return jax.nn.sigmoid(y)


if __name__ == "__main__":
    K = 16                       # number of links (global K in the original script)
    B = 2                        # batch size
    dims = [1, 8, 16, 1]         # input_dim=1 (A.unsqueeze(1)), hidden=(8,16), output_dim=1

    key = jax.random.PRNGKey(0)
    kp, kx = jax.random.split(key)
    params = init_params(kp, dims)
    A = jax.random.normal(kx, (B, K, K), jnp.float32)

    fwd = jax.jit(gnn2d_forward)
    y = jax.block_until_ready(fwd(A, params))

    y_ref = reference_forward(A, params)
    np.testing.assert_allclose(np.asarray(y), np.asarray(y_ref),
                               rtol=1e-4, atol=1e-5)
    print("KERNEL_OK")
</pallas_src>

<mosaic_0001>
module attributes {stable_mosaic.version = 11 : i64} {
  func.func @fused_gnn2d_kernel(%arg0: memref<16x512xf32, #tpu.memory_space<vmem>>, %arg1: memref<1x512xf32, #tpu.memory_space<vmem>>, %arg2: memref<512x64xf32, #tpu.memory_space<vmem>>, %arg3: memref<128x512xf32, #tpu.memory_space<vmem>>, %arg4: memref<512x128xf32, #tpu.memory_space<vmem>>, %arg5: memref<48x128xf32, #tpu.memory_space<vmem>>, %arg6: memref<8x128xf32, #tpu.memory_space<vmem>>, %arg7: memref<128x512xf32, #tpu.memory_space<vmem>>) attributes {dimension_semantics = [], scalar_prefetch = 0 : i64, scratch_operands = 1 : i64, tpu.core_type = #tpu.core_type<tc>} {
    %c0 = arith.constant 0 : index
    %c0_0 = arith.constant 0 : index
    %0 = vector.load %arg2[%c0, %c0_0] : memref<512x64xf32, #tpu.memory_space<vmem>>, vector<512x64xf32>
    %c0_1 = arith.constant 0 : index
    %c0_2 = arith.constant 0 : index
    %1 = vector.load %arg3[%c0_1, %c0_2] : memref<128x512xf32, #tpu.memory_space<vmem>>, vector<128x512xf32>
    %c0_3 = arith.constant 0 : index
    %c0_4 = arith.constant 0 : index
    %2 = vector.load %arg1[%c0_3, %c0_4] : memref<1x512xf32, #tpu.memory_space<vmem>>, vector<1x512xf32>
    %3 = vector.shape_cast %2 : vector<1x512xf32> to vector<1x512xf32>
    %4 = vector.broadcast %3 : vector<1x512xf32> to vector<16x512xf32>
    %c0_5 = arith.constant 0 : index
    %c0_6 = arith.constant 0 : index
    %5 = vector.load %arg0[%c0_5, %c0_6] : memref<16x512xf32, #tpu.memory_space<vmem>>, vector<16x512xf32>
    %c0_7 = arith.constant 0 : index
    %c0_8 = arith.constant 0 : index
    %6 = vector.load %arg5[%c0_7, %c0_8] : memref<48x128xf32, #tpu.memory_space<vmem>>, vector<16x128xf32>
    %7 = arith.mulf %5, %4 : vector<16x512xf32>
    %8 = arith.subf %5, %7 : vector<16x512xf32>
    %c0_9 = arith.constant 0 : index
    %c0_10 = arith.constant 0 : index
    %9 = vector.load %arg7[%c0_9, %c0_10] : memref<128x512xf32, #tpu.memory_space<vmem>>, vector<16x512xf32>
    tpu.vector_store %arg7[%c0_9, %c0_10], %7 {strides = array<i32>} : memref<128x512xf32, #tpu.memory_space<vmem>>, vector<16x512xf32>,
    %c16 = arith.constant 16 : index
    %c0_11 = arith.constant 0 : index
    %10 = vector.load %arg7[%c16, %c0_11] : memref<128x512xf32, #tpu.memory_space<vmem>>, vector<16x512xf32>
    tpu.vector_store %arg7[%c16, %c0_11], %8 {strides = array<i32>} : memref<128x512xf32, #tpu.memory_space<vmem>>, vector<16x512xf32>,
    %c0_12 = arith.constant 0 : index
    %c0_13 = arith.constant 0 : index
    %11 = vector.load %arg7[%c0_12, %c0_13] : memref<128x512xf32, #tpu.memory_space<vmem>>, vector<32x512xf32>
    %cst = arith.constant dense<0.000000e+00> : vector<32x64xf32>
    %12 = tpu.matmul %11, %0, %cst {dimension_numbers = #tpu.dot_dimension_numbers<[1], [0], [0], [1], [0, 0, 1, 1], [], []>} : vector<32x512xf32>, vector<512x64xf32>, vector<32x64xf32> -> vector<32x64xf32>
    %13 = vector.extract_strided_slice %12 {offsets = [0, 0], sizes = [16, 32], strides = [1, 1]} : vector<32x64xf32> to vector<16x32xf32>
    %14 = vector.extract_strided_slice %12 {offsets = [16, 0], sizes = [16, 32], strides = [1, 1]} : vector<32x64xf32> to vector<16x32xf32>
    %15 = arith.addf %13, %14 : vector<16x32xf32>
    %16 = vector.extract_strided_slice %12 {offsets = [16, 32], sizes = [16, 32], strides = [1, 1]} : vector<32x64xf32> to vector<16x32xf32>
    %17 = arith.addf %13, %16 : vector<16x32xf32>
    %cst_14 = arith.constant 0.000000e+00 : f32
    %18 = vector.broadcast %cst_14 : f32 to vector<16x32xf32>
    %19 = tpu.concatenate %15, %18, %18, %18 in 1 : vector<16x32xf32>, vector<16x32xf32>, vector<16x32xf32>, vector<16x32xf32> -> vector<16x128xf32>
    %20 = tpu.concatenate %18, %17, %18, %18 in 1 : vector<16x32xf32>, vector<16x32xf32>, vector<16x32xf32>, vector<16x32xf32> -> vector<16x128xf32>
    %21 = tpu.concatenate %18, %18, %13, %18 in 1 : vector<16x32xf32>, vector<16x32xf32>, vector<16x32xf32>, vector<16x32xf32> -> vector<16x128xf32>
    %22 = tpu.concatenate %18, %18, %15, %18 in 1 : vector<16x32xf32>, vector<16x32xf32>, vector<16x32xf32>, vector<16x32xf32> -> vector<16x128xf32>
    %23 = tpu.concatenate %18, %18, %18, %13 in 1 : vector<16x32xf32>, vector<16x32xf32>, vector<16x32xf32>, vector<16x32xf32> -> vector<16x128xf32>
    %24 = tpu.concatenate %18, %18, %18, %17 in 1 : vector<16x32xf32>, vector<16x32xf32>, vector<16x32xf32>, vector<16x32xf32> -> vector<16x128xf32>
    %25 = tpu.concatenate %19, %20, %21, %22, %23, %24 in 0 : vector<16x128xf32>, vector<16x128xf32>, vector<16x128xf32>, vector<16x128xf32>, vector<16x128xf32>, vector<16x128xf32> -> vector<96x128xf32>
    %cst_15 = arith.constant dense<0.000000e+00> : vector<96x512xf32>
    %26 = tpu.matmul %25, %1, %cst_15 {dimension_numbers = #tpu.dot_dimension_numbers<[1], [0], [0], [1], [0, 0, 1, 1], [], []>} : vector<96x128xf32>, vector<128x512xf32>, vector<96x512xf32> -> vector<96x512xf32>
    %c32 = arith.constant 32 : index
    %c0_16 = arith.constant 0 : index
    %27 = vector.load %arg7[%c32, %c0_16] : memref<128x512xf32, #tpu.memory_space<vmem>>, vector<96x512xf32>
    tpu.vector_store %arg7[%c32, %c0_16], %26 {strides = array<i32>} : memref<128x512xf32, #tpu.memory_space<vmem>>, vector<96x512xf32>,
    %c0_17 = arith.constant 0 : index
    %c0_18 = arith.constant 0 : index
    %28 = vector.load %arg7[%c0_17, %c0_18] : memref<128x512xf32, #tpu.memory_space<vmem>>, vector<128x512xf32>
    %cst_19 = arith.constant dense<0.000000e+00> : vector<16x512xf32>
    %29 = tpu.matmul %6, %28, %cst_19 {dimension_numbers = #tpu.dot_dimension_numbers<[1], [0], [0], [1], [0, 0, 1, 1], [], []>} : vector<16x128xf32>, vector<128x512xf32>, vector<16x512xf32> -> vector<16x512xf32>
    %cst_20 = arith.constant 0.000000e+00 : f32
    %30 = vector.broadcast %cst_20 : f32 to vector<16x512xf32>
    %31 = arith.maximumf %29, %30 : vector<16x512xf32>
    %cst_21 = arith.constant dense<0.000000e+00> : vector<16xf32>
    %32 = vector.multi_reduction <add>, %31, %cst_21 [1] : vector<16x512xf32> to vector<16xf32>
    %33 = vector.shape_cast %32 : vector<16xf32> to vector<16x1xf32>
    %cst_22 = arith.constant 5.120000e+02 : f32
    %34 = vector.broadcast %cst_22 : f32 to vector<16x1xf32>
    %35 = arith.divf %33, %34 : vector<16x1xf32>
    %36 = vector.broadcast %35 : vector<16x1xf32> to vector<16x512xf32>
    %37 = arith.subf %31, %36 : vector<16x512xf32>
    %38 = arith.mulf %37, %37 : vector<16x512xf32>
    %cst_23 = arith.constant dense<0.000000e+00> : vector<16xf32>
    %39 = vector.multi_reduction <add>, %38, %cst_23 [1] : vector<16x512xf32> to vector<16xf32>
    %40 = vector.shape_cast %39 : vector<16xf32> to vector<16x1xf32>
    %cst_24 = arith.constant 5.120000e+02 : f32
    %41 = vector.broadcast %cst_24 : f32 to vector<16x1xf32>
    %42 = arith.divf %40, %41 : vector<16x1xf32>
    %43 = vector.broadcast %35 : vector<16x1xf32> to vector<16x512xf32>
    %44 = arith.subf %31, %43 : vector<16x512xf32>
    %cst_25 = arith.constant 9.99999974E-6 : f32
    %45 = vector.broadcast %cst_25 : f32 to vector<16x1xf32>
    %46 = arith.addf %42, %45 : vector<16x1xf32>
    %47 = math.rsqrt %46 : vector<16x1xf32>
    %48 = vector.broadcast %47 : vector<16x1xf32> to vector<16x512xf32>
    %49 = arith.mulf %44, %48 : vector<16x512xf32>
    %c16_26 = arith.constant 16 : index
    %c0_27 = arith.constant 0 : index
    %50 = vector.load %arg5[%c16_26, %c0_27] : memref<48x128xf32, #tpu.memory_space<vmem>>, vector<16x128xf32>
    %51 = arith.mulf %49, %4 : vector<16x512xf32>
    %52 = arith.subf %49, %51 : vector<16x512xf32>
    %c0_28 = arith.constant 0 : index
    %c0_29 = arith.constant 0 : index
    %53 = vector.load %arg7[%c0_28, %c0_29] : memref<128x512xf32, #tpu.memory_space<vmem>>, vector<16x512xf32>
    tpu.vector_store %arg7[%c0_28, %c0_29], %51 {strides = array<i32>} : memref<128x512xf32, #tpu.memory_space<vmem>>, vector<16x512xf32>,
    %c16_30 = arith.constant 16 : index
    %c0_31 = arith.constant 0 : index
    %54 = vector.load %arg7[%c16_30, %c0_31] : memref<128x512xf32, #tpu.memory_space<vmem>>, vector<16x512xf32>
    tpu.vector_store %arg7[%c16_30, %c0_31], %52 {strides = array<i32>} : memref<128x512xf32, #tpu.memory_space<vmem>>, vector<16x512xf32>,
    %c0_32 = arith.constant 0 : index
    %c0_33 = arith.constant 0 : index
    %55 = vector.load %arg7[%c0_32, %c0_33] : memref<128x512xf32, #tpu.memory_space<vmem>>, vector<32x512xf32>
    %cst_34 = arith.constant dense<0.000000e+00> : vector<32x64xf32>
    %56 = tpu.matmul %55, %0, %cst_34 {dimension_numbers = #tpu.dot_dimension_numbers<[1], [0], [0], [1], [0, 0, 1, 1], [], []>} : vector<32x512xf32>, vector<512x64xf32>, vector<32x64xf32> -> vector<32x64xf32>
    %57 = vector.extract_strided_slice %56 {offsets = [0, 0], sizes = [16, 32], strides = [1, 1]} : vector<32x64xf32> to vector<16x32xf32>
    %58 = vector.extract_strided_slice %56 {offsets = [16, 0], sizes = [16, 32], strides = [1, 1]} : vector<32x64xf32> to vector<16x32xf32>
    %59 = arith.addf %57, %58 : vector<16x32xf32>
    %60 = vector.extract_strided_slice %56 {offsets = [16, 32], sizes = [16, 32], strides = [1, 1]} : vector<32x64xf32> to vector<16x32xf32>
    %61 = arith.addf %57, %60 : vector<16x32xf32>
    %cst_35 = arith.constant 0.000000e+00 : f32
    %62 = vector.broadcast %cst_35 : f32 to vector<16x32xf32>
    %63 = tpu.concatenate %59, %62, %62, %62 in 1 : vector<16x32xf32>, vector<16x32xf32>, vector<16x32xf32>, vector<16x32xf32> -> vector<16x128xf32>
    %64 = tpu.concatenate %62, %61, %62, %62 in 1 : vector<16x32xf32>, vector<16x32xf32>, vector<16x32xf32>, vector<16x32xf32> -> vector<16x128xf32>
    %65 = tpu.concatenate %62, %62, %57, %62 in 1 : vector<16x32xf32>, vector<16x32xf32>, vector<16x32xf32>, vector<16x32xf32> -> vector<16x128xf32>
    %66 = tpu.concatenate %62, %62, %59, %62 in 1 : vector<16x32xf32>, vector<16x32xf32>, vector<16x32xf32>, vector<16x32xf32> -> vector<16x128xf32>
    %67 = tpu.concatenate %62, %62, %62, %57 in 1 : vector<16x32xf32>, vector<16x32xf32>, vector<16x32xf32>, vector<16x32xf32> -> vector<16x128xf32>
    %68 = tpu.concatenate %62, %62, %62, %61 in 1 : vector<16x32xf32>, vector<16x32xf32>, vector<16x32xf32>, vector<16x32xf32> -> vector<16x128xf32>
    %69 = tpu.concatenate %63, %64, %65, %66, %67, %68 in 0 : vector<16x128xf32>, vector<16x128xf32>, vector<16x128xf32>, vector<16x128xf32>, vector<16x128xf32>, vector<16x128xf32> -> vector<96x128xf32>
    %cst_36 = arith.constant dense<0.000000e+00> : vector<96x512xf32>
    %70 = tpu.matmul %69, %1, %cst_36 {dimension_numbers = #tpu.dot_dimension_numbers<[1], [0], [0], [1], [0, 0, 1, 1], [], []>} : vector<96x128xf32>, vector<128x512xf32>, vector<96x512xf32> -> vector<96x512xf32>
    %c32_37 = arith.constant 32 : index
    %c0_38 = arith.constant 0 : index
    %71 = vector.load %arg7[%c32_37, %c0_38] : memref<128x512xf32, #tpu.memory_space<vmem>>, vector<96x512xf32>
    tpu.vector_store %arg7[%c32_37, %c0_38], %70 {strides = array<i32>} : memref<128x512xf32, #tpu.memory_space<vmem>>, vector<96x512xf32>,
    %c0_39 = arith.constant 0 : index
    %c0_40 = arith.constant 0 : index
    %72 = vector.load %arg7[%c0_39, %c0_40] : memref<128x512xf32, #tpu.memory_space<vmem>>, vector<128x512xf32>
    %cst_41 = arith.constant dense<0.000000e+00> : vector<16x512xf32>
    %73 = tpu.matmul %50, %72, %cst_41 {dimension_numbers = #tpu.dot_dimension_numbers<[1], [0], [0], [1], [0, 0, 1, 1], [], []>} : vector<16x128xf32>, vector<128x512xf32>, vector<16x512xf32> -> vector<16x512xf32>
    %cst_42 = arith.constant 0.000000e+00 : f32
    %74 = vector.broadcast %cst_42 : f32 to vector<16x512xf32>
    %75 = arith.maximumf %73, %74 : vector<16x512xf32>
    %cst_43 = arith.constant dense<0.000000e+00> : vector<16xf32>
    %76 = vector.multi_reduction <add>, %75, %cst_43 [1] : vector<16x512xf32> to vector<16xf32>
    %77 = vector.shape_cast %76 : vector<16xf32> to vector<16x1xf32>
    %cst_44 = arith.constant 5.120000e+02 : f32
    %78 = vector.broadcast %cst_44 : f32 to vector<16x1xf32>
    %79 = arith.divf %77, %78 : vector<16x1xf32>
    %80 = vector.broadcast %79 : vector<16x1xf32> to vector<16x512xf32>
    %81 = arith.subf %75, %80 : vector<16x512xf32>
    %82 = arith.mulf %81, %81 : vector<16x512xf32>
    %cst_45 = arith.constant dense<0.000000e+00> : vector<16xf32>
    %83 = vector.multi_reduction <add>, %82, %cst_45 [1] : vector<16x512xf32> to vector<16xf32>
    %84 = vector.shape_cast %83 : vector<16xf32> to vector<16x1xf32>
    %cst_46 = arith.constant 5.120000e+02 : f32
    %85 = vector.broadcast %cst_46 : f32 to vector<16x1xf32>
    %86 = arith.divf %84, %85 : vector<16x1xf32>
    %87 = vector.broadcast %79 : vector<16x1xf32> to vector<16x512xf32>
    %88 = arith.subf %75, %87 : vector<16x512xf32>
    %cst_47 = arith.constant 9.99999974E-6 : f32
    %89 = vector.broadcast %cst_47 : f32 to vector<16x1xf32>
    %90 = arith.addf %86, %89 : vector<16x1xf32>
    %91 = math.rsqrt %90 : vector<16x1xf32>
    %92 = vector.broadcast %91 : vector<16x1xf32> to vector<16x512xf32>
    %93 = arith.mulf %88, %92 : vector<16x512xf32>
    %c32_48 = arith.constant 32 : index
    %c0_49 = arith.constant 0 : index
    %94 = vector.load %arg5[%c32_48, %c0_49] : memref<48x128xf32, #tpu.memory_space<vmem>>, vector<16x128xf32>
    %95 = arith.mulf %93, %4 : vector<16x512xf32>
    %96 = arith.subf %93, %95 : vector<16x512xf32>
    %c0_50 = arith.constant 0 : index
    %c0_51 = arith.constant 0 : index
    %97 = vector.load %arg7[%c0_50, %c0_51] : memref<128x512xf32, #tpu.memory_space<vmem>>, vector<16x512xf32>
    tpu.vector_store %arg7[%c0_50, %c0_51], %95 {strides = array<i32>} : memref<128x512xf32, #tpu.memory_space<vmem>>, vector<16x512xf32>,
    %c16_52 = arith.constant 16 : index
    %c0_53 = arith.constant 0 : index
    %98 = vector.load %arg7[%c16_52, %c0_53] : memref<128x512xf32, #tpu.memory_space<vmem>>, vector<16x512xf32>
    tpu.vector_store %arg7[%c16_52, %c0_53], %96 {strides = array<i32>} : memref<128x512xf32, #tpu.memory_space<vmem>>, vector<16x512xf32>,
    %c0_54 = arith.constant 0 : index
    %c0_55 = arith.constant 0 : index
    %99 = vector.load %arg7[%c0_54, %c0_55] : memref<128x512xf32, #tpu.memory_space<vmem>>, vector<32x512xf32>
    %cst_56 = arith.constant dense<0.000000e+00> : vector<32x64xf32>
    %100 = tpu.matmul %99, %0, %cst_56 {dimension_numbers = #tpu.dot_dimension_numbers<[1], [0], [0], [1], [0, 0, 1, 1], [], []>} : vector<32x512xf32>, vector<512x64xf32>, vector<32x64xf32> -> vector<32x64xf32>
    %101 = vector.extract_strided_slice %100 {offsets = [0, 0], sizes = [16, 32], strides = [1, 1]} : vector<32x64xf32> to vector<16x32xf32>
    %102 = vector.extract_strided_slice %100 {offsets = [16, 0], sizes = [16, 32], strides = [1, 1]} : vector<32x64xf32> to vector<16x32xf32>
    %103 = arith.addf %101, %102 : vector<16x32xf32>
    %104 = vector.extract_strided_slice %100 {offsets = [16, 32], sizes = [16, 32], strides = [1, 1]} : vector<32x64xf32> to vector<16x32xf32>
    %105 = arith.addf %101, %104 : vector<16x32xf32>
    %cst_57 = arith.constant 0.000000e+00 : f32
    %106 = vector.broadcast %cst_57 : f32 to vector<16x32xf32>
    %107 = tpu.concatenate %103, %106, %106, %106 in 1 : vector<16x32xf32>, vector<16x32xf32>, vector<16x32xf32>, vector<16x32xf32> -> vector<16x128xf32>
    %108 = tpu.concatenate %106, %105, %106, %106 in 1 : vector<16x32xf32>, vector<16x32xf32>, vector<16x32xf32>, vector<16x32xf32> -> vector<16x128xf32>
    %109 = tpu.concatenate %106, %106, %101, %106 in 1 : vector<16x32xf32>, vector<16x32xf32>, vector<16x32xf32>, vector<16x32xf32> -> vector<16x128xf32>
    %110 = tpu.concatenate %106, %106, %103, %106 in 1 : vector<16x32xf32>, vector<16x32xf32>, vector<16x32xf32>, vector<16x32xf32> -> vector<16x128xf32>
    %111 = tpu.concatenate %106, %106, %106, %101 in 1 : vector<16x32xf32>, vector<16x32xf32>, vector<16x32xf32>, vector<16x32xf32> -> vector<16x128xf32>
    %112 = tpu.concatenate %106, %106, %106, %105 in 1 : vector<16x32xf32>, vector<16x32xf32>, vector<16x32xf32>, vector<16x32xf32> -> vector<16x128xf32>
    %113 = tpu.concatenate %107, %108, %109, %110, %111, %112 in 0 : vector<16x128xf32>, vector<16x128xf32>, vector<16x128xf32>, vector<16x128xf32>, vector<16x128xf32>, vector<16x128xf32> -> vector<96x128xf32>
    %cst_58 = arith.constant dense<0.000000e+00> : vector<96x512xf32>
    %114 = tpu.matmul %113, %1, %cst_58 {dimension_numbers = #tpu.dot_dimension_numbers<[1], [0], [0], [1], [0, 0, 1, 1], [], []>} : vector<96x128xf32>, vector<128x512xf32>, vector<96x512xf32> -> vector<96x512xf32>
    %c32_59 = arith.constant 32 : index
    %c0_60 = arith.constant 0 : index
    %115 = vector.load %arg7[%c32_59, %c0_60] : memref<128x512xf32, #tpu.memory_space<vmem>>, vector<96x512xf32>
    tpu.vector_store %arg7[%c32_59, %c0_60], %114 {strides = array<i32>} : memref<128x512xf32, #tpu.memory_space<vmem>>, vector<96x512xf32>,
    %c0_61 = arith.constant 0 : index
    %c0_62 = arith.constant 0 : index
    %116 = vector.load %arg7[%c0_61, %c0_62] : memref<128x512xf32, #tpu.memory_space<vmem>>, vector<128x512xf32>
    %cst_63 = arith.constant dense<0.000000e+00> : vector<16x512xf32>
    %117 = tpu.matmul %94, %116, %cst_63 {dimension_numbers = #tpu.dot_dimension_numbers<[1], [0], [0], [1], [0, 0, 1, 1], [], []>} : vector<16x128xf32>, vector<128x512xf32>, vector<16x512xf32> -> vector<16x512xf32>
    %118 = vector.extract_strided_slice %117 {offsets = [0, 0], sizes = [8, 512], strides = [1, 1]} : vector<16x512xf32> to vector<8x512xf32>
    %c0_64 = arith.constant 0 : index
    %c0_65 = arith.constant 0 : index
    %119 = vector.load %arg4[%c0_64, %c0_65] : memref<512x128xf32, #tpu.memory_space<vmem>>, vector<512x128xf32>
    %cst_66 = arith.constant dense<0.000000e+00> : vector<8x128xf32>
    %120 = tpu.matmul %118, %119, %cst_66 {dimension_numbers = #tpu.dot_dimension_numbers<[1], [0], [0], [1], [0, 0, 1, 1], [], []>} : vector<8x512xf32>, vector<512x128xf32>, vector<8x128xf32> -> vector<8x128xf32>
    %121 = arith.negf %120 : vector<8x128xf32>
    %122 = math.exp %121 : vector<8x128xf32>
    %cst_67 = arith.constant 1.000000e+00 : f32
    %123 = vector.broadcast %cst_67 : f32 to vector<8x128xf32>
    %124 = arith.addf %123, %122 : vector<8x128xf32>
    %125 = arith.divf %123, %124 : vector<8x128xf32>
    %c0_68 = arith.constant 0 : index
    %c0_69 = arith.constant 0 : index
    %126 = vector.load %arg6[%c0_68, %c0_69] : memref<8x128xf32, #tpu.memory_space<vmem>>, vector<8x128xf32>
    tpu.vector_store %arg6[%c0_68, %c0_69], %125 {strides = array<i32>} : memref<8x128xf32, #tpu.memory_space<vmem>>, vector<8x128xf32>,
    return
  }
}

</mosaic_0001>

<bundles_post_ra>
// kernel: squeeze.59
= control target key start
LH: loop header
LB: loop body
LE: loop exit
PB: predicated region body
PF: predicated region fallthrough
CT: control target
= control target key end

     0   :  { %s80_s0 = inlined_call_operand.vmem [shape: f32[32], index: 0, kind: input, shape index: {}]   ;;  %s81_s1 = inlined_call_operand.hbm [shape: f32[2,16], index: 1, kind: output, shape index: {}]  }
   0x1   :  { %v5_v0 = vld [vmem:[%s80_s0] sm:$0x1] }
   0x2   :  { %2 = vsyncpa [#allocation1], 0  ;;  %6 = vst [vmem:[#allocation3] sm:$0x1] %v5_v0  ;;  %vm8_vm0 = vcmask 130048   ;;  %s62_s0 = smov 112  }
   0x3   :  { %s63_s8 = smov [#allocation0]   ;;  %s27_s1 = sshll.u32 %s81_s1, 4  ;;  %s28_s1 = int_to_ptr.hbm [resolvable:$true] %s27_s1 }
   0x4   :  { %s25_s9 = sshll.u32 %s63_s8, 4  ;;  %s26_s9 = int_to_ptr.vmem [resolvable:$true] %s25_s9 }
   0x9   :  { %v10_v1 = vld [vmem:[#allocation3] sm:$0x1]  }
   0xa   :  { %v7_v2 = vld [vmem:[#allocation3] sm:$0x1]   ;;  %11 = vrot.lane.b32.xlu0 %v10_v1, %s62_s0 }
   0xb   :  { %9 = vst.msk [vmem:[#allocation2] sm:$0x1] %vm8_vm0, %v7_v2  }
  0x7c   :  { %v12_v3 = vpop.permute.xlu0 %11  }
  0x7d   :  { %15 = vst.msk [vmem:[#allocation2 + $0x1] sm:$0x1] %vm8_vm0, %v12_v3  }
  0x84   :  { %v18_v4 = vld [vmem:[#allocation2] sm:$0x3] }
  0x85   :  { %21 = vst [vmem:[#allocation0] sm:$0x3] %v18_v4 }
  0x86   :  { %30 = dma.vmem_to_hbm [thread:$0]  %s26_s9, 32, %s28_s1, [#allocation1]  }
  0x87   :  { %60 = dma.done.wait [#allocation1], 32  }
  0x88   :  { %61 = vsyncadd [#allocation1], 4294967264 }
  0x89   :  { %33 = vsyncpa [#allocation1], 1 }

// kernel: gnn2d_forward.1
= control target key start
LH: loop header
LB: loop body
LE: loop exit
PB: predicated region body
PF: predicated region fallthrough
CT: control target
= control target key end

     0   :  { %s2800_s19 = smov 64   ;;  %vm347_vm0 = vcmask 261120   ;;  %s2801_s20 = smov 96   ;;  %vm350_vm1 = vcmask 523264   ;;  %vm353_vm2 = vcmask 785408   ;;  %s5038_s2 = inlined_call_operand.vmem [shape: f32[512,64], index: 2, kind: input, shape index: {}]   ;;  %s5039_s1 = inlined_call_operand.vmem [shape: f32[1,512], index: 1, kind: input, shape index: {}]   ;;  %s5040_s0 = inlined_call_operand.vmem [shape: f32[16,512], index: 0, kind: input, shape index: {}]   ;;  %s5041_s3 = inlined_call_operand.vmem [shape: f32[128,512], index: 3, kind: input, shape index: {}]   ;;  %s5042_s5 = inlined_call_operand.vmem [shape: f32[48,128], index: 5, kind: input, shape index: {}]   ;;  %s5043_s4 = inlined_call_operand.vmem [shape: f32[512,128], index: 4, kind: input, shape index: {}]   ;;  %s5044_s6 = inlined_call_operand.vmem [shape: f32[8,128], index: 6, kind: output, shape index: {}]  }
   0x1   :  { %v70_v0 = vld [vmem:[%s5038_s2 + $0x178] sm:$0xff]  ;;  %v69_v1 = vld [vmem:[%s5038_s2 + $0x170] sm:$0xff]  ;;  %v68_v5 = vld [vmem:[%s5038_s2 + $0x168] sm:$0xff]  ;;  %s2802_s21 = smov 32  }
   0x2   :  { %v86_v2 = vld [vmem:[%s5038_s2 + $0x1f8] sm:$0xff]  ;;  %277 = vmatpush.msra.mxu2 %v70_v0  ;;  %v85_v6 = vld [vmem:[%s5038_s2 + $0x1f0] sm:$0xff]  ;;  %v84_v9 = vld [vmem:[%s5038_s2 + $0x1e8] sm:$0xff] }
   0x3   :  { %306 = vmatpush.msra.mxu3 %v86_v2  ;;  %v38_v3 = vld [vmem:[%s5038_s2 + $0x78] sm:$0xff]  ;;  %v37_v7 = vld [vmem:[%s5038_s2 + $0x70] sm:$0xff]  ;;  %v36_v10 = vld [vmem:[%s5038_s2 + $0x68] sm:$0xff] }
   0x4   :  { %v54_v4 = vld [vmem:[%s5038_s2 + $0xf8] sm:$0xff]  ;;  %219 = vmatpush.msra.mxu0 %v38_v3  ;;  %v53_v8 = vld [vmem:[%s5038_s2 + $0xf0] sm:$0xff]  ;;  %278 = vmatpush.msra.mxu2 %v69_v1  ;;  %v67_v11 = vld [vmem:[%s5038_s2 + $0x160] sm:$0xff] }
   0x5   :  { %248 = vmatpush.msra.mxu1 %v54_v4  ;;  %307 = vmatpush.msra.mxu3 %v85_v6  ;;  %v52_v12 = vld [vmem:[%s5038_s2 + $0xe8] sm:$0xff]  ;;  %v83_v13 = vld [vmem:[%s5038_s2 + $0x1e0] sm:$0xff]  ;;  %v66_v16 = vld [vmem:[%s5038_s2 + $0x158] sm:$0xff] }
   0x6   :  { %220 = vmatpush.msra.mxu0 %v37_v7  ;;  %279 = vmatpush.msra.mxu2 %v68_v5  ;;  %v35_v14 = vld [vmem:[%s5038_s2 + $0x60] sm:$0xff]  ;;  %v82_v17 = vld [vmem:[%s5038_s2 + $0x1d8] sm:$0xff]  ;;  %v65_v20 = vld [vmem:[%s5038_s2 + $0x150] sm:$0xff] }
   0x7   :  { %249 = vmatpush.msra.mxu1 %v53_v8  ;;  %308 = vmatpush.msra.mxu3 %v84_v9  ;;  %v51_v15 = vld [vmem:[%s5038_s2 + $0xe0] sm:$0xff]  ;;  %v34_v18 = vld [vmem:[%s5038_s2 + $0x58] sm:$0xff]  ;;  %v81_v21 = vld [vmem:[%s5038_s2 + $0x1d0] sm:$0xff] }
   0x8   :  { %221 = vmatpush.msra.mxu0 %v36_v10  ;;  %280 = vmatpush.msra.mxu2 %v67_v11  ;;  %v50_v19 = vld [vmem:[%s5038_s2 + $0xd8] sm:$0xff]  ;;  %v33_v22 = vld [vmem:[%s5038_s2 + $0x50] sm:$0xff]  ;;  %v64_v24 = vld [vmem:[%s5038_s2 + $0x148] sm:$0xff] }
   0x9   :  { %250 = vmatpush.msra.mxu1 %v52_v12  ;;  %309 = vmatpush.msra.mxu3 %v83_v13  ;;  %v49_v23 = vld [vmem:[%s5038_s2 + $0xd0] sm:$0xff]  ;;  %v80_v25 = vld [vmem:[%s5038_s2 + $0x1c8] sm:$0xff]  ;;  %v63_v28 = vld [vmem:[%s5038_s2 + $0x140] sm:$0xff] }
   0xa   :  { %222 = vmatpush.msra.mxu0 %v35_v14  ;;  %281 = vmatpush.msra.mxu2 %v66_v16  ;;  %v32_v26 = vld [vmem:[%s5038_s2 + $0x48] sm:$0xff]  ;;  %v79_v29 = vld [vmem:[%s5038_s2 + $0x1c0] sm:$0xff]  ;;  %v62_v32 = vld [vmem:[%s5038_s2 + $0x138] sm:$0xff] }
   0xb   :  { %251 = vmatpush.msra.mxu1 %v51_v15  ;;  %310 = vmatpush.msra.mxu3 %v82_v17  ;;  %v48_v27 = vld [vmem:[%s5038_s2 + $0xc8] sm:$0xff]  ;;  %v31_v30 = vld [vmem:[%s5038_s2 + $0x40] sm:$0xff]  ;;  %v78_v33 = vld [vmem:[%s5038_s2 + $0x1b8] sm:$0xff] }
   0xc   :  { %223 = vmatpush.msra.mxu0 %v34_v18  ;;  %282 = vmatpush.msra.mxu2 %v65_v20  ;;  %v47_v31 = vld [vmem:[%s5038_s2 + $0xc0] sm:$0xff]  ;;  %v30_v34 = vld [vmem:[%s5038_s2 + $0x38] sm:$0xff]  ;;  %v61_v36 = vld [vmem:[%s5038_s2 + $0x130] sm:$0xff] }
   0xd   :  { %252 = vmatpush.msra.mxu1 %v50_v19  ;;  %311 = vmatpush.msra.mxu3 %v81_v21  ;;  %v46_v35 = vld [vmem:[%s5038_s2 + $0xb8] sm:$0xff]  ;;  %v77_v37 = vld [vmem:[%s5038_s2 + $0x1b0] sm:$0xff]  ;;  %v60_v40 = vld [vmem:[%s5038_s2 + $0x128] sm:$0xff] }
   0xe   :  { %224 = vmatpush.msra.mxu0 %v33_v22  ;;  %283 = vmatpush.msra.mxu2 %v64_v24  ;;  %v29_v38 = vld [vmem:[%s5038_s2 + $0x30] sm:$0xff]  ;;  %v76_v41 = vld [vmem:[%s5038_s2 + $0x1a8] sm:$0xff]  ;;  %v2978_v44 = vld [vmem:[%s5038_s2 + $0x120] sm:$0xff] }
   0xf   :  { %253 = vmatpush.msra.mxu1 %v49_v23  ;;  %312 = vmatpush.msra.mxu3 %v80_v25  ;;  %v45_v39 = vld [vmem:[%s5038_s2 + $0xb0] sm:$0xff]  ;;  %v2968_v42 = vld [vmem:[%s5038_s2 + $0x28] sm:$0xff]  ;;  %5192 = vst [vmem:[#allocation5_spill] sm:$0xff] %v2978_v44  ;;  %v2983_v45 = vld [vmem:[%s5038_s2 + $0x1a0] sm:$0xff] }
  0x10   :  { %225 = vmatpush.msra.mxu0 %v32_v26  ;;  %284 = vmatpush.msra.mxu2 %v63_v28  ;;  %5190 = vst [vmem:[#allocation3_spill] sm:$0xff] %v2968_v42  ;;  %v2973_v43 = vld [vmem:[%s5038_s2 + $0xa8] sm:$0xff]  ;;  %v2988_v46 = vld [vmem:[%s5038_s2 + $0x20] sm:$0xff]  ;;  %v3003_v49 = vld [vmem:[%s5038_s2 + $0x118] sm:$0xff] }
  0x11   :  { %254 = vmatpush.msra.mxu1 %v48_v27  ;;  %313 = vmatpush.msra.mxu3 %v79_v29  ;;  %5191 = vst [vmem:[#allocation4_spill] sm:$0xff] %v2973_v43  ;;  %v2993_v47 = vld [vmem:[%s5038_s2 + $0xa0] sm:$0xff]  ;;  %v3008_v50 = vld [vmem:[%s5038_s2 + $0x198] sm:$0xff]  ;;  %v3027_v53 = vld [vmem:[%s5038_s2 + $0x110] sm:$0xff] }
  0x12   :  { %226 = vmatpush.msra.mxu0 %v31_v30  ;;  %285 = vmatpush.msra.mxu2 %v62_v32  ;;  %5193 = vst [vmem:[#allocation6_spill] sm:$0xff] %v2983_v45  ;;  %v151_v48 = vld [vmem:[%s5039_s1] sm:$0xf]  ;;  %v3015_v51 = vld [vmem:[%s5038_s2 + $0x18] sm:$0xff]  ;;  %v3032_v54 = vld [vmem:[%s5038_s2 + $0x190] sm:$0xff] }
  0x13   :  { %255 = vmatpush.msra.mxu1 %v47_v31  ;;  %314 = vmatpush.msra.mxu3 %v78_v33  ;;  %5194 = vst [vmem:[#allocation7_spill] sm:$0xff] %v2988_v46  ;;  %v3020_v52 = vld [vmem:[%s5038_s2 + $0x98] sm:$0xff]  ;;  %v3037_v55 = vld [vmem:[%s5038_s2 + $0x10] sm:$0xff]  ;;  %v3039_v56 = vperm.slane %v151_v48, 2  ;;  %v3041_v57 = vperm.slane %v151_v48, 3  ;;  %v3065_v61 = vld [vmem:[%s5038_s2 + $0x108] sm:$0xff] }
  0x14   :  { %227 = vmatpush.msra.mxu0 %v30_v34  ;;  %286 = vmatpush.msra.mxu2 %v61_v36  ;;  %5195 = vst [vmem:[#allocation8_spill] sm:$0xff] %v2993_v47  ;;  %v3048_v58 = vld [vmem:[%s5038_s2 + $0x90] sm:$0xff]  ;;  %v3058_v60 = vld [vmem:[%s5040_s0 + $0x18] sm:$0xff]  ;;  %v3070_v62 = vld [vmem:[%s5038_s2 + $0x188] sm:$0xff]  ;;  %v3077_v0 = vperm.slane %v151_v48, 0  ;;  %v3079_v1 = vperm.slane %v151_v48, 1 }
  0x15   :  { %256 = vmatpush.msra.mxu1 %v46_v35  ;;  %315 = vmatpush.msra.mxu3 %v77_v37  ;;  %5196 = vst [vmem:[#allocation9_spill] sm:$0xff] %v3003_v49  ;;  %v3053_v59 = vld [vmem:[%s5040_s0 + $0x10] sm:$0xff]  ;;  %v3075_v63 = vld [vmem:[%s5038_s2 + $0x8] sm:$0xff]  ;;  %v161_v3 = vld [vmem:[%s5040_s0] sm:$0xff]  ;;  %v3112_v8 = vmul.f32 %v3058_v60, %v3041_v57 }
  0x16   :  { %228 = vmatpush.msra.mxu0 %v29_v38  ;;  %287 = vmatpush.msra.mxu2 %v60_v40  ;;  %5197 = vst [vmem:[#allocation10_spill] sm:$0xff] %v3008_v50  ;;  %v3086_v2 = vld [vmem:[%s5038_s2 + $0x88] sm:$0xff]  ;;  %v3099_v5 = vld [vmem:[%s5038_s2 + $0x100] sm:$0xff]  ;;  %v3103_v6 = vmul.f32 %v3053_v59, %v3039_v56  ;;  %v3129_v11 = vmul.f32 %v161_v3, %v3077_v0  ;;  %v167_v13 = vld [vmem:[%s5040_s0 + $0x30] sm:$0xff] }
  0x17   :  { %257 = vmatpush.msra.mxu1 %v45_v39  ;;  %316 = vmatpush.msra.mxu3 %v76_v41  ;;  %5198 = vst [vmem:[#allocation11_spill] sm:$0xff] %v3015_v51  ;;  %v162_v4 = vld [vmem:[%s5040_s0 + $0x8] sm:$0xff]  ;;  %v3108_v7 = vld [vmem:[%s5038_s2 + $0x180] sm:$0xff]  ;;  %v168_v16 = vld [vmem:[%s5040_s0 + $0x38] sm:$0xff]  ;;  %v3197_v25 = vmul.f32 %v167_v13, %v3039_v56  ;;  %v3224_v30 = vsub.f32 %v3058_v60, %v3112_v8 }
  0x18   :  { %229 = vmatpush.msra.mxu0 %v2968_v42  ;;  %288 = vmatpush.msra.mxu2 %v2978_v44  ;;  %5199 = vst [vmem:[#allocation12_spill] sm:$0xff] %v3020_v52  ;;  %v3121_v9 = vld [vmem:[%s5038_s2] sm:$0xff]  ;;  %v3132_v12 = vmul.f32 %v162_v4, %v3079_v1  ;;  %v3149_v15 = vld [vmem:[%s5041_s3 + $0x1e8] sm:$0xff]  ;;  %v3159_v17 = vld [vmem:[%s5041_s3 + $0x1f0] sm:$0xff]  ;;  %v3200_v26 = vmul.f32 %v168_v16, %v3041_v57 }
  0x19   :  { %258 = vmatpush.msra.mxu1 %v2973_v43  ;;  %317 = vmatpush.msra.mxu3 %v2983_v45  ;;  %5200 = vst [vmem:[#allocation13_spill] sm:$0xff] %v3027_v53  ;;  %v3126_v10 = vld [vmem:[%s5038_s2 + $0x80] sm:$0xff]  ;;  %v3164_v18 = vld [vmem:[%s5041_s3 + $0x1f8] sm:$0xff]  ;;  %v3179_v21 = vld [vmem:[%s5041_s3 + $0x1c8] sm:$0xff]  ;;  %v3220_v29 = vsub.f32 %v3053_v59, %v3103_v6  ;;  %v3227_v31 = vsub.f32 %v161_v3, %v3129_v11 }
  0x1a   :  { %230 = vmatpush.msra.mxu0 %v2988_v46  ;;  %5201 = vst [vmem:[#allocation14_spill] sm:$0xff] %v3032_v54  ;;  %289 = vmatpush.msra.mxu2 %v3003_v49  ;;  %v3144_v14 = vld [vmem:[%s5041_s3 + $0x1e0] sm:$0xff]  ;;  %v166_v22 = vld [vmem:[%s5040_s0 + $0x28] sm:$0xff]  ;;  %v3189_v23 = vld [vmem:[%s5041_s3 + $0x1d0] sm:$0xff]  ;;  %v3230_v32 = vsub.f32 %v162_v4, %v3132_v12  ;;  %v3237_v33 = vsub.f32 %v167_v13, %v3197_v25 }
  0x1b   :  { %259 = vmatpush.msra.mxu1 %v2993_v47  ;;  %5202 = vst [vmem:[#allocation15_spill] sm:$0xff] %v3037_v55  ;;  %318 = vmatpush.msra.mxu3 %v3008_v50  ;;  %v165_v19 = vld [vmem:[%s5040_s0 + $0x20] sm:$0xff]  ;;  %v3194_v24 = vld [vmem:[%s5041_s3 + $0x1d8] sm:$0xff]  ;;  %v3210_v28 = vmul.f32 %v166_v22, %v3079_v1  ;;  %v3240_v34 = vsub.f32 %v168_v16, %v3200_v26  ;;  %v3260_v38 = vld [vmem:[%s5041_s3 + $0x1a8] sm:$0xff] }
  0x1c   :  { %5203 = vst [vmem:[#allocation16_spill] sm:$0xff] %v3039_v56  ;;  %231 = vmatpush.msra.mxu0 %v3015_v51  ;;  %290 = vmatpush.msra.mxu2 %v3027_v53  ;;  %v3174_v20 = vld [vmem:[%s5041_s3 + $0x1c0] sm:$0xff]  ;;  %v3207_v27 = vmul.f32 %v165_v19, %v3077_v0  ;;  %v3265_v39 = vld [vmem:[%s5041_s3 + $0x1b0] sm:$0xff]  ;;  %v3272_v40 = vld [vmem:[%s5041_s3 + $0x1b8] sm:$0xff] }
  0x1d   :  { %5204 = vst [vmem:[#allocation17_spill] sm:$0xff] %v3041_v57  ;;  %260 = vmatpush.msra.mxu1 %v3020_v52  ;;  %319 = vmatpush.msra.mxu3 %v3032_v54  ;;  %v3246_v36 = vsub.f32 %v166_v22, %v3210_v28  ;;  %v3255_v37 = vld [vmem:[%s5041_s3 + $0x1a0] sm:$0xff]  ;;  %v3284_v48 = vld [vmem:[%s5041_s3 + $0x188] sm:$0xff]  ;;  %v3289_v59 = vld [vmem:[%s5041_s3 + $0x190] sm:$0xff] }
  0x1e   :  { %5205 = vst [vmem:[#allocation18_spill] sm:$0xff] %v3048_v58  ;;  %232 = vmatpush.msra.mxu0 %v3037_v55  ;;  %291 = vmatpush.msra.mxu2 %v3065_v61  ;;  %v3243_v35 = vsub.f32 %v165_v19, %v3207_v27  ;;  %v3279_v41 = vld [vmem:[%s5041_s3 + $0x180] sm:$0xff]  ;;  %v3296_v60 = vld [vmem:[%s5041_s3 + $0x198] sm:$0xff]  ;;  %v3308_v4 = vld [vmem:[%s5041_s3 + $0x168] sm:$0xff] }
  0x1f   :  { %5206 = vst [vmem:[#allocation19_spill] sm:$0xff] %v3065_v61  ;;  %261 = vmatpush.msra.mxu1 %v3048_v58  ;;  %320 = vmatpush.msra.mxu3 %v3070_v62  ;;  %v3303_v3 = vld [vmem:[%s5041_s3 + $0x160] sm:$0xff]  ;;  %v3313_v13 = vld [vmem:[%s5041_s3 + $0x170] sm:$0xff]  ;;  %v3320_v16 = vld [vmem:[%s5041_s3 + $0x178] sm:$0xff] }
  0x20   :  { %5207 = vst [vmem:[#allocation20_spill] sm:$0xff] %v3070_v62  ;;  %233 = vmatpush.msra.mxu0 %v3075_v63  ;;  %292 = vmatpush.msra.mxu2 %v3099_v5  ;;  %v3327_v19 = vld [vmem:[%s5041_s3 + $0x140] sm:$0xff]  ;;  %v3332_v22 = vld [vmem:[%s5041_s3 + $0x148] sm:$0xff]  ;;  %v3337_v57 = vld [vmem:[%s5041_s3 + $0x150] sm:$0xff] }
  0x21   :  { %5208 = vst [vmem:[#allocation21_spill] sm:$0xff] %v3075_v63  ;;  %262 = vmatpush.msra.mxu1 %v3086_v2  ;;  %321 = vmatpush.msra.mxu3 %v3108_v7  ;;  %v3344_v56 = vld [vmem:[%s5041_s3 + $0x158] sm:$0xff]  ;;  %vm3645_vm3 = vmneg %vm353_vm2 }
  0x22   :  { %5209 = vst [vmem:[#allocation22_spill] sm:$0xff] %v3077_v0  ;;  %293 = vmatmul.f32.vlgmr.msra.gmra.mxu2 %v3103_v6  ;;  %322 = vmatmul.f32.vlgmr.msra.gmra.mxu3 %v3112_v8  ;;  %v3356_v0 = vld [vmem:[%s5041_s3 + $0x128] sm:$0xff] }
  0x23   :  { %5210 = vst [vmem:[#allocation23_spill] sm:$0xff] %v3079_v1  ;;  %234 = vmatpush.msra.mxu0 %v3121_v9  ;;  %263 = vmatpush.msra.mxu1 %v3126_v10  ;;  %v3351_v1 = vld [vmem:[%s5041_s3 + $0x120] sm:$0xff] }
  0x24   :  { %5211 = vst [vmem:[#allocation24_spill] sm:$0xff] %v3086_v2  ;;  %235 = vmatmul.f32.vlgmr.msra.gmra.mxu0 %v3129_v11  ;;  %264 = vmatmul.f32.vlgmr.msra.gmra.mxu1 %v3132_v12 }
  0x25   :  { %5212 = vst [vmem:[#allocation25_spill] sm:$0xff] %v3099_v5  ;;  %410 = vmatpush.msrb.mxu0 %v3144_v14  ;;  %463 = vmatpush.msrb.mxu1 %v3149_v15 }
  0x26   :  { %5213 = vst [vmem:[#allocation26_spill] sm:$0xff] %v3108_v7  ;;  %516 = vmatpush.msrb.mxu2 %v3159_v17  ;;  %569 = vmatpush.msrb.mxu3 %v3164_v18 }
  0x27   :  { %5214 = vst [vmem:[#allocation27_spill] sm:$0xff] %v3121_v9  ;;  %411 = vmatpush.msrb.mxu0 %v3174_v20  ;;  %464 = vmatpush.msrb.mxu1 %v3179_v21 }
  0x28   :  { %5215 = vst [vmem:[#allocation28_spill] sm:$0xff] %v3126_v10  ;;  %517 = vmatpush.msrb.mxu2 %v3189_v23  ;;  %570 = vmatpush.msrb.mxu3 %v3194_v24 }
  0x29   :  { %5216 = vst [vmem:[#allocation29_spill] sm:$0xff] %v3144_v14  ;;  %412 = vmatpush.msrb.mxu0 %v3255_v37  ;;  %465 = vmatpush.msrb.mxu1 %v3260_v38 }
  0x2a   :  { %5217 = vst [vmem:[#allocation30_spill] sm:$0xff] %v3149_v15  ;;  %296 = vmatmul.f32.gmra.mxu2 %v3197_v25  ;;  %325 = vmatmul.f32.gmra.mxu3 %v3200_v26 }
  0x2b   :  { %5218 = vst [vmem:[#allocation31_spill] sm:$0xff] %v3159_v17  ;;  %518 = vmatpush.msrb.mxu2 %v3265_v39  ;;  %571 = vmatpush.msrb.mxu3 %v3272_v40 }
  0x2c   :  { %5219 = vst [vmem:[#allocation32_spill] sm:$0xff] %v3164_v18  ;;  %238 = vmatmul.f32.gmra.mxu0 %v3207_v27  ;;  %267 = vmatmul.f32.gmra.mxu1 %v3210_v28 }
  0x2d   :  { %5220 = vst [vmem:[#allocation33_spill] sm:$0xff] %v3174_v20  ;;  %413 = vmatpush.msrb.mxu0 %v3279_v41  ;;  %466 = vmatpush.msrb.mxu1 %v3284_v48 }
  0x2e   :  { %5221 = vst [vmem:[#allocation34_spill] sm:$0xff] %v3179_v21  ;;  %519 = vmatpush.msrb.mxu2 %v3289_v59  ;;  %572 = vmatpush.msrb.mxu3 %v3296_v60 }
  0x2f   :  { %5222 = vst [vmem:[#allocation35_spill] sm:$0xff] %v3189_v23  ;;  %414 = vmatpush.msrb.mxu0 %v3303_v3  ;;  %467 = vmatpush.msrb.mxu1 %v3308_v4 }
  0x30   :  { %5223 = vst [vmem:[#allocation36_spill] sm:$0xff] %v3194_v24  ;;  %520 = vmatpush.msrb.mxu2 %v3313_v13  ;;  %573 = vmatpush.msrb.mxu3 %v3320_v16 }
  0x31   :  { %5224 = vst [vmem:[#allocation37_spill] sm:$0xff] %v3255_v37  ;;  %415 = vmatpush.msrb.mxu0 %v3327_v19  ;;  %468 = vmatpush.msrb.mxu1 %v3332_v22 }
  0x32   :  { %299 = vmatmul.f32.gmra.mxu2 %v3220_v29  ;;  %328 = vmatmul.f32.gmra.mxu3 %v3224_v30  ;;  %5225 = vst [vmem:[#allocation38_spill] sm:$0xff] %v3260_v38 }
  0x33   :  { %5226 = vst [vmem:[#allocation39_spill] sm:$0xff] %v3265_v39  ;;  %521 = vmatpush.msrb.mxu2 %v3337_v57  ;;  %574 = vmatpush.msrb.mxu3 %v3344_v56 }
  0x34   :  { %241 = vmatmul.f32.gmra.mxu0 %v3227_v31  ;;  %270 = vmatmul.f32.gmra.mxu1 %v3230_v32  ;;  %5227 = vst [vmem:[#allocation40_spill] sm:$0xff] %v3272_v40 }
  0x35   :  { %5228 = vst [vmem:[#allocation41_spill] sm:$0xff] %v3279_v41  ;;  %416 = vmatpush.msrb.mxu0 %v3351_v1  ;;  %469 = vmatpush.msrb.mxu1 %v3356_v0 }
  0x36   :  { %5229 = vst [vmem:[#allocation42_spill] sm:$0xff] %v3284_v48 }
  0x37   :  { %5230 = vst [vmem:[#allocation43_spill] sm:$0xff] %v3289_v59 }
  0x38   :  { %5231 = vst [vmem:[#allocation44_spill] sm:$0xff] %v3296_v60 }
  0x39   :  { %5232 = vst [vmem:[#allocation45_spill] sm:$0xff] %v3303_v3 }
  0x3a   :  { %302 = vmatmul.f32.gmra.mxu2 %v3237_v33  ;;  %331 = vmatmul.f32.gmra.mxu3 %v3240_v34  ;;  %5233 = vst [vmem:[#allocation46_spill] sm:$0xff] %v3308_v4 }
  0x3b   :  { %5234 = vst [vmem:[#allocation47_spill] sm:$0xff] %v3313_v13 }
  0x3c   :  { %244 = vmatmul.f32.gmra.mxu0 %v3243_v35  ;;  %273 = vmatmul.f32.gmra.mxu1 %v3246_v36  ;;  %5235 = vst [vmem:[#allocation48_spill] sm:$0xff] %v3320_v16 }
  0x3d   :  { %5236 = vst [vmem:[#allocation49_spill] sm:$0xff] %v3327_v19  ;;  %v3522_v19 = vld [vmem:[%s5041_s3 + $0x48] sm:$0xff] }
  0x3e   :  { %5237 = vst [vmem:[#allocation50_spill] sm:$0xff] %v3332_v22  ;;  %v3361_v22 = vld [vmem:[%s5041_s3 + $0x130] sm:$0xff] }
  0x3f   :  { %5238 = vst [vmem:[#allocation51_spill] sm:$0xff] %v3337_v57  ;;  %522 = vmatpush.msrb.mxu2 %v3361_v22  ;;  %v3375_v57 = vld [vmem:[%s5041_s3 + $0x100] sm:$0xff] }
  0x40   :  { %5239 = vst [vmem:[#allocation52_spill] sm:$0xff] %v3344_v56  ;;  %v3368_v56 = vld [vmem:[%s5041_s3 + $0x138] sm:$0xff]  ;;  %417 = vmatpush.msrb.mxu0 %v3375_v57 }
  0x41   :  { %5240 = vst [vmem:[#allocation53_spill] sm:$0xff] %v3351_v1  ;;  %575 = vmatpush.msrb.mxu3 %v3368_v56  ;;  %v3380_v1 = vld [vmem:[%s5041_s3 + $0x108] sm:$0xff] }
  0x42   :  { %5241 = vst [vmem:[#allocation54_spill] sm:$0xff] %v3356_v0  ;;  %v3385_v0 = vld [vmem:[%s5041_s3 + $0x110] sm:$0xff]  ;;  %470 = vmatpush.msrb.mxu1 %v3380_v1 }
  0x43   :  { %5242 = vst [vmem:[#allocation55_spill] sm:$0xff] %v3361_v22  ;;  %523 = vmatpush.msrb.mxu2 %v3385_v0  ;;  %v3399_v22 = vld [vmem:[%s5041_s3 + $0xe0] sm:$0xff] }
  0x44   :  { %5243 = vst [vmem:[#allocation56_spill] sm:$0xff] %v3368_v56  ;;  %v3392_v56 = vld [vmem:[%s5041_s3 + $0x118] sm:$0xff]  ;;  %418 = vmatpush.msrb.mxu0 %v3399_v22 }
  0x45   :  { %5244 = vst [vmem:[#allocation57_spill] sm:$0xff] %v3375_v57  ;;  %576 = vmatpush.msrb.mxu3 %v3392_v56  ;;  %v3404_v57 = vld [vmem:[%s5041_s3 + $0xe8] sm:$0xff] }
  0x46   :  { %5245 = vst [vmem:[#allocation58_spill] sm:$0xff] %v3380_v1  ;;  %v3409_v1 = vld [vmem:[%s5041_s3 + $0xf0] sm:$0xff]  ;;  %471 = vmatpush.msrb.mxu1 %v3404_v57 }
  0x47   :  { %5246 = vst [vmem:[#allocation59_spill] sm:$0xff] %v3385_v0  ;;  %524 = vmatpush.msrb.mxu2 %v3409_v1  ;;  %v3423_v0 = vld [vmem:[%s5041_s3 + $0xc0] sm:$0xff] }
  0x48   :  { %5247 = vst [vmem:[#allocation60_spill] sm:$0xff] %v3392_v56  ;;  %v3416_v56 = vld [vmem:[%s5041_s3 + $0xf8] sm:$0xff]  ;;  %419 = vmatpush.msrb.mxu0 %v3423_v0 }
  0x49   :  { %5248 = vst [vmem:[#allocation61_spill] sm:$0xff] %v3399_v22  ;;  %577 = vmatpush.msrb.mxu3 %v3416_v56  ;;  %v3428_v22 = vld [vmem:[%s5041_s3 + $0xc8] sm:$0xff] }
  0x4a   :  { %5249 = vst [vmem:[#allocation62_spill] sm:$0xff] %v3404_v57  ;;  %v3433_v57 = vld [vmem:[%s5041_s3 + $0xd0] sm:$0xff]  ;;  %472 = vmatpush.msrb.mxu1 %v3428_v22 }
  0x4b   :  { %5250 = vst [vmem:[#allocation63_spill] sm:$0xff] %v3409_v1  ;;  %525 = vmatpush.msrb.mxu2 %v3433_v57  ;;  %v3447_v1 = vld [vmem:[%s5041_s3 + $0xa0] sm:$0xff] }
  0x4c   :  { %5251 = vst [vmem:[#allocation64_spill] sm:$0xff] %v3416_v56  ;;  %v3440_v56 = vld [vmem:[%s5041_s3 + $0xd8] sm:$0xff]  ;;  %420 = vmatpush.msrb.mxu0 %v3447_v1 }
  0x4d   :  { %5252 = vst [vmem:[#allocation65_spill] sm:$0xff] %v3423_v0  ;;  %578 = vmatpush.msrb.mxu3 %v3440_v56  ;;  %v3452_v0 = vld [vmem:[%s5041_s3 + $0xa8] sm:$0xff] }
  0x4e   :  { %5253 = vst [vmem:[#allocation66_spill] sm:$0xff] %v3428_v22  ;;  %v3457_v22 = vld [vmem:[%s5041_s3 + $0xb0] sm:$0xff]  ;;  %473 = vmatpush.msrb.mxu1 %v3452_v0 }
  0x4f   :  { %5254 = vst [vmem:[#allocation67_spill] sm:$0xff] %v3433_v57  ;;  %526 = vmatpush.msrb.mxu2 %v3457_v22  ;;  %v3471_v57 = vld [vmem:[%s5041_s3 + $0x80] sm:$0xff] }
  0x50   :  { %5255 = vst [vmem:[#allocation68_spill] sm:$0xff] %v3440_v56  ;;  %v3464_v56 = vld [vmem:[%s5041_s3 + $0xb8] sm:$0xff]  ;;  %421 = vmatpush.msrb.mxu0 %v3471_v57 }
  0x51   :  { %5256 = vst [vmem:[#allocation69_spill] sm:$0xff] %v3447_v1  ;;  %579 = vmatpush.msrb.mxu3 %v3464_v56  ;;  %v3476_v1 = vld [vmem:[%s5041_s3 + $0x88] sm:$0xff] }
  0x52   :  { %5257 = vst [vmem:[#allocation70_spill] sm:$0xff] %v3452_v0  ;;  %v3481_v0 = vld [vmem:[%s5041_s3 + $0x90] sm:$0xff]  ;;  %474 = vmatpush.msrb.mxu1 %v3476_v1 }
  0x53   :  { %5258 = vst [vmem:[#allocation71_spill] sm:$0xff] %v3457_v22  ;;  %527 = vmatpush.msrb.mxu2 %v3481_v0  ;;  %v3495_v22 = vld [vmem:[%s5041_s3 + $0x60] sm:$0xff] }
  0x54   :  { %5259 = vst [vmem:[#allocation72_spill] sm:$0xff] %v3464_v56  ;;  %v3488_v56 = vld [vmem:[%s5041_s3 + $0x98] sm:$0xff]  ;;  %422 = vmatpush.msrb.mxu0 %v3495_v22 }
  0x55   :  { %5260 = vst [vmem:[#allocation73_spill] sm:$0xff] %v3471_v57  ;;  %580 = vmatpush.msrb.mxu3 %v3488_v56  ;;  %v3500_v57 = vld [vmem:[%s5041_s3 + $0x68] sm:$0xff] }
  0x56   :  { %5261 = vst [vmem:[#allocation74_spill] sm:$0xff] %v3476_v1  ;;  %v3505_v1 = vld [vmem:[%s5041_s3 + $0x70] sm:$0xff]  ;;  %475 = vmatpush.msrb.mxu1 %v3500_v57 }
  0x57   :  { %5262 = vst [vmem:[#allocation75_spill] sm:$0xff] %v3481_v0  ;;  %v3517_v0 = vld [vmem:[%s5041_s3 + $0x40] sm:$0xff]  ;;  %528 = vmatpush.msrb.mxu2 %v3505_v1 }
  0x58   :  { %5263 = vst [vmem:[#allocation76_spill] sm:$0xff] %v3488_v56  ;;  %v3512_v56 = vld [vmem:[%s5041_s3 + $0x78] sm:$0xff]  ;;  %423 = vmatpush.msrb.mxu0 %v3517_v0  ;;  %476 = vmatpush.msrb.mxu1 %v3522_v19 }
  0x59   :  { %5264 = vst [vmem:[#allocation77_spill] sm:$0xff] %v3495_v22  ;;  %581 = vmatpush.msrb.mxu3 %v3512_v56  ;;  %v3534_v22 = vld [vmem:[%s5041_s3 + $0x58] sm:$0xff] }
  0x5a   :  { %5265 = vst [vmem:[#allocation78_spill] sm:$0xff] %v3500_v57  ;;  %v3529_v57 = vld [vmem:[%s5041_s3 + $0x50] sm:$0xff] }
  0x5b   :  { %5266 = vst [vmem:[#allocation79_spill] sm:$0xff] %v3505_v1  ;;  %529 = vmatpush.msrb.mxu2 %v3529_v57  ;;  %582 = vmatpush.msrb.mxu3 %v3534_v22  ;;  %v3548_v1 = vld [vmem:[%s5041_s3 + $0x28] sm:$0xff] }
  0x5c   :  { %5267 = vst [vmem:[#allocation80_spill] sm:$0xff] %v3512_v56  ;;  %v3543_v56 = vld [vmem:[%s5041_s3 + $0x20] sm:$0xff]  ;;  %477 = vmatpush.msrb.mxu1 %v3548_v1 }
  0x5d   :  { %5268 = vst [vmem:[#allocation81_spill] sm:$0xff] %v3517_v0  ;;  %v3553_v0 = vld [vmem:[%s5041_s3 + $0x30] sm:$0xff]  ;;  %424 = vmatpush.msrb.mxu0 %v3543_v56 }
  0x5e   :  { %5269 = vst [vmem:[#allocation82_spill] sm:$0xff] %v3522_v19  ;;  %530 = vmatpush.msrb.mxu2 %v3553_v0 }
  0x5f   :  { %5270 = vst [vmem:[#allocation83_spill] sm:$0xff] %v3529_v57  ;;  %v3567_v57 = vld [vmem:[%s5041_s3] sm:$0xff] }
  0x60   :  { %5271 = vst [vmem:[#allocation84_spill] sm:$0xff] %v3534_v22  ;;  %v3560_v22 = vld [vmem:[%s5041_s3 + $0x38] sm:$0xff]  ;;  %425 = vmatpush.msrb.mxu0 %v3567_v57 }
  0x61   :  { %5272 = vst [vmem:[#allocation85_spill] sm:$0xff] %v3543_v56  ;;  %583 = vmatpush.msrb.mxu3 %v3560_v22  ;;  %v3572_v56 = vld [vmem:[%s5041_s3 + $0x8] sm:$0xff] }
  0x62   :  { %5273 = vst [vmem:[#allocation86_spill] sm:$0xff] %v3548_v1  ;;  %v3577_v1 = vld [vmem:[%s5041_s3 + $0x10] sm:$0xff]  ;;  %478 = vmatpush.msrb.mxu1 %v3572_v56 }
  0x63   :  { %5274 = vst [vmem:[#allocation87_spill] sm:$0xff] %v3553_v0  ;;  %531 = vmatpush.msrb.mxu2 %v3577_v1 }
  0x64   :  { %5275 = vst [vmem:[#allocation88_spill] sm:$0xff] %v3560_v22  ;;  %v3584_v22 = vld [vmem:[%s5041_s3 + $0x18] sm:$0xff] }
  0x65   :  { %5276 = vst [vmem:[#allocation89_spill] sm:$0xff] %v3567_v57  ;;  %584 = vmatpush.msrb.mxu3 %v3584_v22 }
  0x66   :  { %5277 = vst [vmem:[#allocation90_spill] sm:$0xff] %v3572_v56 }
  0x67   :  { %5278 = vst [vmem:[#allocation91_spill] sm:$0xff] %v3577_v1 }
  0x68   :  { %5279 = vst [vmem:[#allocation92_spill] sm:$0xff] %v3584_v22 }
  0xa1   :  { %v236_v0 = vpop.f32.mrf.mxu0  ;;  %v265_v19 = vpop.f32.mrf.mxu1 }
  0xa2   :  { %v266_v16 = vadd.f32 %v265_v19, %v236_v0 }
  0xa5   :  { %v294_v13 = vpop.f32.mrf.mxu2  ;;  %v323_v4 = vpop.f32.mrf.mxu3 }
  0xa6   :  { %v295_v3 = vadd.f32 %v294_v13, %v266_v16 }
  0xa8   :  { %v324_v60 = vadd.f32 %v323_v4, %v295_v3 }
  0xa9   :  { %v239_v59 = vpop.f32.mrf.mxu0  ;;  %v268_v57 = vpop.f32.mrf.mxu1 }
  0xaa   :  { %372 = vrot.lane.b32.xlu2 %v324_v60, %s2800_s19  ;;  %v269_v56 = vadd.f32 %v268_v57, %v239_v59 }
  0xad   :  { %v297_v48 = vpop.f32.mrf.mxu2  ;;  %v326_v41 = vpop.f32.mrf.mxu3 }
  0xae   :  { %v298_v40 = vadd.f32 %v297_v48, %v269_v56 }
  0xb0   :  { %v327_v39 = vadd.f32 %v326_v41, %v298_v40 }
  0xb1   :  { %v242_v1 = vpop.f32.mrf.mxu0  ;;  %v271_v38 = vpop.f32.mrf.mxu1 }
  0xb2   :  { %374 = vrot.lane.b32.xlu2 %v327_v39, %s2800_s19  ;;  %v272_v22 = vadd.f32 %v271_v38, %v242_v1 }
  0xb5   :  { %v300_v0 = vpop.f32.mrf.mxu2  ;;  %v329_v19 = vpop.f32.mrf.mxu3 }
  0xb6   :  { %v301_v37 = vadd.f32 %v300_v0, %v272_v22 }
  0xb8   :  { %v330_v13 = vadd.f32 %v329_v19, %v301_v37 }
  0xb9   :  { %v245_v3 = vpop.f32.mrf.mxu0  ;;  %v274_v4 = vpop.f32.mrf.mxu1 }
  0xba   :  { %394 = vrot.lane.b32.xlu2 %v324_v60, %s2801_s20  ;;  %339 = vrot.lane.b32.xlu0 %v330_v13, %s2801_s20  ;;  %v335_v57 = vadd.f32 %v330_v13, %v324_v60  ;;  %v275_v56 = vadd.f32 %v274_v4, %v245_v3 }
  0xbc   :  { %v348_v40 = vsel %vm347_vm0, %v335_v57, 0.0 }
  0xbd   :  { %v303_v41 = vpop.f32.mrf.mxu2  ;;  %v351_v1 = vsel %vm350_vm1, %v348_v40, 0.0  ;;  %v332_v38 = vpop.f32.mrf.mxu3 }
  0xbe   :  { %v304_v48 = vadd.f32 %v303_v41, %v275_v56  ;;  %2461 = vmatmul.msk.f32.vlgmr.msrb.gmra.mxu0 %vm353_vm2, %v351_v1  ;;  %2477 = vmatmul.msk.f32.vlgmr.msrb.gmra.mxu1 %vm353_vm2, %v351_v1 }
  0xbf   :  { %2493 = vmatmul.msk.f32.vlgmr.msrb.gmra.mxu2 %vm353_vm2, %v351_v1  ;;  %2509 = vmatmul.msk.f32.vlgmr.msrb.gmra.mxu3 %vm353_vm2, %v351_v1 }
  0xc0   :  { %v333_v37 = vadd.f32 %v332_v38, %v304_v48 }
  0xc2   :  { %v336_v59 = vadd.f32 %v333_v37, %v327_v39  ;;  %341 = vrot.lane.b32.xlu0 %v333_v37, %s2801_s20 }
  0xc4   :  { %v349_v16 = vsel %vm347_vm0, %v336_v59, 0.0 }
  0xc5   :  { %v352_v22 = vsel %vm350_vm1, %v349_v16, 0.0 }
  0xc6   :  { %2462 = vmatmul.msk.f32.gmra.mxu0 %vm353_vm2, %v352_v22  ;;  %2478 = vmatmul.msk.f32.gmra.mxu1 %vm353_vm2, %v352_v22 }
  0xc7   :  { %2494 = vmatmul.msk.f32.gmra.mxu2 %vm353_vm2, %v352_v22  ;;  %2510 = vmatmul.msk.f32.gmra.mxu3 %vm353_vm2, %v352_v22 }
  0xca   :  { %384 = vrot.lane.b32.xlu0 %v335_v57, %s2800_s19 }
  0xd2   :  { %396 = vrot.lane.b32.xlu0 %v327_v39, %s2801_s20 }
 0x104   :  { %v373_v41 = vpop.permute.xlu2 %372 }
 0x105   :  { %v378_v1 = vsel %vm350_vm1, 0.0, %v373_v41 }
 0x10c   :  { %v375_v38 = vpop.permute.xlu2 %374 }
 0x10d   :  { %v379_v48 = vsel %vm350_vm1, 0.0, %v375_v38 }
 0x12c   :  { %v340_v0 = vpop.permute.xlu0 %339 }
 0x12d   :  { %v345_v19 = vadd.f32 %v340_v0, %v324_v60  ;;  %v5280_v0 = vmov 0 }
 0x12e   :  { %v5281_v0 = vsel %vm3645_vm3, 4294967295, %v5280_v0 }
 0x12f   :  { %358 = vrot.lane.b32.xlu1 %v345_v19, %s2802_s21  ;;  %5282 = vst [vmem:[#allocation93_spill] sm:$0xff] %v5281_v0 }
 0x134   :  { %v342_v13 = vpop.permute.xlu0 %341 }
 0x135   :  { %v346_v3 = vadd.f32 %v342_v13, %v327_v39 }
 0x137   :  { %404 = vrot.lane.b32.xlu2 %v346_v3, %s2801_s20  ;;  %360 = vrot.lane.b32.xlu1 %v346_v3, %s2802_s21 }
 0x13c   :  { %v385_v37 = vpop.permute.xlu0 %384 }
 0x13f   :  { %386 = vrot.lane.b32.xlu1 %v336_v59, %s2800_s19  ;;  %v390_v59 = vsel %vm350_vm1, 0.0, %v385_v37 }
 0x144   :  { %v397_v13 = vpop.permute.xlu0 %396 }
 0x147   :  { %402 = vrot.lane.b32.xlu1 %v345_v19, %s2801_s20  ;;  %v395_v19 = vpop.permute.xlu2 %394 }
 0x1a1   :  { %v359_v4 = vpop.permute.xlu1 %358 }
 0x1a2   :  { %v364_v57 = vsel %vm347_vm0, 0.0, %v359_v4  ;;  %v405_v4 = vpop.permute.xlu2 %404 }
 0x1a3   :  { %v366_v56 = vsel %vm350_vm1, %v364_v57, 0.0  ;;  %v3681_v57 = vpop.f32.mrf.mxu0 }
 0x1a4   :  { %2463 = vmatmul.msk.f32.gmra.mxu0 %vm353_vm2, %v366_v56  ;;  %2479 = vmatmul.msk.f32.gmra.mxu1 %vm353_vm2, %v366_v56 }
 0x1a5   :  { %2495 = vmatmul.msk.f32.gmra.mxu2 %vm353_vm2, %v366_v56  ;;  %2511 = vmatmul.msk.f32.gmra.mxu3 %vm353_vm2, %v366_v56  ;;  %v3683_v56 = vpop.f32.mrf.mxu1 }
 0x1a9   :  { %v361_v39 = vpop.permute.xlu1 %360 }
 0x1aa   :  { %v365_v60 = vsel %vm347_vm0, 0.0, %v361_v39  ;;  %v3685_v39 = vpop.f32.mrf.mxu2 }
 0x1ab   :  { %v367_v40 = vsel %vm350_vm1, %v365_v60, 0.0  ;;  %v3687_v60 = vpop.f32.mrf.mxu3 }
 0x1ac   :  { %2464 = vmatmul.msk.f32.gmra.mxu0 %vm353_vm2, %v367_v40  ;;  %2480 = vmatmul.msk.f32.gmra.mxu1 %vm353_vm2, %v367_v40 }
 0x1ad   :  { %2496 = vmatmul.msk.f32.gmra.mxu2 %vm353_vm2, %v367_v40  ;;  %2512 = vmatmul.msk.f32.gmra.mxu3 %vm353_vm2, %v367_v40  ;;  %v3689_v40 = vpop.f32.mrf.mxu0  ;;  %v3691_v41 = vpop.f32.mrf.mxu1 }
 0x1b1   :  { %v387_v16 = vpop.permute.xlu1 %386 }
 0x1b2   :  { %v391_v22 = vsel %vm350_vm1, 0.0, %v387_v16 }
 0x1b3   :  { %v3695_v38 = vpop.f32.mrf.mxu3 }
 0x1b4   :  { %2465 = vmatmul.msk.f32.gmra.mxu0 %vm353_vm2, %v378_v1  ;;  %2481 = vmatmul.msk.f32.gmra.mxu1 %vm353_vm2, %v378_v1 }
 0x1b5   :  { %2497 = vmatmul.msk.f32.gmra.mxu2 %vm353_vm2, %v378_v1  ;;  %2513 = vmatmul.msk.f32.gmra.mxu3 %vm353_vm2, %v378_v1  ;;  %v3693_v1 = vpop.f32.mrf.mxu2 }
 0x1b9   :  { %v403_v3 = vpop.permute.xlu1 %402 }
 0x1bc   :  { %2466 = vmatmul.msk.f32.gmra.mxu0 %vm353_vm2, %v379_v48  ;;  %2482 = vmatmul.msk.f32.gmra.mxu1 %vm353_vm2, %v379_v48 }
 0x1bd   :  { %2498 = vmatmul.msk.f32.gmra.mxu2 %vm353_vm2, %v379_v48  ;;  %2514 = vmatmul.msk.f32.gmra.mxu3 %vm353_vm2, %v379_v48 }
 0x1c4   :  { %2467 = vmatmul.msk.f32.gmra.mxu0 %vm353_vm2, %v390_v59  ;;  %2483 = vmatmul.msk.f32.gmra.mxu1 %vm353_vm2, %v390_v59 }
 0x1c5   :  { %2499 = vmatmul.msk.f32.gmra.mxu2 %vm353_vm2, %v390_v59  ;;  %2515 = vmatmul.msk.f32.gmra.mxu3 %vm353_vm2, %v390_v59 }
 0x1cc   :  { %2468 = vmatmul.msk.f32.gmra.mxu0 %vm353_vm2, %v391_v22  ;;  %2484 = vmatmul.msk.f32.gmra.mxu1 %vm353_vm2, %v391_v22 }
 0x1cd   :  { %2500 = vmatmul.msk.f32.gmra.mxu2 %vm353_vm2, %v391_v22  ;;  %2516 = vmatmul.msk.f32.gmra.mxu3 %vm353_vm2, %v391_v22 }
 0x1d4   :  { %2470 = vmatmul.msk.f32.gmra.mxu0 %vm3645_vm3, %v395_v19  ;;  %2486 = vmatmul.msk.f32.gmra.mxu1 %vm3645_vm3, %v395_v19 }
 0x1d5   :  { %2502 = vmatmul.msk.f32.gmra.mxu2 %vm3645_vm3, %v395_v19  ;;  %2518 = vmatmul.msk.f32.gmra.mxu3 %vm3645_vm3, %v395_v19 }
 0x1dc   :  { %2472 = vmatmul.msk.f32.gmra.mxu0 %vm3645_vm3, %v397_v13  ;;  %2488 = vmatmul.msk.f32.gmra.mxu1 %vm3645_vm3, %v397_v13 }
 0x1dd   :  { %2504 = vmatmul.msk.f32.gmra.mxu2 %vm3645_vm3, %v397_v13  ;;  %2520 = vmatmul.msk.f32.gmra.mxu3 %vm3645_vm3, %v397_v13 }
 0x1e4   :  { %2474 = vmatmul.msk.f32.gmra.mxu0 %vm3645_vm3, %v403_v3  ;;  %2490 = vmatmul.msk.f32.gmra.mxu1 %vm3645_vm3, %v403_v3 }
 0x1e5   :  { %2506 = vmatmul.msk.f32.gmra.mxu2 %vm3645_vm3, %v403_v3  ;;  %2522 = vmatmul.msk.f32.gmra.mxu3 %vm3645_vm3, %v403_v3 }
 0x1ec   :  { %2476 = vmatmul.msk.f32.gmra.mxu0 %vm3645_vm3, %v405_v4  ;;  %2492 = vmatmul.msk.f32.gmra.mxu1 %vm3645_vm3, %v405_v4 }
 0x1ed   :  { %2508 = vmatmul.msk.f32.gmra.mxu2 %vm3645_vm3, %v405_v4  ;;  %2524 = vmatmul.msk.f32.gmra.mxu3 %vm3645_vm3, %v405_v4 }
 0x221   :  { %v3697_v48 = vpop.f32.mrf.mxu0  ;;  %v3699_v37 = vpop.f32.mrf.mxu1 }
 0x228   :  { %v3701_v59 = vpop.f32.mrf.mxu2  ;;  %v3703_v16 = vpop.f32.mrf.mxu3 }
 0x229   :  { %v436_v22 = vpop.f32.mrf.mxu0  ;;  %v489_v19 = vpop.f32.mrf.mxu1 }
 0x230   :  { %v3705_v13 = vpop.f32.mrf.mxu2  ;;  %v3707_v3 = vpop.f32.mrf.mxu3 }
 0x231   :  { %v439_v4 = vpop.f32.mrf.mxu0  ;;  %v492_v0 = vpop.f32.mrf.mxu1 }
 0x238   :  { %v3709_v24 = vpop.f32.mrf.mxu2  ;;  %v3711_v23 = vpop.f32.mrf.mxu3 }
 0x239   :  { %v442_v21 = vpop.f32.mrf.mxu0  ;;  %v495_v20 = vpop.f32.mrf.mxu1 }
 0x240   :  { %v548_v18 = vpop.f32.mrf.mxu2  ;;  %v601_v17 = vpop.f32.mrf.mxu3 }
 0x241   :  { %v445_v15 = vpop.f32.mrf.mxu0  ;;  %v498_v14 = vpop.f32.mrf.mxu1 }
 0x248   :  { %v551_v7 = vpop.f32.mrf.mxu2  ;;  %v604_v5 = vpop.f32.mrf.mxu3 }
 0x249   :  { %v448_v10 = vpop.f32.mrf.mxu0  ;;  %v501_v9 = vpop.f32.mrf.mxu1 }
 0x250   :  { %v554_v62 = vpop.f32.mrf.mxu2  ;;  %v607_v61 = vpop.f32.mrf.mxu3 }
 0x251   :  { %v451_v2 = vpop.f32.mrf.mxu0  ;;  %v504_v63 = vpop.f32.mrf.mxu1 }
 0x258   :  { %v557_v54 = vpop.f32.mrf.mxu2  ;;  %v610_v53 = vpop.f32.mrf.mxu3 }
 0x259   :  { %v454_v58 = vpop.f32.mrf.mxu0  ;;  %v507_v55 = vpop.f32.mrf.mxu1 }
 0x260   :  { %v560_v50 = vpop.f32.mrf.mxu2  ;;  %v613_v49 = vpop.f32.mrf.mxu3 }
 0x261   :  { %v457_v52 = vpop.f32.mrf.mxu0  ;;  %v510_v51 = vpop.f32.mrf.mxu1 }
 0x268   :  { %v563_v45 = vpop.f32.mrf.mxu2  ;;  %v616_v44 = vpop.f32.mrf.mxu3 }
 0x269   :  { %v460_v47 = vpop.f32.mrf.mxu0  ;;  %v513_v46 = vpop.f32.mrf.mxu1 }
 0x26a   :  { %734 = vmatpush.msra.mxu0 %v460_v47  ;;  %757 = vmatpush.msra.mxu1 %v513_v46  ;;  %v3767_v46 = vld [vmem:[%s5038_s2 + $0xf0] sm:$0xff]  ;;  %v170_v47 = vld [vmem:[%s5042_s5 + $0x8] sm:$0xff] }
 0x26b   :  { %5284 = vst [vmem:[#allocation95_spill] sm:$0xff] %v3767_v46 }
 0x26c   :  { %735 = vmatpush.msra.mxu0 %v457_v52  ;;  %758 = vmatpush.msra.mxu1 %v510_v51  ;;  %v3790_v51 = vld [vmem:[%s5038_s2 + $0x170] sm:$0xff] }
 0x26d   :  { %5287 = vst [vmem:[#allocation98_spill] sm:$0xff] %v3790_v51  ;;  %v3796_v52 = vld [vmem:[%s5038_s2 + $0x1f0] sm:$0xff] }
 0x26e   :  { %736 = vmatpush.msra.mxu0 %v454_v58  ;;  %759 = vmatpush.msra.mxu1 %v507_v55  ;;  %5288 = vst [vmem:[#allocation99_spill] sm:$0xff] %v3796_v52  ;;  %v3814_v55 = vld [vmem:[%s5038_s2 + $0x168] sm:$0xff] }
 0x26f   :  { %5291 = vst [vmem:[#allocation102_spill] sm:$0xff] %v3814_v55  ;;  %v3820_v58 = vld [vmem:[%s5038_s2 + $0x1e8] sm:$0xff] }
 0x270   :  { %v566_v43 = vpop.f32.mrf.mxu2  ;;  %v619_v42 = vpop.f32.mrf.mxu3  ;;  %737 = vmatpush.msra.mxu0 %v451_v2  ;;  %760 = vmatpush.msra.mxu1 %v504_v63  ;;  %5292 = vst [vmem:[#allocation103_spill] sm:$0xff] %v3820_v58  ;;  %v3838_v63 = vld [vmem:[%s5038_s2 + $0x160] sm:$0xff] }
 0x271   :  { %780 = vmatpush.msra.mxu2 %v566_v43  ;;  %803 = vmatpush.msra.mxu3 %v619_v42  ;;  %v169_v42 = vld [vmem:[%s5042_s5] sm:$0xff]  ;;  %v3747_v43 = vld [vmem:[%s5038_s2 + $0x78] sm:$0xff]  ;;  %5295 = vst [vmem:[#allocation106_spill] sm:$0xff] %v3838_v63 }
 0x272   :  { %738 = vmatpush.msra.mxu0 %v448_v10  ;;  %761 = vmatpush.msra.mxu1 %v501_v9  ;;  %v3844_v2 = vld [vmem:[%s5038_s2 + $0x1e0] sm:$0xff]  ;;  %v3874_v9 = vld [vmem:[%s5038_s2 + $0x50] sm:$0xff] }
 0x273   :  { %781 = vmatpush.msra.mxu2 %v563_v45  ;;  %804 = vmatpush.msra.mxu3 %v616_v44  ;;  %v3753_v44 = vld [vmem:[%s5038_s2 + $0xf8] sm:$0xff]  ;;  %v3761_v45 = vld [vmem:[%s5038_s2 + $0x70] sm:$0xff]  ;;  %5296 = vst [vmem:[#allocation107_spill] sm:$0xff] %v3844_v2 }
 0x274   :  { %739 = vmatpush.msra.mxu0 %v445_v15  ;;  %762 = vmatpush.msra.mxu1 %v498_v14  ;;  %5283 = vst [vmem:[#allocation94_spill] sm:$0xff] %v3761_v45  ;;  %v3880_v10 = vld [vmem:[%s5038_s2 + $0xd0] sm:$0xff]  ;;  %v3898_v14 = vld [vmem:[%s5038_s2 + $0x48] sm:$0xff] }
 0x275   :  { %782 = vmatpush.msra.mxu2 %v560_v50  ;;  %805 = vmatpush.msra.mxu3 %v613_v49  ;;  %v3778_v49 = vld [vmem:[%s5038_s2 + $0x178] sm:$0xff]  ;;  %5301 = vst [vmem:[#allocation112_spill] sm:$0xff] %v3874_v9  ;;  %v3904_v15 = vld [vmem:[%s5038_s2 + $0xc8] sm:$0xff] }
 0x276   :  { %740 = vmatpush.msra.mxu0 %v442_v21  ;;  %763 = vmatpush.msra.mxu1 %v495_v20  ;;  %5285 = vst [vmem:[#allocation96_spill] sm:$0xff] %v3778_v49  ;;  %v3784_v50 = vld [vmem:[%s5038_s2 + $0x1f8] sm:$0xff]  ;;  %v3922_v20 = vld [vmem:[%s5038_s2 + $0x40] sm:$0xff] }
 0x277   :  { %783 = vmatpush.msra.mxu2 %v557_v54  ;;  %806 = vmatpush.msra.mxu3 %v610_v53  ;;  %5286 = vst [vmem:[#allocation97_spill] sm:$0xff] %v3784_v50  ;;  %v3802_v53 = vld [vmem:[%s5038_s2 + $0x68] sm:$0xff]  ;;  %v3928_v21 = vld [vmem:[%s5038_s2 + $0xc0] sm:$0xff] }
 0x278   :  { %741 = vmatpush.msra.mxu0 %v439_v4  ;;  %764 = vmatpush.msra.mxu1 %v492_v0  ;;  %5289 = vst [vmem:[#allocation100_spill] sm:$0xff] %v3802_v53  ;;  %v3808_v54 = vld [vmem:[%s5038_s2 + $0xe8] sm:$0xff]  ;;  %v5325_v0 = vld [vmem:[#allocation7_spill] sm:$0xff] }
 0x279   :  { %784 = vmatpush.msra.mxu2 %v554_v62  ;;  %807 = vmatpush.msra.mxu3 %v607_v61  ;;  %5290 = vst [vmem:[#allocation101_spill] sm:$0xff] %v3808_v54  ;;  %v3826_v61 = vld [vmem:[%s5038_s2 + $0x60] sm:$0xff]  ;;  %v5342_v4 = vld [vmem:[#allocation28_spill] sm:$0xff] }
 0x27a   :  { %742 = vmatpush.msra.mxu0 %v436_v22  ;;  %765 = vmatpush.msra.mxu1 %v489_v19  ;;  %5293 = vst [vmem:[#allocation104_spill] sm:$0xff] %v3826_v61  ;;  %v3832_v62 = vld [vmem:[%s5038_s2 + $0xe0] sm:$0xff]  ;;  %v5338_v22 = vld [vmem:[#allocation24_spill] sm:$0xff] }
 0x27b   :  { %785 = vmatpush.msra.mxu2 %v551_v7  ;;  %808 = vmatpush.msra.mxu3 %v604_v5  ;;  %5294 = vst [vmem:[#allocation105_spill] sm:$0xff] %v3832_v62  ;;  %v3850_v5 = vld [vmem:[%s5038_s2 + $0x58] sm:$0xff]  ;;  %v5339_v19 = vld [vmem:[#allocation19_spill] sm:$0xff] }
 0x27c   :  { %743 = vmatpush.msra.mxu0 %v3697_v48  ;;  %766 = vmatpush.msra.mxu1 %v3699_v37  ;;  %5297 = vst [vmem:[#allocation108_spill] sm:$0xff] %v3850_v5  ;;  %v3862_v7 = vld [vmem:[%s5038_s2 + $0x158] sm:$0xff]  ;;  %v5335_v37 = vld [vmem:[#allocation13_spill] sm:$0xff] }
 0x27d   :  { %786 = vmatpush.msra.mxu2 %v548_v18  ;;  %809 = vmatpush.msra.mxu3 %v601_v17  ;;  %5299 = vst [vmem:[#allocation110_spill] sm:$0xff] %v3862_v7  ;;  %v3910_v17 = vld [vmem:[%s5038_s2 + $0x148] sm:$0xff]  ;;  %v5334_v48 = vld [vmem:[#allocation18_spill] sm:$0xff] }
 0x27e   :  { %744 = vmatpush.msra.mxu0 %v3689_v40  ;;  %767 = vmatpush.msra.mxu1 %v3691_v41  ;;  %5302 = vst [vmem:[#allocation113_spill] sm:$0xff] %v3880_v10  ;;  %v3916_v18 = vld [vmem:[%s5038_s2 + $0x1c8] sm:$0xff]  ;;  %v5331_v41 = vld [vmem:[#allocation9_spill] sm:$0xff] }
 0x27f   :  { %787 = vmatpush.msra.mxu2 %v3709_v24  ;;  %810 = vmatpush.msra.mxu3 %v3711_v23  ;;  %5305 = vst [vmem:[#allocation116_spill] sm:$0xff] %v3898_v14  ;;  %v3934_v23 = vld [vmem:[%s5038_s2 + $0x140] sm:$0xff]  ;;  %v5330_v40 = vld [vmem:[#allocation12_spill] sm:$0xff] }
 0x280   :  { %745 = vmatpush.msra.mxu0 %v3681_v57  ;;  %768 = vmatpush.msra.mxu1 %v3683_v56  ;;  %5306 = vst [vmem:[#allocation117_spill] sm:$0xff] %v3904_v15  ;;  %v3940_v24 = vld [vmem:[%s5038_s2 + $0x1c0] sm:$0xff]  ;;  %v5326_v57 = vld [vmem:[#allocation8_spill] sm:$0xff]  ;;  %v5327_v56 = vld [vmem:[#allocation5_spill] sm:$0xff] }
 0x281   :  { %788 = vmatpush.msra.mxu2 %v3705_v13  ;;  %811 = vmatpush.msra.mxu3 %v3707_v3  ;;  %5307 = vst [vmem:[#allocation118_spill] sm:$0xff] %v3910_v17  ;;  %v5340_v13 = vld [vmem:[#allocation20_spill] sm:$0xff]  ;;  %v5341_v3 = vld [vmem:[#allocation27_spill] sm:$0xff] }
 0x282   :  { %746 = vmatpush.msra.mxu0 %v3243_v35  ;;  %769 = vmatpush.msra.mxu1 %v3246_v36  ;;  %5308 = vst [vmem:[#allocation119_spill] sm:$0xff] %v3916_v18  ;;  %v3996_v35 = vld [vmem:[%s5038_s2 + $0x128] sm:$0xff] }
 0x283   :  { %789 = vmatpush.msra.mxu2 %v3701_v59  ;;  %812 = vmatpush.msra.mxu3 %v3703_v16  ;;  %5309 = vst [vmem:[#allocation120_spill] sm:$0xff] %v3922_v20  ;;  %v4002_v36 = vld [vmem:[%s5038_s2 + $0x1a8] sm:$0xff]  ;;  %v5336_v59 = vld [vmem:[#allocation14_spill] sm:$0xff]  ;;  %v5337_v16 = vld [vmem:[#allocation21_spill] sm:$0xff] }
 0x284   :  { %747 = vmatpush.msra.mxu0 %v3227_v31  ;;  %770 = vmatpush.msra.mxu1 %v3230_v32  ;;  %5310 = vst [vmem:[#allocation121_spill] sm:$0xff] %v3928_v21  ;;  %v3982_v31 = vld [vmem:[%s5038_s2 + $0x130] sm:$0xff] }
 0x285   :  { %790 = vmatpush.msra.mxu2 %v3693_v1  ;;  %813 = vmatpush.msra.mxu3 %v3695_v38  ;;  %5311 = vst [vmem:[#allocation122_spill] sm:$0xff] %v3934_v23  ;;  %v3988_v32 = vld [vmem:[%s5038_s2 + $0x1b0] sm:$0xff]  ;;  %v5332_v1 = vld [vmem:[#allocation10_spill] sm:$0xff]  ;;  %v5333_v38 = vld [vmem:[#allocation15_spill] sm:$0xff] }
 0x286   :  { %748 = vmatpush.msra.mxu0 %v3207_v27  ;;  %771 = vmatpush.msra.mxu1 %v3210_v28  ;;  %5312 = vst [vmem:[#allocation123_spill] sm:$0xff] %v3940_v24  ;;  %v3958_v27 = vld [vmem:[%s5038_s2 + $0x138] sm:$0xff] }
 0x287   :  { %791 = vmatpush.msra.mxu2 %v3685_v39  ;;  %814 = vmatpush.msra.mxu3 %v3687_v60  ;;  %5315 = vst [vmem:[#allocation126_spill] sm:$0xff] %v3958_v27  ;;  %v3964_v28 = vld [vmem:[%s5038_s2 + $0x1b8] sm:$0xff]  ;;  %v5329_v60 = vld [vmem:[#allocation11_spill] sm:$0xff] }
 0x288   :  { %749 = vmatpush.msra.mxu0 %v3129_v11  ;;  %772 = vmatpush.msra.mxu1 %v3132_v12  ;;  %v3886_v11 = vld [vmem:[%s5038_s2 + $0x150] sm:$0xff]  ;;  %5316 = vst [vmem:[#allocation127_spill] sm:$0xff] %v3964_v28  ;;  %v5328_v39 = vld [vmem:[#allocation6_spill] sm:$0xff] }
 0x289   :  { %792 = vmatpush.msra.mxu2 %v3237_v33  ;;  %815 = vmatpush.msra.mxu3 %v3240_v34  ;;  %5303 = vst [vmem:[#allocation114_spill] sm:$0xff] %v3886_v11  ;;  %v3892_v12 = vld [vmem:[%s5038_s2 + $0x1d0] sm:$0xff]  ;;  %v5321_v33 = vld [vmem:[#allocation3_spill] sm:$0xff]  ;;  %v5322_v34 = vld [vmem:[#allocation4_spill] sm:$0xff] }
 0x28a   :  { %750 = vmatmul.f32.vlgmr.msra.gmra.mxu0 %v169_v42  ;;  %773 = vmatmul.f32.vlgmr.msra.gmra.mxu1 %v169_v42  ;;  %5304 = vst [vmem:[#allocation115_spill] sm:$0xff] %v3892_v12 }
 0x28b   :  { %793 = vmatpush.msra.mxu2 %v3220_v29  ;;  %816 = vmatpush.msra.mxu3 %v3224_v30  ;;  %v3970_v29 = vld [vmem:[%s5038_s2 + $0x30] sm:$0xff]  ;;  %5319 = vst [vmem:[#allocation130_spill] sm:$0xff] %v3982_v31 }
 0x28c   :  { %961 = vmatpush.msrb.mxu0 %v3747_v43  ;;  %990 = vmatpush.msrb.mxu1 %v3753_v44  ;;  %5317 = vst [vmem:[#allocation128_spill] sm:$0xff] %v3970_v29  ;;  %v3976_v30 = vld [vmem:[%s5038_s2 + $0xb0] sm:$0xff] }
 0x28d   :  { %794 = vmatpush.msra.mxu2 %v3197_v25  ;;  %817 = vmatpush.msra.mxu3 %v3200_v26  ;;  %v3946_v25 = vld [vmem:[%s5038_s2 + $0x38] sm:$0xff]  ;;  %5318 = vst [vmem:[#allocation129_spill] sm:$0xff] %v3976_v30 }
 0x28e   :  { %962 = vmatpush.msrb.mxu0 %v3761_v45  ;;  %991 = vmatpush.msrb.mxu1 %v3767_v46  ;;  %5313 = vst [vmem:[#allocation124_spill] sm:$0xff] %v3946_v25  ;;  %v3952_v26 = vld [vmem:[%s5038_s2 + $0xb8] sm:$0xff] }
 0x28f   :  { %795 = vmatpush.msra.mxu2 %v3103_v6  ;;  %818 = vmatpush.msra.mxu3 %v3112_v8  ;;  %v3856_v6 = vld [vmem:[%s5038_s2 + $0xd8] sm:$0xff]  ;;  %5314 = vst [vmem:[#allocation125_spill] sm:$0xff] %v3952_v26 }
 0x290   :  { %796 = vmatmul.f32.vlgmr.msra.gmra.mxu2 %v169_v42  ;;  %819 = vmatmul.f32.vlgmr.msra.gmra.mxu3 %v169_v42  ;;  %5298 = vst [vmem:[#allocation109_spill] sm:$0xff] %v3856_v6  ;;  %v3868_v8 = vld [vmem:[%s5038_s2 + $0x1d8] sm:$0xff]  ;;  %v5343_v42 = vld [vmem:[#allocation25_spill] sm:$0xff] }
 0x291   :  { %1019 = vmatpush.msrb.mxu2 %v3778_v49  ;;  %1048 = vmatpush.msrb.mxu3 %v3784_v50  ;;  %5300 = vst [vmem:[#allocation111_spill] sm:$0xff] %v3868_v8 }
 0x292   :  { %753 = vmatmul.f32.gmra.mxu0 %v170_v47  ;;  %776 = vmatmul.f32.gmra.mxu1 %v170_v47  ;;  %5320 = vst [vmem:[#allocation131_spill] sm:$0xff] %v3988_v32 }
 0x293   :  { %1020 = vmatpush.msrb.mxu2 %v3790_v51  ;;  %1049 = vmatpush.msrb.mxu3 %v3796_v52  ;;  %5323 = vst [vmem:[#allocation3_spill] sm:$0xff] %v3996_v35 }
 0x294   :  { %963 = vmatpush.msrb.mxu0 %v3802_v53  ;;  %992 = vmatpush.msrb.mxu1 %v3808_v54  ;;  %5324 = vst [vmem:[#allocation4_spill] sm:$0xff] %v4002_v36 }
 0x295   :  { %1021 = vmatpush.msrb.mxu2 %v3814_v55  ;;  %1050 = vmatpush.msrb.mxu3 %v3820_v58 }
 0x296   :  { %964 = vmatpush.msrb.mxu0 %v3826_v61  ;;  %993 = vmatpush.msrb.mxu1 %v3832_v62 }
 0x297   :  { %1022 = vmatpush.msrb.mxu2 %v3838_v63  ;;  %1051 = vmatpush.msrb.mxu3 %v3844_v2 }
 0x298   :  { %799 = vmatmul.f32.gmra.mxu2 %v170_v47  ;;  %822 = vmatmul.f32.gmra.mxu3 %v170_v47  ;;  %v5344_v47 = vld [vmem:[#allocation26_spill] sm:$0xff] }
 0x299   :  { %965 = vmatpush.msrb.mxu0 %v3850_v5  ;;  %994 = vmatpush.msrb.mxu1 %v3856_v6 }
 0x29a   :  { %1023 = vmatpush.msrb.mxu2 %v3862_v7  ;;  %1052 = vmatpush.msrb.mxu3 %v3868_v8 }
 0x29b   :  { %966 = vmatpush.msrb.mxu0 %v3874_v9  ;;  %995 = vmatpush.msrb.mxu1 %v3880_v10 }
 0x29c   :  { %1024 = vmatpush.msrb.mxu2 %v3886_v11  ;;  %1053 = vmatpush.msrb.mxu3 %v3892_v12 }
 0x29d   :  { %967 = vmatpush.msrb.mxu0 %v3898_v14  ;;  %996 = vmatpush.msrb.mxu1 %v3904_v15 }
 0x29e   :  { %1025 = vmatpush.msrb.mxu2 %v3910_v17  ;;  %1054 = vmatpush.msrb.mxu3 %v3916_v18 }
 0x29f   :  { %968 = vmatpush.msrb.mxu0 %v3922_v20  ;;  %997 = vmatpush.msrb.mxu1 %v3928_v21 }
 0x2a0   :  { %1026 = vmatpush.msrb.mxu2 %v3934_v23  ;;  %1055 = vmatpush.msrb.mxu3 %v3940_v24 }
 0x2a1   :  { %969 = vmatpush.msrb.mxu0 %v3946_v25  ;;  %998 = vmatpush.msrb.mxu1 %v3952_v26 }
 0x2a2   :  { %1027 = vmatpush.msrb.mxu2 %v3958_v27  ;;  %1056 = vmatpush.msrb.mxu3 %v3964_v28 }
 0x2a3   :  { %970 = vmatpush.msrb.mxu0 %v3970_v29  ;;  %999 = vmatpush.msrb.mxu1 %v3976_v30 }
 0x2a4   :  { %1028 = vmatpush.msrb.mxu2 %v3982_v31  ;;  %1057 = vmatpush.msrb.mxu3 %v3988_v32 }
 0x2a5   :  { %971 = vmatpush.msrb.mxu0 %v5321_v33  ;;  %1000 = vmatpush.msrb.mxu1 %v5322_v34  ;;  %v5345_v33 = vld [vmem:[#allocation29_spill] sm:$0xff]  ;;  %v5346_v34 = vld [vmem:[#allocation30_spill] sm:$0xff] }
 0x2a6   :  { %1029 = vmatpush.msrb.mxu2 %v3996_v35  ;;  %1058 = vmatpush.msrb.mxu3 %v4002_v36 }
 0x2a7   :  { %972 = vmatpush.msrb.mxu0 %v5325_v0  ;;  %1001 = vmatpush.msrb.mxu1 %v5326_v57  ;;  %v5347_v0 = vld [vmem:[#allocation31_spill] sm:$0xff]  ;;  %v5348_v57 = vld [vmem:[#allocation32_spill] sm:$0xff] }
 0x2a8   :  { %1030 = vmatpush.msrb.mxu2 %v5327_v56  ;;  %1059 = vmatpush.msrb.mxu3 %v5328_v39  ;;  %v5349_v56 = vld [vmem:[#allocation33_spill] sm:$0xff]  ;;  %v5350_v39 = vld [vmem:[#allocation34_spill] sm:$0xff] }
 0x2a9   :  { %973 = vmatpush.msrb.mxu0 %v5329_v60  ;;  %1002 = vmatpush.msrb.mxu1 %v5330_v40  ;;  %v5351_v60 = vld [vmem:[#allocation35_spill] sm:$0xff]  ;;  %v5352_v40 = vld [vmem:[#allocation36_spill] sm:$0xff] }
 0x2aa   :  { %1031 = vmatpush.msrb.mxu2 %v5331_v41  ;;  %1060 = vmatpush.msrb.mxu3 %v5332_v1  ;;  %v5353_v41 = vld [vmem:[#allocation37_spill] sm:$0xff]  ;;  %v5354_v1 = vld [vmem:[#allocation38_spill] sm:$0xff] }
 0x2ab   :  { %974 = vmatpush.msrb.mxu0 %v5333_v38  ;;  %1003 = vmatpush.msrb.mxu1 %v5334_v48  ;;  %v5355_v38 = vld [vmem:[#allocation39_spill] sm:$0xff]  ;;  %v5356_v48 = vld [vmem:[#allocation40_spill] sm:$0xff] }
 0x2ac   :  { %1032 = vmatpush.msrb.mxu2 %v5335_v37  ;;  %1061 = vmatpush.msrb.mxu3 %v5336_v59  ;;  %v5357_v37 = vld [vmem:[#allocation41_spill] sm:$0xff]  ;;  %v5358_v59 = vld [vmem:[#allocation42_spill] sm:$0xff] }
 0x2ad   :  { %975 = vmatpush.msrb.mxu0 %v5337_v16  ;;  %1004 = vmatpush.msrb.mxu1 %v5338_v22  ;;  %v5359_v16 = vld [vmem:[#allocation43_spill] sm:$0xff]  ;;  %v5360_v22 = vld [vmem:[#allocation44_spill] sm:$0xff] }
 0x2ae   :  { %1033 = vmatpush.msrb.mxu2 %v5339_v19  ;;  %1062 = vmatpush.msrb.mxu3 %v5340_v13  ;;  %v5361_v19 = vld [vmem:[#allocation45_spill] sm:$0xff]  ;;  %v5362_v13 = vld [vmem:[#allocation46_spill] sm:$0xff] }
 0x2af   :  { %976 = vmatpush.msrb.mxu0 %v5341_v3  ;;  %1005 = vmatpush.msrb.mxu1 %v5342_v4  ;;  %v5363_v3 = vld [vmem:[#allocation47_spill] sm:$0xff]  ;;  %v5364_v4 = vld [vmem:[#allocation48_spill] sm:$0xff] }
 0x2b0   :  { %1034 = vmatpush.msrb.mxu2 %v5343_v42  ;;  %1063 = vmatpush.msrb.mxu3 %v5344_v47  ;;  %v5365_v42 = vld [vmem:[#allocation49_spill] sm:$0xff]  ;;  %v5366_v47 = vld [vmem:[#allocation50_spill] sm:$0xff] }
 0x2b1   :  { %1149 = vmatpush.msra.mxu0 %v5345_v33  ;;  %1202 = vmatpush.msra.mxu1 %v5346_v34  ;;  %v5367_v33 = vld [vmem:[#allocation51_spill] sm:$0xff]  ;;  %v5368_v34 = vld [vmem:[#allocation52_spill] sm:$0xff] }
 0x2b2   :  { %1255 = vmatpush.msra.mxu2 %v5347_v0  ;;  %1308 = vmatpush.msra.mxu3 %v5348_v57  ;;  %v5369_v0 = vld [vmem:[#allocation53_spill] sm:$0xff]  ;;  %v5370_v57 = vld [vmem:[#allocation54_spill] sm:$0xff] }
 0x2b3   :  { %1150 = vmatpush.msra.mxu0 %v5349_v56  ;;  %1203 = vmatpush.msra.mxu1 %v5350_v39  ;;  %v5371_v56 = vld [vmem:[#allocation55_spill] sm:$0xff]  ;;  %v5372_v39 = vld [vmem:[#allocation56_spill] sm:$0xff] }
 0x2b4   :  { %1256 = vmatpush.msra.mxu2 %v5351_v60  ;;  %1309 = vmatpush.msra.mxu3 %v5352_v40  ;;  %v5373_v60 = vld [vmem:[#allocation57_spill] sm:$0xff]  ;;  %v5374_v40 = vld [vmem:[#allocation58_spill] sm:$0xff] }
 0x2b5   :  { %1151 = vmatpush.msra.mxu0 %v5353_v41  ;;  %1204 = vmatpush.msra.mxu1 %v5354_v1  ;;  %v5375_v41 = vld [vmem:[#allocation59_spill] sm:$0xff]  ;;  %v5376_v1 = vld [vmem:[#allocation60_spill] sm:$0xff] }
 0x2b6   :  { %1257 = vmatpush.msra.mxu2 %v5355_v38  ;;  %1310 = vmatpush.msra.mxu3 %v5356_v48  ;;  %v5377_v38 = vld [vmem:[#allocation61_spill] sm:$0xff]  ;;  %v5378_v48 = vld [vmem:[#allocation62_spill] sm:$0xff] }
 0x2b7   :  { %1152 = vmatpush.msra.mxu0 %v5357_v37  ;;  %1205 = vmatpush.msra.mxu1 %v5358_v59  ;;  %v5379_v37 = vld [vmem:[#allocation63_spill] sm:$0xff]  ;;  %v5380_v59 = vld [vmem:[#allocation64_spill] sm:$0xff] }
 0x2b8   :  { %1258 = vmatpush.msra.mxu2 %v5359_v16  ;;  %1311 = vmatpush.msra.mxu3 %v5360_v22  ;;  %v5381_v16 = vld [vmem:[#allocation65_spill] sm:$0xff]  ;;  %v5382_v22 = vld [vmem:[#allocation66_spill] sm:$0xff] }
 0x2b9   :  { %1153 = vmatpush.msra.mxu0 %v5361_v19  ;;  %1206 = vmatpush.msra.mxu1 %v5362_v13  ;;  %v5383_v19 = vld [vmem:[#allocation67_spill] sm:$0xff]  ;;  %v5384_v13 = vld [vmem:[#allocation68_spill] sm:$0xff] }
 0x2ba   :  { %1259 = vmatpush.msra.mxu2 %v5363_v3  ;;  %1312 = vmatpush.msra.mxu3 %v5364_v4  ;;  %v5385_v3 = vld [vmem:[#allocation69_spill] sm:$0xff]  ;;  %v5386_v4 = vld [vmem:[#allocation70_spill] sm:$0xff] }
 0x2bb   :  { %1154 = vmatpush.msra.mxu0 %v5365_v42  ;;  %1207 = vmatpush.msra.mxu1 %v5366_v47  ;;  %v5387_v42 = vld [vmem:[#allocation71_spill] sm:$0xff]  ;;  %v5388_v47 = vld [vmem:[#allocation72_spill] sm:$0xff] }
 0x2bc   :  { %1260 = vmatpush.msra.mxu2 %v5367_v33  ;;  %1313 = vmatpush.msra.mxu3 %v5368_v34  ;;  %v5389_v33 = vld [vmem:[#allocation73_spill] sm:$0xff]  ;;  %v5390_v34 = vld [vmem:[#allocation74_spill] sm:$0xff] }
 0x2bd   :  { %1155 = vmatpush.msra.mxu0 %v5369_v0  ;;  %1208 = vmatpush.msra.mxu1 %v5370_v57  ;;  %v5391_v0 = vld [vmem:[#allocation75_spill] sm:$0xff]  ;;  %v5392_v57 = vld [vmem:[#allocation76_spill] sm:$0xff] }
 0x2be   :  { %1261 = vmatpush.msra.mxu2 %v5371_v56  ;;  %1314 = vmatpush.msra.mxu3 %v5372_v39  ;;  %v5393_v56 = vld [vmem:[#allocation77_spill] sm:$0xff]  ;;  %v5394_v39 = vld [vmem:[#allocation78_spill] sm:$0xff] }
 0x2bf   :  { %1156 = vmatpush.msra.mxu0 %v5373_v60  ;;  %1209 = vmatpush.msra.mxu1 %v5374_v40  ;;  %v5395_v60 = vld [vmem:[#allocation79_spill] sm:$0xff]  ;;  %v5396_v40 = vld [vmem:[#allocation80_spill] sm:$0xff] }
 0x2c0   :  { %1262 = vmatpush.msra.mxu2 %v5375_v41  ;;  %1315 = vmatpush.msra.mxu3 %v5376_v1  ;;  %v5397_v41 = vld [vmem:[#allocation81_spill] sm:$0xff]  ;;  %v5398_v1 = vld [vmem:[#allocation82_spill] sm:$0xff] }
 0x2c1   :  { %1157 = vmatpush.msra.mxu0 %v5377_v38  ;;  %1210 = vmatpush.msra.mxu1 %v5378_v48  ;;  %v5399_v38 = vld [vmem:[#allocation83_spill] sm:$0xff]  ;;  %v5400_v48 = vld [vmem:[#allocation84_spill] sm:$0xff] }
 0x2c2   :  { %1263 = vmatpush.msra.mxu2 %v5379_v37  ;;  %1316 = vmatpush.msra.mxu3 %v5380_v59  ;;  %v5401_v37 = vld [vmem:[#allocation85_spill] sm:$0xff]  ;;  %v5402_v59 = vld [vmem:[#allocation86_spill] sm:$0xff] }
 0x2c3   :  { %1158 = vmatpush.msra.mxu0 %v5381_v16  ;;  %1211 = vmatpush.msra.mxu1 %v5382_v22  ;;  %v5403_v16 = vld [vmem:[#allocation87_spill] sm:$0xff]  ;;  %v5404_v22 = vld [vmem:[#allocation88_spill] sm:$0xff] }
 0x2c4   :  { %1264 = vmatpush.msra.mxu2 %v5383_v19  ;;  %1317 = vmatpush.msra.mxu3 %v5384_v13  ;;  %v5405_v19 = vld [vmem:[#allocation89_spill] sm:$0xff]  ;;  %v5406_v13 = vld [vmem:[#allocation90_spill] sm:$0xff] }
 0x2c5   :  { %1159 = vmatpush.msra.mxu0 %v5385_v3  ;;  %1212 = vmatpush.msra.mxu1 %v5386_v4  ;;  %v5407_v3 = vld [vmem:[#allocation91_spill] sm:$0xff]  ;;  %v5408_v4 = vld [vmem:[#allocation92_spill] sm:$0xff] }
 0x2c6   :  { %1265 = vmatpush.msra.mxu2 %v5387_v42  ;;  %1318 = vmatpush.msra.mxu3 %v5388_v47 }
 0x2c7   :  { %1160 = vmatpush.msra.mxu0 %v5389_v33  ;;  %1213 = vmatpush.msra.mxu1 %v5390_v34 }
 0x2c8   :  { %1266 = vmatpush.msra.mxu2 %v5391_v0  ;;  %1319 = vmatpush.msra.mxu3 %v5392_v57 }
 0x2c9   :  { %1161 = vmatpush.msra.mxu0 %v5393_v56  ;;  %1214 = vmatpush.msra.mxu1 %v5394_v39 }
 0x2ca   :  { %1267 = vmatpush.msra.mxu2 %v5395_v60  ;;  %1320 = vmatpush.msra.mxu3 %v5396_v40 }
 0x2cb   :  { %1162 = vmatpush.msra.mxu0 %v5397_v41  ;;  %1215 = vmatpush.msra.mxu1 %v5398_v1 }
 0x2cc   :  { %1268 = vmatpush.msra.mxu2 %v5399_v38  ;;  %1321 = vmatpush.msra.mxu3 %v5400_v48 }
 0x2cd   :  { %1163 = vmatpush.msra.mxu0 %v5401_v37  ;;  %1216 = vmatpush.msra.mxu1 %v5402_v59 }
 0x2ce   :  { %1269 = vmatpush.msra.mxu2 %v5403_v16  ;;  %1322 = vmatpush.msra.mxu3 %v5404_v22 }
 0x2cf   :  { %1164 = vmatpush.msra.mxu0 %v5405_v19  ;;  %1217 = vmatpush.msra.mxu1 %v5406_v13 }
 0x2d0   :  { %1270 = vmatpush.msra.mxu2 %v5407_v3  ;;  %1323 = vmatpush.msra.mxu3 %v5408_v4 }
 0x307   :  { %v751_v42 = vpop.f32.mrf.mxu0  ;;  %v774_v47 = vpop.f32.mrf.mxu1 }
 0x308   :  { %v826_v33 = vmax.f32 %v751_v42, 0.0  ;;  %v827_v34 = vmax.f32 %v774_v47, 0.0  ;;  %v2803_v42 = vmov 512.0  }
 0x309   :  { %2658 = vrcp.f32 %v2803_v42 }
 0x30a   :  { %v834_v0 = vadd.f32 %v827_v34, %v826_v33 }
 0x30f   :  { %v754_v57 = vpop.f32.mrf.mxu0  ;;  %v777_v56 = vpop.f32.mrf.mxu1 }
 0x310   :  { %v830_v1 = vmax.f32 %v754_v57, 0.0  ;;  %v831_v38 = vmax.f32 %v777_v56, 0.0  ;;  %v2659_v47 = vpop.eup %2658 }
 0x311   :  { %v845_v36 = vmul.f32 512.0, %v2659_v47  ;;  %vm849_vm4 = vweird.f32 %v2659_v47 }
 0x312   :  { %v839_v59 = vadd.f32 %v831_v38, %v830_v1 }
 0x313   :  { %v797_v39 = vpop.f32.mrf.mxu2  ;;  %v820_v60 = vpop.f32.mrf.mxu3  ;;  %v846_v35 = vsub.f32 1.0, %v845_v36 }
 0x314   :  { %v828_v40 = vmax.f32 %v797_v39, 0.0  ;;  %v829_v41 = vmax.f32 %v820_v60, 0.0 }
 0x315   :  { %v847_v39 = vmul.f32 %v2659_v47, %v846_v35 }
 0x316   :  { %v835_v48 = vadd.f32 %v834_v0, %v828_v40 }
 0x317   :  { %v848_v60 = vadd.f32 %v2659_v47, %v847_v39 }
 0x318   :  { %v836_v37 = vadd.f32 %v835_v48, %v829_v41 }
 0x319   :  { %v4089_v57 = vsel %vm849_vm4, %v2659_v47, %v848_v60 }
 0x31a   :  { %837 = vadd.xlane.f32.xlu0 %v836_v37  ;;  %5409 = vst [vmem:[#allocation7_spill] sm:$0xff] %v4089_v57 }
 0x31b   :  { %v800_v16 = vpop.f32.mrf.mxu2  ;;  %v823_v22 = vpop.f32.mrf.mxu3 }
 0x31c   :  { %v832_v19 = vmax.f32 %v800_v16, 0.0  ;;  %v833_v13 = vmax.f32 %v823_v22, 0.0 }
 0x31e   :  { %v840_v3 = vadd.f32 %v839_v59, %v832_v19 }
 0x320   :  { %v841_v4 = vadd.f32 %v840_v3, %v833_v13 }
 0x322   :  { %842 = vadd.xlane.f32.xlu1 %v841_v4 }
 0x38d   :  { %v838_v0 = vpop.xlane.xlu0 %837 }
 0x38e   :  { %v851_v56 = vmul.f32 %v4089_v57, %v838_v0 }
 0x390   :  { %v853_v48 = vsub.f32 %v826_v33, %v851_v56  ;;  %v854_v37 = vsub.f32 %v827_v34, %v851_v56  ;;  %v855_v16 = vsub.f32 %v828_v40, %v851_v56  ;;  %v856_v22 = vsub.f32 %v829_v41, %v851_v56 }
 0x392   :  { %v861_v59 = vmul.f32 %v853_v48, %v853_v48  ;;  %v862_v3 = vmul.f32 %v854_v37, %v854_v37  ;;  %v863_v4 = vmul.f32 %v855_v16, %v855_v16  ;;  %v864_v36 = vmul.f32 %v856_v22, %v856_v22 }
 0x394   :  { %v869_v32 = vadd.f32 %v862_v3, %v861_v59 }
 0x395   :  { %v843_v42 = vpop.xlane.xlu1 %842 }
 0x396   :  { %v852_v31 = vmul.f32 %v4089_v57, %v843_v42  ;;  %v870_v35 = vadd.f32 %v869_v32, %v863_v4 }
 0x398   :  { %v857_v39 = vsub.f32 %v830_v1, %v852_v31  ;;  %v858_v30 = vsub.f32 %v831_v38, %v852_v31  ;;  %v871_v47 = vadd.f32 %v870_v35, %v864_v36  ;;  %v859_v60 = vsub.f32 %v832_v19, %v852_v31 }
 0x399   :  { %v860_v29 = vsub.f32 %v833_v13, %v852_v31 }
 0x39a   :  { %872 = vadd.xlane.f32.xlu2 %v871_v47  ;;  %v865_v0 = vmul.f32 %v857_v39, %v857_v39  ;;  %v866_v33 = vmul.f32 %v858_v30, %v858_v30  ;;  %v867_v34 = vmul.f32 %v859_v60, %v859_v60 }
 0x39b   :  { %v868_v41 = vmul.f32 %v860_v29, %v860_v29 }
 0x39c   :  { %v874_v40 = vadd.f32 %v866_v33, %v865_v0 }
 0x39e   :  { %v875_v56 = vadd.f32 %v874_v40, %v867_v34 }
 0x3a0   :  { %v876_v28 = vadd.f32 %v875_v56, %v868_v41 }
 0x3a2   :  { %877 = vadd.xlane.f32.xlu2 %v876_v28 }
 0x40d   :  { %v873_v59 = vpop.xlane.xlu2 %872 }
 0x40e   :  { %v879_v3 = vmul.f32 %v873_v59, %v4089_v57 }
 0x410   :  { %v881_v42 = vadd.f32 1e-05, %v879_v3  ;;  %v5410_v3 = vld [vmem:[#allocation22_spill] sm:$0xff] }
 0x412   :  { %2660 = vrsqrt.f32 %v881_v42  ;;  %vm889_vm6 = vweird.f32 %v881_v42 }
 0x415   :  { %v878_v32 = vpop.xlane.xlu2 %877 }
 0x416   :  { %v880_v1 = vmul.f32 %v878_v32, %v4089_v57 }
 0x418   :  { %v2661_v38 = vpop.eup %2660  ;;  %v882_v19 = vadd.f32 1e-05, %v880_v1  ;;  %v5411_v1 = vld [vmem:[#allocation23_spill] sm:$0xff] }
 0x419   :  { %v884_v4 = vmul.f32 %v2661_v38, %v881_v42  ;;  %vm890_vm5 = vweird.f32 %v2661_v38 }
 0x41a   :  { %2662 = vrsqrt.f32 %v882_v19  ;;  %vm891_vm7 = vmor %vm889_vm6, %vm890_vm5  ;;  %vm899_vm9 = vweird.f32 %v882_v19 }
 0x41b   :  { %v885_v31 = vmul.f32 %v2661_v38, %v884_v4 }
 0x41d   :  { %v886_v13 = vmul.f32 0.5, %v885_v31  ;;  %v5412_v31 = vld [vmem:[#allocation16_spill] sm:$0xff] }
 0x41f   :  { %v887_v36 = vsub.f32 1.5, %v886_v13 }
 0x420   :  { %v2663_v35 = vpop.eup %2662 }
 0x421   :  { %v888_v47 = vmul.f32 %v2661_v38, %v887_v36  ;;  %v894_v28 = vmul.f32 %v2663_v35, %v882_v19  ;;  %v5414_v36 = vld [vmem:[#allocation17_spill] sm:$0xff]  ;;  %vm900_vm8 = vweird.f32 %v2663_v35 }
 0x422   :  { %vm901_vm10 = vmor %vm899_vm9, %vm900_vm8 }
 0x423   :  { %v892_v0 = vsel %vm891_vm7, %v2661_v38, %v888_v47  ;;  %v895_v33 = vmul.f32 %v2663_v35, %v894_v28 }
 0x424   :  { %v903_v34 = vmul.f32 %v892_v0, %v853_v48  ;;  %v904_v40 = vmul.f32 %v892_v0, %v854_v37  ;;  %v905_v41 = vmul.f32 %v892_v0, %v855_v16  ;;  %v906_v56 = vmul.f32 %v892_v0, %v856_v22 }
 0x425   :  { %v896_v59 = vmul.f32 0.5, %v895_v33 }
 0x426   :  { %v4096_v32 = vmul.f32 %v903_v34, %v5410_v3  ;;  %v4099_v4 = vmul.f32 %v904_v40, %v5411_v1  ;;  %v4102_v13 = vmul.f32 %v905_v41, %v5412_v31  ;;  %v4105_v42 = vmul.f32 %v906_v56, %v5414_v36 }
 0x427   :  { %v897_v57 = vsub.f32 1.5, %v896_v59 }
 0x428   :  { %5413 = vst [vmem:[#allocation8_spill] sm:$0xff] %v4102_v13  ;;  %977 = vmatmul.f32.vlgmr.msrb.gmra.mxu0 %v4096_v32  ;;  %1006 = vmatmul.f32.vlgmr.msrb.gmra.mxu1 %v4099_v4 }
 0x429   :  { %5415 = vst [vmem:[#allocation5_spill] sm:$0xff] %v4105_v42  ;;  %v898_v48 = vmul.f32 %v2663_v35, %v897_v57  ;;  %1035 = vmatmul.f32.vlgmr.msrb.gmra.mxu2 %v4102_v13  ;;  %1064 = vmatmul.f32.vlgmr.msrb.gmra.mxu3 %v4105_v42 }
 0x42b   :  { %v902_v37 = vsel %vm901_vm10, %v2663_v35, %v898_v48 }
 0x42c   :  { %v907_v16 = vmul.f32 %v902_v37, %v857_v39  ;;  %v908_v22 = vmul.f32 %v902_v37, %v858_v30  ;;  %v909_v38 = vmul.f32 %v902_v37, %v859_v60  ;;  %v910_v47 = vmul.f32 %v902_v37, %v860_v29 }
 0x42d   :  { %v4128_v29 = vsub.f32 %v903_v34, %v4096_v32  ;;  %v4131_v30 = vsub.f32 %v904_v40, %v4099_v4  ;;  %v4134_v39 = vsub.f32 %v905_v41, %v4102_v13  ;;  %v4137_v60 = vsub.f32 %v906_v56, %v4105_v42 }
 0x42e   :  { %v4112_v28 = vmul.f32 %v907_v16, %v5410_v3  ;;  %v4115_v0 = vmul.f32 %v908_v22, %v5411_v1  ;;  %v4118_v33 = vmul.f32 %v909_v38, %v5412_v31  ;;  %v4121_v57 = vmul.f32 %v910_v47, %v5414_v36 }
 0x430   :  { %980 = vmatmul.f32.gmra.mxu0 %v4112_v28  ;;  %1009 = vmatmul.f32.gmra.mxu1 %v4115_v0  ;;  %v4144_v19 = vsub.f32 %v907_v16, %v4112_v28  ;;  %v4147_v35 = vsub.f32 %v908_v22, %v4115_v0  ;;  %v4150_v34 = vsub.f32 %v909_v38, %v4118_v33 }
 0x431   :  { %1038 = vmatmul.f32.gmra.mxu2 %v4118_v33  ;;  %1067 = vmatmul.f32.gmra.mxu3 %v4121_v57  ;;  %v4153_v40 = vsub.f32 %v910_v47, %v4121_v57 }
 0x438   :  { %983 = vmatmul.f32.gmra.mxu0 %v4128_v29  ;;  %1012 = vmatmul.f32.gmra.mxu1 %v4131_v30 }
 0x439   :  { %1041 = vmatmul.f32.gmra.mxu2 %v4134_v39  ;;  %1070 = vmatmul.f32.gmra.mxu3 %v4137_v60 }
 0x440   :  { %986 = vmatmul.f32.gmra.mxu0 %v4144_v19  ;;  %1015 = vmatmul.f32.gmra.mxu1 %v4147_v35 }
 0x441   :  { %1044 = vmatmul.f32.gmra.mxu2 %v4150_v34  ;;  %1073 = vmatmul.f32.gmra.mxu3 %v4153_v40 }
 0x4a5   :  { %v978_v41 = vpop.f32.mrf.mxu0  ;;  %v1007_v56 = vpop.f32.mrf.mxu1 }
 0x4a6   :  { %v1008_v47 = vadd.f32 %v1007_v56, %v978_v41 }
 0x4ac   :  { %v1036_v59 = vpop.f32.mrf.mxu2  ;;  %v1065_v48 = vpop.f32.mrf.mxu3 }
 0x4ad   :  { %v981_v37 = vpop.f32.mrf.mxu0  ;;  %v1010_v16 = vpop.f32.mrf.mxu1  ;;  %v1037_v1 = vadd.f32 %v1036_v59, %v1008_v47 }
 0x4ae   :  { %v1011_v18 = vadd.f32 %v1010_v16, %v981_v37 }
 0x4af   :  { %v1066_v24 = vadd.f32 %v1065_v48, %v1037_v1 }
 0x4b4   :  { %v1039_v22 = vpop.f32.mrf.mxu2  ;;  %v1068_v38 = vpop.f32.mrf.mxu3 }
 0x4b5   :  { %v984_v36 = vpop.f32.mrf.mxu0  ;;  %v1013_v31 = vpop.f32.mrf.mxu1  ;;  %v1040_v15 = vadd.f32 %v1039_v22, %v1011_v18 }
 0x4b6   :  { %v1014_v3 = vadd.f32 %v1013_v31, %v984_v36 }
 0x4bc   :  { %v1042_v27 = vpop.f32.mrf.mxu2  ;;  %v1071_v26 = vpop.f32.mrf.mxu3 }
 0x4bd   :  { %v1043_v25 = vadd.f32 %v1042_v27, %v1014_v3  ;;  %v987_v21 = vpop.f32.mrf.mxu0  ;;  %v1016_v20 = vpop.f32.mrf.mxu1 }
 0x4be   :  { %v1017_v12 = vadd.f32 %v1016_v20, %v987_v21 }
 0x4bf   :  { %v1072_v23 = vadd.f32 %v1071_v26, %v1043_v25  ;;  %v1069_v25 = vadd.f32 %v1068_v38, %v1040_v15 }
 0x4c1   :  { %v1077_v17 = vadd.f32 %v1072_v23, %v1066_v24  ;;  %1081 = vrot.lane.b32.xlu0 %v1072_v23, %s2801_s20 }
 0x4c3   :  { %v1089_v14 = vsel %vm347_vm0, %v1077_v17, 0.0 }
 0x4c4   :  { %v1045_v11 = vpop.f32.mrf.mxu2  ;;  %v1091_v41 = vsel %vm350_vm1, %v1089_v14, 0.0  ;;  %v1074_v27 = vpop.f32.mrf.mxu3 }
 0x4c5   :  { %v1046_v56 = vadd.f32 %v1045_v11, %v1017_v12  ;;  %2525 = vmatmul.msk.f32.vlgmr.msra.gmra.mxu0 %vm353_vm2, %v1091_v41  ;;  %2541 = vmatmul.msk.f32.vlgmr.msra.gmra.mxu1 %vm353_vm2, %v1091_v41 }
 0x4c6   :  { %2557 = vmatmul.msk.f32.vlgmr.msra.gmra.mxu2 %vm353_vm2, %v1091_v41  ;;  %2573 = vmatmul.msk.f32.vlgmr.msra.gmra.mxu3 %vm353_vm2, %v1091_v41 }
 0x4c7   :  { %v1075_v26 = vadd.f32 %v1074_v27, %v1046_v56 }
 0x4c9   :  { %v1078_v23 = vadd.f32 %v1075_v26, %v1069_v25  ;;  %1083 = vrot.lane.b32.xlu1 %v1075_v26, %s2801_s20 }
 0x4cb   :  { %v1090_v18 = vsel %vm347_vm0, %v1078_v23, 0.0 }
 0x4cc   :  { %v1092_v20 = vsel %vm350_vm1, %v1090_v18, 0.0 }
 0x4cd   :  { %2526 = vmatmul.msk.f32.gmra.mxu0 %vm353_vm2, %v1092_v20  ;;  %2542 = vmatmul.msk.f32.gmra.mxu1 %vm353_vm2, %v1092_v20 }
 0x4ce   :  { %2558 = vmatmul.msk.f32.gmra.mxu2 %vm353_vm2, %v1092_v20  ;;  %2574 = vmatmul.msk.f32.gmra.mxu3 %vm353_vm2, %v1092_v20 }
 0x4d1   :  { %1111 = vrot.lane.b32.xlu1 %v1066_v24, %s2800_s19 }
 0x4d9   :  { %1125 = vrot.lane.b32.xlu1 %v1078_v23, %s2800_s19 }
 0x533   :  { %v1082_v11 = vpop.permute.xlu0 %1081 }
 0x534   :  { %v1087_v12 = vadd.f32 %v1082_v11, %v1066_v24 }
 0x536   :  { %1097 = vrot.lane.b32.xlu2 %v1087_v12, %s2802_s21  ;;  %1141 = vrot.lane.b32.xlu1 %v1087_v12, %s2801_s20 }
 0x53b   :  { %v1084_v14 = vpop.permute.xlu1 %1083 }
 0x53c   :  { %v1088_v15 = vadd.f32 %v1084_v14, %v1069_v25 }
 0x53e   :  { %1123 = vrot.lane.b32.xlu2 %v1077_v17, %s2800_s19  ;;  %1099 = vrot.lane.b32.xlu0 %v1088_v15, %s2802_s21 }
 0x542   :  { %v4247_v23 = vpop.f32.mrf.mxu0  ;;  %v4249_v18 = vpop.f32.mrf.mxu1 }
 0x543   :  { %v1112_v36 = vpop.permute.xlu1 %1111 }
 0x544   :  { %v1117_v59 = vsel %vm350_vm1, 0.0, %v1112_v36 }
 0x546   :  { %1135 = vrot.lane.b32.xlu2 %v1069_v25, %s2801_s20  ;;  %1113 = vrot.lane.b32.xlu0 %v1069_v25, %s2800_s19 }
 0x549   :  { %v4251_v20 = vpop.f32.mrf.mxu2  ;;  %v4253_v11 = vpop.f32.mrf.mxu3 }
 0x54a   :  { %v4255_v12 = vpop.f32.mrf.mxu0  ;;  %v4257_v14 = vpop.f32.mrf.mxu1 }
 0x54b   :  { %v1126_v38 = vpop.permute.xlu1 %1125 }
 0x54c   :  { %v1130_v47 = vsel %vm350_vm1, 0.0, %v1126_v38 }
 0x54e   :  { %1133 = vrot.lane.b32.xlu0 %v1066_v24, %s2801_s20 }
 0x556   :  { %1143 = vrot.lane.b32.xlu0 %v1088_v15, %s2801_s20  ;;  %v4259_v15 = vpop.f32.mrf.mxu2 }
 0x590   :  { %v1098_v21 = vpop.permute.xlu2 %1097 }
 0x591   :  { %v1103_v3 = vsel %vm347_vm0, 0.0, %v1098_v21  ;;  %v4261_v21 = vpop.f32.mrf.mxu3 }
 0x592   :  { %v1105_v1 = vsel %vm350_vm1, %v1103_v3, 0.0 }
 0x593   :  { %2527 = vmatmul.msk.f32.gmra.mxu0 %vm353_vm2, %v1105_v1  ;;  %2543 = vmatmul.msk.f32.gmra.mxu1 %vm353_vm2, %v1105_v1 }
 0x594   :  { %2559 = vmatmul.msk.f32.gmra.mxu2 %vm353_vm2, %v1105_v1  ;;  %2575 = vmatmul.msk.f32.gmra.mxu3 %vm353_vm2, %v1105_v1 }
 0x598   :  { %v1124_v16 = vpop.permute.xlu2 %1123 }
 0x599   :  { %v1129_v22 = vsel %vm350_vm1, 0.0, %v1124_v16 }
 0x5a0   :  { %v1136_v27 = vpop.permute.xlu2 %1135 }
 0x5a8   :  { %v1142_v25 = vpop.permute.xlu1 %1141 }
 0x5b0   :  { %v1100_v17 = vpop.permute.xlu0 %1099 }
 0x5b1   :  { %v1104_v31 = vsel %vm347_vm0, 0.0, %v1100_v17 }
 0x5b2   :  { %v1106_v24 = vsel %vm350_vm1, %v1104_v31, 0.0 }
 0x5b3   :  { %2528 = vmatmul.msk.f32.gmra.mxu0 %vm353_vm2, %v1106_v24  ;;  %2544 = vmatmul.msk.f32.gmra.mxu1 %vm353_vm2, %v1106_v24 }
 0x5b4   :  { %2560 = vmatmul.msk.f32.gmra.mxu2 %vm353_vm2, %v1106_v24  ;;  %2576 = vmatmul.msk.f32.gmra.mxu3 %vm353_vm2, %v1106_v24 }
 0x5b8   :  { %v1114_v48 = vpop.permute.xlu0 %1113 }
 0x5b9   :  { %v1118_v37 = vsel %vm350_vm1, 0.0, %v1114_v48 }
 0x5bb   :  { %2529 = vmatmul.msk.f32.gmra.mxu0 %vm353_vm2, %v1117_v59  ;;  %2545 = vmatmul.msk.f32.gmra.mxu1 %vm353_vm2, %v1117_v59 }
 0x5bc   :  { %2561 = vmatmul.msk.f32.gmra.mxu2 %vm353_vm2, %v1117_v59  ;;  %2577 = vmatmul.msk.f32.gmra.mxu3 %vm353_vm2, %v1117_v59 }
 0x5c0   :  { %v1134_v41 = vpop.permute.xlu0 %1133 }
 0x5c3   :  { %2530 = vmatmul.msk.f32.gmra.mxu0 %vm353_vm2, %v1118_v37  ;;  %2546 = vmatmul.msk.f32.gmra.mxu1 %vm353_vm2, %v1118_v37 }
 0x5c4   :  { %2562 = vmatmul.msk.f32.gmra.mxu2 %vm353_vm2, %v1118_v37  ;;  %2578 = vmatmul.msk.f32.gmra.mxu3 %vm353_vm2, %v1118_v37 }
 0x5c8   :  { %v1144_v26 = vpop.permute.xlu0 %1143 }
 0x5cb   :  { %2531 = vmatmul.msk.f32.gmra.mxu0 %vm353_vm2, %v1129_v22  ;;  %2547 = vmatmul.msk.f32.gmra.mxu1 %vm353_vm2, %v1129_v22 }
 0x5cc   :  { %2563 = vmatmul.msk.f32.gmra.mxu2 %vm353_vm2, %v1129_v22  ;;  %2579 = vmatmul.msk.f32.gmra.mxu3 %vm353_vm2, %v1129_v22 }
 0x5d3   :  { %2532 = vmatmul.msk.f32.gmra.mxu0 %vm353_vm2, %v1130_v47  ;;  %2548 = vmatmul.msk.f32.gmra.mxu1 %vm353_vm2, %v1130_v47 }
 0x5d4   :  { %2564 = vmatmul.msk.f32.gmra.mxu2 %vm353_vm2, %v1130_v47  ;;  %2580 = vmatmul.msk.f32.gmra.mxu3 %vm353_vm2, %v1130_v47 }
 0x5db   :  { %2534 = vmatmul.msk.f32.gmra.mxu0 %vm3645_vm3, %v1134_v41  ;;  %2550 = vmatmul.msk.f32.gmra.mxu1 %vm3645_vm3, %v1134_v41 }
 0x5dc   :  { %2566 = vmatmul.msk.f32.gmra.mxu2 %vm3645_vm3, %v1134_v41  ;;  %2582 = vmatmul.msk.f32.gmra.mxu3 %vm3645_vm3, %v1134_v41 }
 0x5e3   :  { %2536 = vmatmul.msk.f32.gmra.mxu0 %vm3645_vm3, %v1136_v27  ;;  %2552 = vmatmul.msk.f32.gmra.mxu1 %vm3645_vm3, %v1136_v27 }
 0x5e4   :  { %2568 = vmatmul.msk.f32.gmra.mxu2 %vm3645_vm3, %v1136_v27  ;;  %2584 = vmatmul.msk.f32.gmra.mxu3 %vm3645_vm3, %v1136_v27 }
 0x5eb   :  { %2538 = vmatmul.msk.f32.gmra.mxu0 %vm3645_vm3, %v1142_v25  ;;  %2554 = vmatmul.msk.f32.gmra.mxu1 %vm3645_vm3, %v1142_v25 }
 0x5ec   :  { %2570 = vmatmul.msk.f32.gmra.mxu2 %vm3645_vm3, %v1142_v25  ;;  %2586 = vmatmul.msk.f32.gmra.mxu3 %vm3645_vm3, %v1142_v25 }
 0x5f3   :  { %2540 = vmatmul.msk.f32.gmra.mxu0 %vm3645_vm3, %v1144_v26  ;;  %2556 = vmatmul.msk.f32.gmra.mxu1 %vm3645_vm3, %v1144_v26 }
 0x5f4   :  { %2572 = vmatmul.msk.f32.gmra.mxu2 %vm3645_vm3, %v1144_v26  ;;  %2588 = vmatmul.msk.f32.gmra.mxu3 %vm3645_vm3, %v1144_v26 }
 0x610   :  { %v4263_v3 = vpop.f32.mrf.mxu0  ;;  %v4265_v1 = vpop.f32.mrf.mxu1 }
 0x617   :  { %v4267_v17 = vpop.f32.mrf.mxu2  ;;  %v4269_v31 = vpop.f32.mrf.mxu3 }
 0x630   :  { %v1175_v24 = vpop.f32.mrf.mxu0  ;;  %v1228_v36 = vpop.f32.mrf.mxu1 }
 0x637   :  { %v4271_v59 = vpop.f32.mrf.mxu2  ;;  %v4273_v48 = vpop.f32.mrf.mxu3 }
 0x638   :  { %v1178_v37 = vpop.f32.mrf.mxu0  ;;  %v1231_v16 = vpop.f32.mrf.mxu1 }
 0x63f   :  { %v4275_v22 = vpop.f32.mrf.mxu2  ;;  %v4277_v38 = vpop.f32.mrf.mxu3 }
 0x640   :  { %v1181_v47 = vpop.f32.mrf.mxu0  ;;  %v1234_v41 = vpop.f32.mrf.mxu1 }
 0x647   :  { %v1287_v27 = vpop.f32.mrf.mxu2  ;;  %v1340_v25 = vpop.f32.mrf.mxu3 }
 0x648   :  { %v1184_v26 = vpop.f32.mrf.mxu0  ;;  %v1237_v56 = vpop.f32.mrf.mxu1 }
 0x64f   :  { %v1290_v10 = vpop.f32.mrf.mxu2  ;;  %v1343_v9 = vpop.f32.mrf.mxu3 }
 0x650   :  { %v1187_v8 = vpop.f32.mrf.mxu0  ;;  %v1240_v7 = vpop.f32.mrf.mxu1 }
 0x657   :  { %v1293_v6 = vpop.f32.mrf.mxu2  ;;  %v1346_v5 = vpop.f32.mrf.mxu3 }
 0x658   :  { %v1190_v2 = vpop.f32.mrf.mxu0  ;;  %v1243_v63 = vpop.f32.mrf.mxu1 }
 0x65f   :  { %v1296_v62 = vpop.f32.mrf.mxu2  ;;  %v1349_v61 = vpop.f32.mrf.mxu3 }
 0x660   :  { %v1193_v58 = vpop.f32.mrf.mxu0  ;;  %v1246_v55 = vpop.f32.mrf.mxu1 }
 0x667   :  { %v1299_v54 = vpop.f32.mrf.mxu2  ;;  %v1352_v53 = vpop.f32.mrf.mxu3 }
 0x668   :  { %v1196_v52 = vpop.f32.mrf.mxu0  ;;  %v1249_v51 = vpop.f32.mrf.mxu1 }
 0x66f   :  { %v1302_v50 = vpop.f32.mrf.mxu2  ;;  %v1355_v49 = vpop.f32.mrf.mxu3 }
 0x670   :  { %v1199_v42 = vpop.f32.mrf.mxu0  ;;  %v1252_v13 = vpop.f32.mrf.mxu1 }
 0x671   :  { %1473 = vmatpush.msrb.mxu0 %v1199_v42  ;;  %1496 = vmatpush.msrb.mxu1 %v1252_v13  ;;  %v5439_v13 = vld [vmem:[#allocation114_spill] sm:$0xff]  ;;  %v5440_v42 = vld [vmem:[#allocation115_spill] sm:$0xff] }
 0x673   :  { %1474 = vmatpush.msrb.mxu0 %v1196_v52  ;;  %1497 = vmatpush.msrb.mxu1 %v1249_v51  ;;  %v5420_v51 = vld [vmem:[#allocation5_spill] sm:$0xff]  ;;  %v5421_v52 = vld [vmem:[#allocation96_spill] sm:$0xff] }
 0x675   :  { %1475 = vmatpush.msrb.mxu0 %v1193_v58  ;;  %1498 = vmatpush.msrb.mxu1 %v1246_v55  ;;  %v5425_v55 = vld [vmem:[#allocation100_spill] sm:$0xff]  ;;  %v5426_v58 = vld [vmem:[#allocation101_spill] sm:$0xff] }
 0x677   :  { %v1305_v46 = vpop.f32.mrf.mxu2  ;;  %v1358_v45 = vpop.f32.mrf.mxu3  ;;  %1476 = vmatpush.msrb.mxu0 %v1190_v2  ;;  %1499 = vmatpush.msrb.mxu1 %v1243_v63  ;;  %v5429_v63 = vld [vmem:[#allocation104_spill] sm:$0xff]  ;;  %v5430_v2 = vld [vmem:[#allocation105_spill] sm:$0xff] }
 0x678   :  { %1519 = vmatpush.msrb.mxu2 %v1305_v46  ;;  %1542 = vmatpush.msrb.mxu3 %v1358_v45  ;;  %v911_v45 = vld [vmem:[%s5042_s5 + $0x10] sm:$0xff]  ;;  %v5417_v46 = vld [vmem:[#allocation94_spill] sm:$0xff] }
 0x679   :  { %1477 = vmatpush.msrb.mxu0 %v1187_v8  ;;  %1500 = vmatpush.msrb.mxu1 %v1240_v7  ;;  %v5433_v7 = vld [vmem:[#allocation108_spill] sm:$0xff]  ;;  %v5434_v8 = vld [vmem:[#allocation109_spill] sm:$0xff] }
 0x67a   :  { %1520 = vmatpush.msrb.mxu2 %v1302_v50  ;;  %1543 = vmatpush.msrb.mxu3 %v1355_v49  ;;  %v5418_v49 = vld [vmem:[#allocation95_spill] sm:$0xff]  ;;  %v5419_v50 = vld [vmem:[#allocation8_spill] sm:$0xff] }
 0x67b   :  { %1478 = vmatpush.msrb.mxu0 %v1184_v26  ;;  %1501 = vmatpush.msrb.mxu1 %v1237_v56  ;;  %v5453_v56 = vld [vmem:[#allocation128_spill] sm:$0xff]  ;;  %v2733_v26 = vld [vmem:[%s5038_s2 + $0x80] sm:$0xff] }
 0x67c   :  { %1521 = vmatpush.msrb.mxu2 %v1299_v54  ;;  %1544 = vmatpush.msrb.mxu3 %v1352_v53  ;;  %v5423_v53 = vld [vmem:[#allocation98_spill] sm:$0xff]  ;;  %v5424_v54 = vld [vmem:[#allocation99_spill] sm:$0xff] }
 0x67d   :  { %1479 = vmatpush.msrb.mxu0 %v1181_v47  ;;  %1502 = vmatpush.msrb.mxu1 %v1234_v41  ;;  %v2729_v47 = vld [vmem:[%s5038_s2 + $0x88] sm:$0xff] }
 0x67e   :  { %1522 = vmatpush.msrb.mxu2 %v1296_v62  ;;  %1545 = vmatpush.msrb.mxu3 %v1349_v61  ;;  %v5427_v61 = vld [vmem:[#allocation102_spill] sm:$0xff]  ;;  %v5428_v62 = vld [vmem:[#allocation103_spill] sm:$0xff]  ;;  %v2730_v41 = vld [vmem:[%s5038_s2 + $0x108] sm:$0xff] }
 0x67f   :  { %1480 = vmatpush.msrb.mxu0 %v1178_v37  ;;  %1503 = vmatpush.msrb.mxu1 %v1231_v16  ;;  %v2725_v37 = vld [vmem:[%s5038_s2 + $0x90] sm:$0xff] }
 0x680   :  { %1523 = vmatpush.msrb.mxu2 %v1293_v6  ;;  %1546 = vmatpush.msrb.mxu3 %v1346_v5  ;;  %v5431_v5 = vld [vmem:[#allocation106_spill] sm:$0xff]  ;;  %v5432_v6 = vld [vmem:[#allocation107_spill] sm:$0xff]  ;;  %v2726_v16 = vld [vmem:[%s5038_s2 + $0x110] sm:$0xff] }
 0x681   :  { %1481 = vmatpush.msrb.mxu0 %v1175_v24  ;;  %1504 = vmatpush.msrb.mxu1 %v1228_v36  ;;  %v2721_v24 = vld [vmem:[%s5038_s2 + $0x98] sm:$0xff] }
 0x682   :  { %1524 = vmatpush.msrb.mxu2 %v1290_v10  ;;  %1547 = vmatpush.msrb.mxu3 %v1343_v9  ;;  %v5435_v9 = vld [vmem:[#allocation110_spill] sm:$0xff]  ;;  %v5436_v10 = vld [vmem:[#allocation111_spill] sm:$0xff] }
 0x683   :  { %1482 = vmatpush.msrb.mxu0 %v4263_v3  ;;  %1505 = vmatpush.msrb.mxu1 %v4265_v1  ;;  %v2717_v3 = vld [vmem:[%s5038_s2 + $0xa0] sm:$0xff]  ;;  %v2722_v36 = vld [vmem:[%s5038_s2 + $0x118] sm:$0xff] }
 0x684   :  { %1525 = vmatpush.msrb.mxu2 %v1287_v27  ;;  %1548 = vmatpush.msrb.mxu3 %v1340_v25  ;;  %v2718_v1 = vld [vmem:[%s5038_s2 + $0x120] sm:$0xff]  ;;  %v2731_v27 = vld [vmem:[%s5038_s2 + $0x188] sm:$0xff] }
 0x685   :  { %1483 = vmatpush.msrb.mxu0 %v4255_v12  ;;  %1506 = vmatpush.msrb.mxu1 %v4257_v14  ;;  %v2715_v12 = vld [vmem:[%s5038_s2 + $0xa8] sm:$0xff]  ;;  %v5457_v14 = vld [vmem:[#allocation3_spill] sm:$0xff] }
 0x686   :  { %1526 = vmatpush.msrb.mxu2 %v4275_v22  ;;  %1549 = vmatpush.msrb.mxu3 %v4277_v38  ;;  %v2727_v22 = vld [vmem:[%s5038_s2 + $0x190] sm:$0xff]  ;;  %v2728_v38 = vld [vmem:[%s5038_s2 + $0x8] sm:$0xff]  ;;  %v2732_v25 = vld [vmem:[%s5038_s2] sm:$0xff] }
 0x687   :  { %1484 = vmatpush.msrb.mxu0 %v4247_v23  ;;  %1507 = vmatpush.msrb.mxu1 %v4249_v18  ;;  %v5454_v23 = vld [vmem:[#allocation129_spill] sm:$0xff]  ;;  %v5455_v18 = vld [vmem:[#allocation130_spill] sm:$0xff] }
 0x688   :  { %1527 = vmatpush.msrb.mxu2 %v4271_v59  ;;  %1550 = vmatpush.msrb.mxu3 %v4273_v48  ;;  %v2723_v59 = vld [vmem:[%s5038_s2 + $0x198] sm:$0xff]  ;;  %v2724_v48 = vld [vmem:[%s5038_s2 + $0x10] sm:$0xff] }
 0x689   :  { %1485 = vmatpush.msrb.mxu0 %v4144_v19  ;;  %1508 = vmatpush.msrb.mxu1 %v4147_v35  ;;  %v5449_v19 = vld [vmem:[#allocation124_spill] sm:$0xff]  ;;  %v5450_v35 = vld [vmem:[#allocation125_spill] sm:$0xff] }
 0x68a   :  { %1528 = vmatpush.msrb.mxu2 %v4267_v17  ;;  %1551 = vmatpush.msrb.mxu3 %v4269_v31  ;;  %v2719_v17 = vld [vmem:[%s5038_s2 + $0x1a0] sm:$0xff]  ;;  %v2720_v31 = vld [vmem:[%s5038_s2 + $0x18] sm:$0xff] }
 0x68b   :  { %1486 = vmatpush.msrb.mxu0 %v4128_v29  ;;  %1509 = vmatpush.msrb.mxu1 %v4131_v30  ;;  %v5445_v29 = vld [vmem:[#allocation120_spill] sm:$0xff]  ;;  %v5446_v30 = vld [vmem:[#allocation121_spill] sm:$0xff] }
 0x68c   :  { %1529 = vmatpush.msrb.mxu2 %v4259_v15  ;;  %1552 = vmatpush.msrb.mxu3 %v4261_v21  ;;  %v5458_v15 = vld [vmem:[#allocation4_spill] sm:$0xff]  ;;  %v2716_v21 = vld [vmem:[%s5038_s2 + $0x20] sm:$0xff] }
 0x68d   :  { %1487 = vmatpush.msrb.mxu0 %v4112_v28  ;;  %1510 = vmatpush.msrb.mxu1 %v4115_v0  ;;  %v5441_v28 = vld [vmem:[#allocation116_spill] sm:$0xff]  ;;  %v5442_v0 = vld [vmem:[#allocation117_spill] sm:$0xff] }
 0x68e   :  { %1530 = vmatpush.msrb.mxu2 %v4251_v20  ;;  %1553 = vmatpush.msrb.mxu3 %v4253_v11  ;;  %v5456_v20 = vld [vmem:[#allocation131_spill] sm:$0xff]  ;;  %v2714_v11 = vld [vmem:[%s5038_s2 + $0x28] sm:$0xff] }
 0x68f   :  { %1488 = vmatpush.msrb.mxu0 %v4096_v32  ;;  %1511 = vmatpush.msrb.mxu1 %v4099_v4  ;;  %v5437_v32 = vld [vmem:[#allocation112_spill] sm:$0xff]  ;;  %v5438_v4 = vld [vmem:[#allocation113_spill] sm:$0xff] }
 0x690   :  { %1531 = vmatpush.msrb.mxu2 %v4150_v34  ;;  %1554 = vmatpush.msrb.mxu3 %v4153_v40  ;;  %v5451_v34 = vld [vmem:[#allocation126_spill] sm:$0xff]  ;;  %v5452_v40 = vld [vmem:[#allocation127_spill] sm:$0xff] }
 0x691   :  { %1489 = vmatmul.f32.vlgmr.msrb.gmra.mxu0 %v911_v45  ;;  %1512 = vmatmul.f32.vlgmr.msrb.gmra.mxu1 %v911_v45 }
 0x692   :  { %1532 = vmatpush.msrb.mxu2 %v4134_v39  ;;  %1555 = vmatpush.msrb.mxu3 %v4137_v60  ;;  %v5447_v39 = vld [vmem:[#allocation122_spill] sm:$0xff]  ;;  %v5448_v60 = vld [vmem:[#allocation123_spill] sm:$0xff] }
 0x693   :  { %1693 = vmatpush.msra.mxu0 %v3747_v43  ;;  %1722 = vmatpush.msra.mxu1 %v3753_v44  ;;  %v912_v43 = vld [vmem:[%s5042_s5 + $0x18] sm:$0xff]  ;;  %v5422_v44 = vld [vmem:[#allocation97_spill] sm:$0xff] }
 0x694   :  { %1533 = vmatpush.msrb.mxu2 %v4118_v33  ;;  %1556 = vmatpush.msrb.mxu3 %v4121_v57  ;;  %v5443_v33 = vld [vmem:[#allocation118_spill] sm:$0xff]  ;;  %v5444_v57 = vld [vmem:[#allocation119_spill] sm:$0xff] }
 0x695   :  { %1694 = vmatpush.msra.mxu0 %v5417_v46  ;;  %1723 = vmatpush.msra.mxu1 %v5418_v49  ;;  %v2735_v46 = vld [vmem:[%s5038_s2 + $0x180] sm:$0xff] }
 0x696   :  { %1534 = vmatpush.msrb.mxu2 %v5419_v50  ;;  %1557 = vmatpush.msrb.mxu3 %v5420_v51  ;;  %v2736_v49 = vld [vmem:[%s5041_s3 + $0x1e0] sm:$0xff]  ;;  %v2737_v50 = vld [vmem:[%s5041_s3 + $0x1e8] sm:$0xff]  ;;  %v2738_v51 = vld [vmem:[%s5041_s3 + $0x1f0] sm:$0xff] }
 0x697   :  { %1535 = vmatmul.f32.vlgmr.msrb.gmra.mxu2 %v911_v45  ;;  %1558 = vmatmul.f32.vlgmr.msrb.gmra.mxu3 %v911_v45  ;;  %v2734_v45 = vld [vmem:[%s5038_s2 + $0x100] sm:$0xff] }
 0x698   :  { %1751 = vmatpush.msra.mxu2 %v5421_v52  ;;  %1780 = vmatpush.msra.mxu3 %v5422_v44  ;;  %v2740_v52 = vld [vmem:[%s5041_s3 + $0x1c0] sm:$0xff]  ;;  %v2741_v44 = vld [vmem:[%s5041_s3 + $0x1c8] sm:$0xff] }
 0x699   :  { %1492 = vmatmul.f32.gmra.mxu0 %v912_v43  ;;  %1515 = vmatmul.f32.gmra.mxu1 %v912_v43 }
 0x69a   :  { %1752 = vmatpush.msra.mxu2 %v5423_v53  ;;  %1781 = vmatpush.msra.mxu3 %v5424_v54  ;;  %v2742_v53 = vld [vmem:[%s5041_s3 + $0x1d0] sm:$0xff]  ;;  %v2743_v54 = vld [vmem:[%s5041_s3 + $0x1d8] sm:$0xff] }
 0x69b   :  { %1695 = vmatpush.msra.mxu0 %v5425_v55  ;;  %1724 = vmatpush.msra.mxu1 %v5426_v58  ;;  %v2744_v55 = vld [vmem:[%s5041_s3 + $0x1a0] sm:$0xff]  ;;  %v2745_v58 = vld [vmem:[%s5041_s3 + $0x1a8] sm:$0xff] }
 0x69c   :  { %1753 = vmatpush.msra.mxu2 %v5427_v61  ;;  %1782 = vmatpush.msra.mxu3 %v5428_v62  ;;  %v2746_v61 = vld [vmem:[%s5041_s3 + $0x1b0] sm:$0xff]  ;;  %v2747_v62 = vld [vmem:[%s5041_s3 + $0x1b8] sm:$0xff] }
 0x69d   :  { %1696 = vmatpush.msra.mxu0 %v5429_v63  ;;  %1725 = vmatpush.msra.mxu1 %v5430_v2  ;;  %v2748_v63 = vld [vmem:[%s5041_s3 + $0x180] sm:$0xff]  ;;  %v2749_v2 = vld [vmem:[%s5041_s3 + $0x188] sm:$0xff] }
 0x69e   :  { %1754 = vmatpush.msra.mxu2 %v5431_v5  ;;  %1783 = vmatpush.msra.mxu3 %v5432_v6  ;;  %v2750_v5 = vld [vmem:[%s5041_s3 + $0x190] sm:$0xff]  ;;  %v2751_v6 = vld [vmem:[%s5041_s3 + $0x198] sm:$0xff] }
 0x69f   :  { %1538 = vmatmul.f32.gmra.mxu2 %v912_v43  ;;  %1561 = vmatmul.f32.gmra.mxu3 %v912_v43  ;;  %v2739_v43 = vld [vmem:[%s5041_s3 + $0x1f8] sm:$0xff] }
 0x6a0   :  { %1697 = vmatpush.msra.mxu0 %v5433_v7  ;;  %1726 = vmatpush.msra.mxu1 %v5434_v8  ;;  %v2752_v7 = vld [vmem:[%s5041_s3 + $0x160] sm:$0xff]  ;;  %v2753_v8 = vld [vmem:[%s5041_s3 + $0x168] sm:$0xff] }
 0x6a1   :  { %1755 = vmatpush.msra.mxu2 %v5435_v9  ;;  %1784 = vmatpush.msra.mxu3 %v5436_v10  ;;  %v2754_v9 = vld [vmem:[%s5041_s3 + $0x170] sm:$0xff]  ;;  %v2755_v10 = vld [vmem:[%s5041_s3 + $0x178] sm:$0xff] }
 0x6a2   :  { %1698 = vmatpush.msra.mxu0 %v5437_v32  ;;  %1727 = vmatpush.msra.mxu1 %v5438_v4  ;;  %v2756_v32 = vld [vmem:[%s5041_s3 + $0x140] sm:$0xff]  ;;  %v2757_v4 = vld [vmem:[%s5041_s3 + $0x148] sm:$0xff] }
 0x6a3   :  { %1756 = vmatpush.msra.mxu2 %v5439_v13  ;;  %1785 = vmatpush.msra.mxu3 %v5440_v42  ;;  %v2758_v13 = vld [vmem:[%s5041_s3 + $0x150] sm:$0xff]  ;;  %v2759_v42 = vld [vmem:[%s5041_s3 + $0x158] sm:$0xff] }
 0x6a4   :  { %1699 = vmatpush.msra.mxu0 %v5441_v28  ;;  %1728 = vmatpush.msra.mxu1 %v5442_v0  ;;  %v2760_v28 = vld [vmem:[%s5041_s3 + $0x120] sm:$0xff]  ;;  %v2761_v0 = vld [vmem:[%s5041_s3 + $0x128] sm:$0xff] }
 0x6a5   :  { %1757 = vmatpush.msra.mxu2 %v5443_v33  ;;  %1786 = vmatpush.msra.mxu3 %v5444_v57  ;;  %v2762_v33 = vld [vmem:[%s5041_s3 + $0x130] sm:$0xff]  ;;  %v2763_v57 = vld [vmem:[%s5041_s3 + $0x138] sm:$0xff] }
 0x6a6   :  { %1700 = vmatpush.msra.mxu0 %v5445_v29  ;;  %1729 = vmatpush.msra.mxu1 %v5446_v30  ;;  %v2764_v29 = vld [vmem:[%s5041_s3 + $0x100] sm:$0xff]  ;;  %v2765_v30 = vld [vmem:[%s5041_s3 + $0x108] sm:$0xff] }
 0x6a7   :  { %1758 = vmatpush.msra.mxu2 %v5447_v39  ;;  %1787 = vmatpush.msra.mxu3 %v5448_v60  ;;  %v2766_v39 = vld [vmem:[%s5041_s3 + $0x110] sm:$0xff]  ;;  %v2767_v60 = vld [vmem:[%s5041_s3 + $0x118] sm:$0xff] }
 0x6a8   :  { %1701 = vmatpush.msra.mxu0 %v5449_v19  ;;  %1730 = vmatpush.msra.mxu1 %v5450_v35  ;;  %v2768_v19 = vld [vmem:[%s5041_s3 + $0xe0] sm:$0xff]  ;;  %v2769_v35 = vld [vmem:[%s5041_s3 + $0xe8] sm:$0xff] }
 0x6a9   :  { %1759 = vmatpush.msra.mxu2 %v5451_v34  ;;  %1788 = vmatpush.msra.mxu3 %v5452_v40  ;;  %v2770_v34 = vld [vmem:[%s5041_s3 + $0xf0] sm:$0xff]  ;;  %v2771_v40 = vld [vmem:[%s5041_s3 + $0xf8] sm:$0xff] }
 0x6aa   :  { %1702 = vmatpush.msra.mxu0 %v5453_v56  ;;  %1731 = vmatpush.msra.mxu1 %v5454_v23  ;;  %v2772_v56 = vld [vmem:[%s5041_s3 + $0xc0] sm:$0xff]  ;;  %v2773_v23 = vld [vmem:[%s5041_s3 + $0xc8] sm:$0xff] }
 0x6ab   :  { %1760 = vmatpush.msra.mxu2 %v5455_v18  ;;  %1789 = vmatpush.msra.mxu3 %v5456_v20  ;;  %v2774_v18 = vld [vmem:[%s5041_s3 + $0xd0] sm:$0xff]  ;;  %v2775_v20 = vld [vmem:[%s5041_s3 + $0xd8] sm:$0xff] }
 0x6ac   :  { %1703 = vmatpush.msra.mxu0 %v2714_v11  ;;  %1732 = vmatpush.msra.mxu1 %v2715_v12  ;;  %v2776_v11 = vld [vmem:[%s5041_s3 + $0xa0] sm:$0xff]  ;;  %v2777_v12 = vld [vmem:[%s5041_s3 + $0xa8] sm:$0xff] }
 0x6ad   :  { %1761 = vmatpush.msra.mxu2 %v5457_v14  ;;  %1790 = vmatpush.msra.mxu3 %v5458_v15  ;;  %v2778_v14 = vld [vmem:[%s5041_s3 + $0xb0] sm:$0xff]  ;;  %v2779_v15 = vld [vmem:[%s5041_s3 + $0xb8] sm:$0xff] }
 0x6ae   :  { %1704 = vmatpush.msra.mxu0 %v2716_v21  ;;  %1733 = vmatpush.msra.mxu1 %v2717_v3  ;;  %v2780_v21 = vld [vmem:[%s5041_s3 + $0x80] sm:$0xff]  ;;  %v2781_v3 = vld [vmem:[%s5041_s3 + $0x88] sm:$0xff] }
 0x6af   :  { %1762 = vmatpush.msra.mxu2 %v2718_v1  ;;  %1791 = vmatpush.msra.mxu3 %v2719_v17  ;;  %v2782_v1 = vld [vmem:[%s5041_s3 + $0x90] sm:$0xff]  ;;  %v2783_v17 = vld [vmem:[%s5041_s3 + $0x98] sm:$0xff] }
 0x6b0   :  { %1705 = vmatpush.msra.mxu0 %v2720_v31  ;;  %1734 = vmatpush.msra.mxu1 %v2721_v24  ;;  %v2784_v31 = vld [vmem:[%s5041_s3 + $0x60] sm:$0xff]  ;;  %v2785_v24 = vld [vmem:[%s5041_s3 + $0x68] sm:$0xff] }
 0x6b1   :  { %1763 = vmatpush.msra.mxu2 %v2722_v36  ;;  %1792 = vmatpush.msra.mxu3 %v2723_v59  ;;  %v2786_v36 = vld [vmem:[%s5041_s3 + $0x70] sm:$0xff]  ;;  %v2787_v59 = vld [vmem:[%s5041_s3 + $0x78] sm:$0xff] }
 0x6b2   :  { %1706 = vmatpush.msra.mxu0 %v2724_v48  ;;  %1735 = vmatpush.msra.mxu1 %v2725_v37  ;;  %v2788_v48 = vld [vmem:[%s5041_s3 + $0x40] sm:$0xff]  ;;  %v2789_v37 = vld [vmem:[%s5041_s3 + $0x48] sm:$0xff] }
 0x6b3   :  { %1764 = vmatpush.msra.mxu2 %v2726_v16  ;;  %1793 = vmatpush.msra.mxu3 %v2727_v22  ;;  %v2790_v16 = vld [vmem:[%s5041_s3 + $0x50] sm:$0xff]  ;;  %v2791_v22 = vld [vmem:[%s5041_s3 + $0x58] sm:$0xff] }
 0x6b4   :  { %1707 = vmatpush.msra.mxu0 %v2728_v38  ;;  %1736 = vmatpush.msra.mxu1 %v2729_v47  ;;  %v2792_v38 = vld [vmem:[%s5041_s3 + $0x20] sm:$0xff]  ;;  %v2793_v47 = vld [vmem:[%s5041_s3 + $0x28] sm:$0xff] }
 0x6b5   :  { %1765 = vmatpush.msra.mxu2 %v2730_v41  ;;  %1794 = vmatpush.msra.mxu3 %v2731_v27  ;;  %v2794_v41 = vld [vmem:[%s5041_s3 + $0x30] sm:$0xff]  ;;  %v2795_v27 = vld [vmem:[%s5041_s3 + $0x38] sm:$0xff] }
 0x6b6   :  { %1708 = vmatpush.msra.mxu0 %v2732_v25  ;;  %1737 = vmatpush.msra.mxu1 %v2733_v26  ;;  %v2796_v25 = vld [vmem:[%s5041_s3] sm:$0xff]  ;;  %v2797_v26 = vld [vmem:[%s5041_s3 + $0x8] sm:$0xff] }
 0x6b7   :  { %1766 = vmatpush.msra.mxu2 %v2734_v45  ;;  %1795 = vmatpush.msra.mxu3 %v2735_v46  ;;  %v2798_v45 = vld [vmem:[%s5041_s3 + $0x10] sm:$0xff]  ;;  %v2799_v46 = vld [vmem:[%s5041_s3 + $0x18] sm:$0xff] }
 0x6b8   :  { %1881 = vmatpush.msrb.mxu0 %v2736_v49  ;;  %1934 = vmatpush.msrb.mxu1 %v2737_v50 }
 0x6b9   :  { %1987 = vmatpush.msrb.mxu2 %v2738_v51  ;;  %2040 = vmatpush.msrb.mxu3 %v2739_v43 }
 0x6ba   :  { %1882 = vmatpush.msrb.mxu0 %v2740_v52  ;;  %1935 = vmatpush.msrb.mxu1 %v2741_v44 }
 0x6bb   :  { %1988 = vmatpush.msrb.mxu2 %v2742_v53  ;;  %2041 = vmatpush.msrb.mxu3 %v2743_v54 }
 0x6bc   :  { %1883 = vmatpush.msrb.mxu0 %v2744_v55  ;;  %1936 = vmatpush.msrb.mxu1 %v2745_v58 }
 0x6bd   :  { %1989 = vmatpush.msrb.mxu2 %v2746_v61  ;;  %2042 = vmatpush.msrb.mxu3 %v2747_v62 }
 0x6be   :  { %1884 = vmatpush.msrb.mxu0 %v2748_v63  ;;  %1937 = vmatpush.msrb.mxu1 %v2749_v2 }
 0x6bf   :  { %1990 = vmatpush.msrb.mxu2 %v2750_v5  ;;  %2043 = vmatpush.msrb.mxu3 %v2751_v6 }
 0x6c0   :  { %1885 = vmatpush.msrb.mxu0 %v2752_v7  ;;  %1938 = vmatpush.msrb.mxu1 %v2753_v8 }
 0x6c1   :  { %1991 = vmatpush.msrb.mxu2 %v2754_v9  ;;  %2044 = vmatpush.msrb.mxu3 %v2755_v10 }
 0x6c2   :  { %1886 = vmatpush.msrb.mxu0 %v2756_v32  ;;  %1939 = vmatpush.msrb.mxu1 %v2757_v4 }
 0x6c3   :  { %1992 = vmatpush.msrb.mxu2 %v2758_v13  ;;  %2045 = vmatpush.msrb.mxu3 %v2759_v42  ;;  %v5459_v42 = vld [vmem:[#allocation7_spill] sm:$0xff] }
 0x6c4   :  { %1887 = vmatpush.msrb.mxu0 %v2760_v28  ;;  %1940 = vmatpush.msrb.mxu1 %v2761_v0 }
 0x6c5   :  { %1993 = vmatpush.msrb.mxu2 %v2762_v33  ;;  %2046 = vmatpush.msrb.mxu3 %v2763_v57 }
 0x6c6   :  { %1888 = vmatpush.msrb.mxu0 %v2764_v29  ;;  %1941 = vmatpush.msrb.mxu1 %v2765_v30 }
 0x6c7   :  { %1994 = vmatpush.msrb.mxu2 %v2766_v39  ;;  %2047 = vmatpush.msrb.mxu3 %v2767_v60 }
 0x6c8   :  { %1889 = vmatpush.msrb.mxu0 %v2768_v19  ;;  %1942 = vmatpush.msrb.mxu1 %v2769_v35 }
 0x6c9   :  { %1995 = vmatpush.msrb.mxu2 %v2770_v34  ;;  %2048 = vmatpush.msrb.mxu3 %v2771_v40 }
 0x6ca   :  { %1890 = vmatpush.msrb.mxu0 %v2772_v56  ;;  %1943 = vmatpush.msrb.mxu1 %v2773_v23 }
 0x6cb   :  { %1996 = vmatpush.msrb.mxu2 %v2774_v18  ;;  %2049 = vmatpush.msrb.mxu3 %v2775_v20 }
 0x6cc   :  { %1891 = vmatpush.msrb.mxu0 %v2776_v11  ;;  %1944 = vmatpush.msrb.mxu1 %v2777_v12 }
 0x6cd   :  { %1997 = vmatpush.msrb.mxu2 %v2778_v14  ;;  %2050 = vmatpush.msrb.mxu3 %v2779_v15 }
 0x6ce   :  { %1892 = vmatpush.msrb.mxu0 %v2780_v21  ;;  %1945 = vmatpush.msrb.mxu1 %v2781_v3 }
 0x6cf   :  { %1998 = vmatpush.msrb.mxu2 %v2782_v1  ;;  %2051 = vmatpush.msrb.mxu3 %v2783_v17 }
 0x6d0   :  { %1893 = vmatpush.msrb.mxu0 %v2784_v31  ;;  %1946 = vmatpush.msrb.mxu1 %v2785_v24 }
 0x6d1   :  { %1999 = vmatpush.msrb.mxu2 %v2786_v36  ;;  %2052 = vmatpush.msrb.mxu3 %v2787_v59 }
 0x6d2   :  { %1894 = vmatpush.msrb.mxu0 %v2788_v48  ;;  %1947 = vmatpush.msrb.mxu1 %v2789_v37 }
 0x6d3   :  { %2000 = vmatpush.msrb.mxu2 %v2790_v16  ;;  %2053 = vmatpush.msrb.mxu3 %v2791_v22 }
 0x6d4   :  { %1895 = vmatpush.msrb.mxu0 %v2792_v38  ;;  %1948 = vmatpush.msrb.mxu1 %v2793_v47 }
 0x6d5   :  { %2001 = vmatpush.msrb.mxu2 %v2794_v41  ;;  %2054 = vmatpush.msrb.mxu3 %v2795_v27 }
 0x6d6   :  { %1896 = vmatpush.msrb.mxu0 %v2796_v25  ;;  %1949 = vmatpush.msrb.mxu1 %v2797_v26 }
 0x6d7   :  { %2002 = vmatpush.msrb.mxu2 %v2798_v45  ;;  %2055 = vmatpush.msrb.mxu3 %v2799_v46 }
 0x70e   :  { %v1490_v49 = vpop.f32.mrf.mxu0  ;;  %v1513_v50 = vpop.f32.mrf.mxu1 }
 0x70f   :  { %v1565_v51 = vmax.f32 %v1490_v49, 0.0  ;;  %v1566_v43 = vmax.f32 %v1513_v50, 0.0 }
 0x711   :  { %v1573_v52 = vadd.f32 %v1566_v43, %v1565_v51 }
 0x716   :  { %v1493_v44 = vpop.f32.mrf.mxu0  ;;  %v1516_v53 = vpop.f32.mrf.mxu1 }
 0x717   :  { %v1569_v63 = vmax.f32 %v1493_v44, 0.0  ;;  %v1570_v2 = vmax.f32 %v1516_v53, 0.0  ;;  %v5460_v53 = vld [vmem:[#allocation22_spill] sm:$0xff] }
 0x719   :  { %v1578_v6 = vadd.f32 %v1570_v2, %v1569_v63 }
 0x71a   :  { %v1536_v54 = vpop.f32.mrf.mxu2  ;;  %v1559_v55 = vpop.f32.mrf.mxu3 }
 0x71b   :  { %v1567_v58 = vmax.f32 %v1536_v54, 0.0  ;;  %v1568_v61 = vmax.f32 %v1559_v55, 0.0  ;;  %v5461_v55 = vld [vmem:[#allocation23_spill] sm:$0xff] }
 0x71d   :  { %v1574_v62 = vadd.f32 %v1573_v52, %v1567_v58 }
 0x71f   :  { %v1575_v5 = vadd.f32 %v1574_v62, %v1568_v61 }
 0x721   :  { %1576 = vadd.xlane.f32.xlu2 %v1575_v5 }
 0x722   :  { %v1539_v7 = vpop.f32.mrf.mxu2  ;;  %v1562_v8 = vpop.f32.mrf.mxu3 }
 0x723   :  { %v1571_v9 = vmax.f32 %v1539_v7, 0.0  ;;  %v1572_v10 = vmax.f32 %v1562_v8, 0.0 }
 0x725   :  { %v1579_v32 = vadd.f32 %v1578_v6, %v1571_v9 }
 0x727   :  { %v1580_v4 = vadd.f32 %v1579_v32, %v1572_v10 }
 0x729   :  { %1581 = vadd.xlane.f32.xlu1 %v1580_v4 }
 0x794   :  { %v1577_v13 = vpop.xlane.xlu2 %1576 }
 0x795   :  { %v1583_v28 = vmul.f32 %v1577_v13, %v5459_v42 }
 0x797   :  { %v1585_v0 = vsub.f32 %v1565_v51, %v1583_v28  ;;  %v1586_v33 = vsub.f32 %v1566_v43, %v1583_v28  ;;  %v1587_v57 = vsub.f32 %v1567_v58, %v1583_v28  ;;  %v1588_v29 = vsub.f32 %v1568_v61, %v1583_v28  ;;  %v5462_v61 = vld [vmem:[#allocation16_spill] sm:$0xff] }
 0x799   :  { %v1593_v30 = vmul.f32 %v1585_v0, %v1585_v0  ;;  %v1594_v39 = vmul.f32 %v1586_v33, %v1586_v33  ;;  %v1595_v60 = vmul.f32 %v1587_v57, %v1587_v57  ;;  %v1596_v40 = vmul.f32 %v1588_v29, %v1588_v29 }
 0x79b   :  { %v1601_v19 = vadd.f32 %v1594_v39, %v1593_v30 }
 0x79c   :  { %v1582_v35 = vpop.xlane.xlu1 %1581 }
 0x79d   :  { %v1584_v34 = vmul.f32 %v1582_v35, %v5459_v42  ;;  %v1602_v56 = vadd.f32 %v1601_v19, %v1595_v60 }
 0x79f   :  { %v1589_v23 = vsub.f32 %v1569_v63, %v1584_v34  ;;  %v1590_v18 = vsub.f32 %v1570_v2, %v1584_v34  ;;  %v1603_v20 = vadd.f32 %v1602_v56, %v1596_v40  ;;  %v1591_v11 = vsub.f32 %v1571_v9, %v1584_v34  ;;  %v5463_v63 = vld [vmem:[#allocation17_spill] sm:$0xff] }
 0x7a0   :  { %v1592_v12 = vsub.f32 %v1572_v10, %v1584_v34 }
 0x7a1   :  { %1604 = vadd.xlane.f32.xlu0 %v1603_v20  ;;  %v1597_v14 = vmul.f32 %v1589_v23, %v1589_v23  ;;  %v1598_v15 = vmul.f32 %v1590_v18, %v1590_v18  ;;  %v1599_v21 = vmul.f32 %v1591_v11, %v1591_v11 }
 0x7a2   :  { %v1600_v1 = vmul.f32 %v1592_v12, %v1592_v12 }
 0x7a3   :  { %v1606_v3 = vadd.f32 %v1598_v15, %v1597_v14 }
 0x7a5   :  { %v1607_v17 = vadd.f32 %v1606_v3, %v1599_v21 }
 0x7a7   :  { %v1608_v31 = vadd.f32 %v1607_v17, %v1600_v1 }
 0x7a9   :  { %1609 = vadd.xlane.f32.xlu2 %v1608_v31 }
 0x814   :  { %v1605_v24 = vpop.xlane.xlu0 %1604 }
 0x815   :  { %v1611_v36 = vmul.f32 %v1605_v24, %v5459_v42 }
 0x817   :  { %v1613_v59 = vadd.f32 1e-05, %v1611_v36 }
 0x819   :  { %2664 = vrsqrt.f32 %v1613_v59  ;;  %vm1621_vm12 = vweird.f32 %v1613_v59 }
 0x81c   :  { %v1610_v48 = vpop.xlane.xlu2 %1609 }
 0x81d   :  { %v1612_v37 = vmul.f32 %v1610_v48, %v5459_v42 }
 0x81f   :  { %v2665_v16 = vpop.eup %2664  ;;  %v1614_v22 = vadd.f32 1e-05, %v1612_v37 }
 0x820   :  { %v1616_v38 = vmul.f32 %v2665_v16, %v1613_v59  ;;  %vm1622_vm11 = vweird.f32 %v2665_v16 }
 0x821   :  { %2666 = vrsqrt.f32 %v1614_v22  ;;  %vm1623_vm13 = vmor %vm1621_vm12, %vm1622_vm11  ;;  %vm1631_vm15 = vweird.f32 %v1614_v22 }
 0x822   :  { %v1617_v47 = vmul.f32 %v2665_v16, %v1616_v38 }
 0x824   :  { %v1618_v41 = vmul.f32 0.5, %v1617_v47 }
 0x826   :  { %v1619_v27 = vsub.f32 1.5, %v1618_v41 }
 0x827   :  { %v2667_v25 = vpop.eup %2666 }
 0x828   :  { %v1620_v26 = vmul.f32 %v2665_v16, %v1619_v27  ;;  %v1626_v45 = vmul.f32 %v2667_v25, %v1614_v22  ;;  %vm1632_vm14 = vweird.f32 %v2667_v25 }
 0x829   :  { %vm1633_vm4 = vmor %vm1631_vm15, %vm1632_vm14 }
 0x82a   :  { %v1624_v46 = vsel %vm1623_vm13, %v2665_v16, %v1620_v26  ;;  %v1627_v49 = vmul.f32 %v2667_v25, %v1626_v45 }
 0x82b   :  { %v1635_v50 = vmul.f32 %v1624_v46, %v1585_v0  ;;  %v1636_v51 = vmul.f32 %v1624_v46, %v1586_v33  ;;  %v1637_v43 = vmul.f32 %v1624_v46, %v1587_v57  ;;  %v1638_v52 = vmul.f32 %v1624_v46, %v1588_v29 }
 0x82c   :  { %v1628_v44 = vmul.f32 0.5, %v1627_v49 }
 0x82d   :  { %v4622_v54 = vmul.f32 %v1635_v50, %v5460_v53  ;;  %v4625_v58 = vmul.f32 %v1636_v51, %v5461_v55  ;;  %v4628_v62 = vmul.f32 %v1637_v43, %v5462_v61  ;;  %v4631_v2 = vmul.f32 %v1638_v52, %v5463_v63 }
 0x82e   :  { %v1629_v5 = vsub.f32 1.5, %v1628_v44 }
 0x82f   :  { %1709 = vmatmul.f32.vlgmr.msra.gmra.mxu0 %v4622_v54  ;;  %1738 = vmatmul.f32.vlgmr.msra.gmra.mxu1 %v4625_v58  ;;  %v4654_v0 = vsub.f32 %v1635_v50, %v4622_v54  ;;  %v4657_v33 = vsub.f32 %v1636_v51, %v4625_v58  ;;  %v4660_v57 = vsub.f32 %v1637_v43, %v4628_v62 }
 0x830   :  { %v1630_v6 = vmul.f32 %v2667_v25, %v1629_v5  ;;  %1767 = vmatmul.f32.vlgmr.msra.gmra.mxu2 %v4628_v62  ;;  %1796 = vmatmul.f32.vlgmr.msra.gmra.mxu3 %v4631_v2  ;;  %v4663_v29 = vsub.f32 %v1638_v52, %v4631_v2 }
 0x832   :  { %v1634_v7 = vsel %vm1633_vm4, %v2667_v25, %v1630_v6 }
 0x833   :  { %v1639_v8 = vmul.f32 %v1634_v7, %v1589_v23  ;;  %v1640_v9 = vmul.f32 %v1634_v7, %v1590_v18  ;;  %v1641_v10 = vmul.f32 %v1634_v7, %v1591_v11  ;;  %v1642_v32 = vmul.f32 %v1634_v7, %v1592_v12 }
 0x835   :  { %v4638_v4 = vmul.f32 %v1639_v8, %v5460_v53  ;;  %v4641_v13 = vmul.f32 %v1640_v9, %v5461_v55  ;;  %v4644_v42 = vmul.f32 %v1641_v10, %v5462_v61  ;;  %v4647_v28 = vmul.f32 %v1642_v32, %v5463_v63 }
 0x837   :  { %1712 = vmatmul.f32.gmra.mxu0 %v4638_v4  ;;  %1741 = vmatmul.f32.gmra.mxu1 %v4641_v13  ;;  %v4670_v30 = vsub.f32 %v1639_v8, %v4638_v4  ;;  %v4673_v39 = vsub.f32 %v1640_v9, %v4641_v13  ;;  %v4676_v60 = vsub.f32 %v1641_v10, %v4644_v42 }
 0x838   :  { %1770 = vmatmul.f32.gmra.mxu2 %v4644_v42  ;;  %1799 = vmatmul.f32.gmra.mxu3 %v4647_v28  ;;  %v4679_v19 = vsub.f32 %v1642_v32, %v4647_v28 }
 0x83f   :  { %1715 = vmatmul.f32.gmra.mxu0 %v4654_v0  ;;  %1744 = vmatmul.f32.gmra.mxu1 %v4657_v33 }
 0x840   :  { %1773 = vmatmul.f32.gmra.mxu2 %v4660_v57  ;;  %1802 = vmatmul.f32.gmra.mxu3 %v4663_v29 }
 0x847   :  { %1718 = vmatmul.f32.gmra.mxu0 %v4670_v30  ;;  %1747 = vmatmul.f32.gmra.mxu1 %v4673_v39 }
 0x848   :  { %1776 = vmatmul.f32.gmra.mxu2 %v4676_v60  ;;  %1805 = vmatmul.f32.gmra.mxu3 %v4679_v19 }
 0x8ac   :  { %v1710_v35 = vpop.f32.mrf.mxu0  ;;  %v1739_v34 = vpop.f32.mrf.mxu1 }
 0x8ad   :  { %v1740_v15 = vadd.f32 %v1739_v34, %v1710_v35 }
 0x8b3   :  { %v1768_v40 = vpop.f32.mrf.mxu2  ;;  %v1797_v56 = vpop.f32.mrf.mxu3 }
 0x8b4   :  { %v1713_v23 = vpop.f32.mrf.mxu0  ;;  %v1742_v18 = vpop.f32.mrf.mxu1  ;;  %v1769_v21 = vadd.f32 %v1768_v40, %v1740_v15 }
 0x8b5   :  { %v1743_v37 = vadd.f32 %v1742_v18, %v1713_v23 }
 0x8b6   :  { %v1798_v24 = vadd.f32 %v1797_v56, %v1769_v21 }
 0x8bb   :  { %v1771_v20 = vpop.f32.mrf.mxu2  ;;  %v1800_v11 = vpop.f32.mrf.mxu3 }
 0x8bc   :  { %v1716_v12 = vpop.f32.mrf.mxu0  ;;  %v1745_v14 = vpop.f32.mrf.mxu1  ;;  %v1772_v22 = vadd.f32 %v1771_v20, %v1743_v37 }
 0x8bd   :  { %v1746_v3 = vadd.f32 %v1745_v14, %v1716_v12 }
 0x8be   :  { %v1801_v45 = vadd.f32 %v1800_v11, %v1772_v22 }
 0x8c3   :  { %v1774_v1 = vpop.f32.mrf.mxu2  ;;  %v1803_v17 = vpop.f32.mrf.mxu3 }
 0x8c4   :  { %v1775_v31 = vadd.f32 %v1774_v1, %v1746_v3  ;;  %v1719_v59 = vpop.f32.mrf.mxu0  ;;  %v1748_v48 = vpop.f32.mrf.mxu1 }
 0x8c5   :  { %v1749_v47 = vadd.f32 %v1748_v48, %v1719_v59 }
 0x8c6   :  { %v1804_v36 = vadd.f32 %v1803_v17, %v1775_v31 }
 0x8c8   :  { %v1809_v16 = vadd.f32 %v1804_v36, %v1798_v24  ;;  %1813 = vrot.lane.b32.xlu1 %v1804_v36, %s2801_s20 }
 0x8ca   :  { %v1821_v38 = vsel %vm347_vm0, %v1809_v16, 0.0 }
 0x8cb   :  { %v1823_v41 = vsel %vm350_vm1, %v1821_v38, 0.0  ;;  %v1777_v27 = vpop.f32.mrf.mxu2  ;;  %v1806_v26 = vpop.f32.mrf.mxu3 }
 0x8cc   :  { %v1778_v25 = vadd.f32 %v1777_v27, %v1749_v47  ;;  %2589 = vmatmul.msk.f32.vlgmr.msrb.gmra.mxu0 %vm353_vm2, %v1823_v41  ;;  %2605 = vmatmul.msk.f32.vlgmr.msrb.gmra.mxu1 %vm353_vm2, %v1823_v41 }
 0x8cd   :  { %2621 = vmatmul.msk.f32.vlgmr.msrb.gmra.mxu2 %vm353_vm2, %v1823_v41  ;;  %2637 = vmatmul.msk.f32.vlgmr.msrb.gmra.mxu3 %vm353_vm2, %v1823_v41 }
 0x8ce   :  { %v1807_v46 = vadd.f32 %v1806_v26, %v1778_v25 }
 0x8d0   :  { %v1810_v49 = vadd.f32 %v1807_v46, %v1801_v45  ;;  %1843 = vrot.lane.b32.xlu1 %v1798_v24, %s2800_s19  ;;  %1815 = vrot.lane.b32.xlu0 %v1807_v46, %s2801_s20 }
 0x8d2   :  { %v1822_v50 = vsel %vm347_vm0, %v1810_v49, 0.0 }
 0x8d3   :  { %v1824_v51 = vsel %vm350_vm1, %v1822_v50, 0.0 }
 0x8d4   :  { %2590 = vmatmul.msk.f32.gmra.mxu0 %vm353_vm2, %v1824_v51  ;;  %2606 = vmatmul.msk.f32.gmra.mxu1 %vm353_vm2, %v1824_v51 }
 0x8d5   :  { %2622 = vmatmul.msk.f32.gmra.mxu2 %vm353_vm2, %v1824_v51  ;;  %2638 = vmatmul.msk.f32.gmra.mxu3 %vm353_vm2, %v1824_v51 }
 0x8d8   :  { %1857 = vrot.lane.b32.xlu1 %v1810_v49, %s2800_s19 }
 0x93a   :  { %v1814_v43 = vpop.permute.xlu1 %1813 }
 0x93b   :  { %v1819_v52 = vadd.f32 %v1814_v43, %v1798_v24 }
 0x93d   :  { %1829 = vrot.lane.b32.xlu2 %v1819_v52, %s2802_s21  ;;  %1873 = vrot.lane.b32.xlu1 %v1819_v52, %s2801_s20 }
 0x942   :  { %v1816_v44 = vpop.permute.xlu0 %1815  ;;  %v1844_v8 = vpop.permute.xlu1 %1843 }
 0x943   :  { %v1820_v53 = vadd.f32 %v1816_v44, %v1801_v45  ;;  %v1849_v9 = vsel %vm350_vm1, 0.0, %v1844_v8 }
 0x945   :  { %1845 = vrot.lane.b32.xlu2 %v1801_v45, %s2800_s19  ;;  %1831 = vrot.lane.b32.xlu0 %v1820_v53, %s2802_s21 }
 0x949   :  { %v4773_v14 = vpop.f32.mrf.mxu0  ;;  %v4775_v15 = vpop.f32.mrf.mxu1 }
 0x94a   :  { %v1858_v40 = vpop.permute.xlu1 %1857 }
 0x94b   :  { %v1862_v56 = vsel %vm350_vm1, 0.0, %v1858_v40 }
 0x94d   :  { %1865 = vrot.lane.b32.xlu2 %v1798_v24, %s2801_s20  ;;  %1855 = vrot.lane.b32.xlu0 %v1809_v16, %s2800_s19 }
 0x950   :  { %v4777_v21 = vpop.f32.mrf.mxu2  ;;  %v4779_v3 = vpop.f32.mrf.mxu3 }
 0x951   :  { %v4781_v1 = vpop.f32.mrf.mxu0  ;;  %v4783_v17 = vpop.f32.mrf.mxu1 }
 0x955   :  { %1875 = vrot.lane.b32.xlu2 %v1820_v53, %s2801_s20  ;;  %1867 = vrot.lane.b32.xlu0 %v1801_v45, %s2801_s20 }
 0x958   :  { %v4785_v31 = vpop.f32.mrf.mxu2  ;;  %v4787_v24 = vpop.f32.mrf.mxu3 }
 0x997   :  { %v1830_v55 = vpop.permute.xlu2 %1829 }
 0x998   :  { %v1835_v61 = vsel %vm347_vm0, 0.0, %v1830_v55 }
 0x999   :  { %v1837_v63 = vsel %vm350_vm1, %v1835_v61, 0.0 }
 0x99a   :  { %2591 = vmatmul.msk.f32.gmra.mxu0 %vm353_vm2, %v1837_v63  ;;  %2607 = vmatmul.msk.f32.gmra.mxu1 %vm353_vm2, %v1837_v63 }
 0x99b   :  { %2623 = vmatmul.msk.f32.gmra.mxu2 %vm353_vm2, %v1837_v63  ;;  %2639 = vmatmul.msk.f32.gmra.mxu3 %vm353_vm2, %v1837_v63 }
 0x99f   :  { %v1846_v10 = vpop.permute.xlu2 %1845 }
 0x9a0   :  { %v1850_v32 = vsel %vm350_vm1, 0.0, %v1846_v10 }
 0x9a7   :  { %v1866_v23 = vpop.permute.xlu2 %1865 }
 0x9af   :  { %v1874_v11 = vpop.permute.xlu1 %1873  ;;  %v1876_v12 = vpop.permute.xlu2 %1875 }
 0x9b7   :  { %v1832_v5 = vpop.permute.xlu0 %1831 }
 0x9b8   :  { %v1836_v6 = vsel %vm347_vm0, 0.0, %v1832_v5 }
 0x9b9   :  { %v1838_v7 = vsel %vm350_vm1, %v1836_v6, 0.0 }
 0x9ba   :  { %2592 = vmatmul.msk.f32.gmra.mxu0 %vm353_vm2, %v1838_v7  ;;  %2608 = vmatmul.msk.f32.gmra.mxu1 %vm353_vm2, %v1838_v7 }
 0x9bb   :  { %2624 = vmatmul.msk.f32.gmra.mxu2 %vm353_vm2, %v1838_v7  ;;  %2640 = vmatmul.msk.f32.gmra.mxu3 %vm353_vm2, %v1838_v7 }
 0x9bf   :  { %v1856_v35 = vpop.permute.xlu0 %1855 }
 0x9c0   :  { %v1861_v34 = vsel %vm350_vm1, 0.0, %v1856_v35 }
 0x9c2   :  { %2593 = vmatmul.msk.f32.gmra.mxu0 %vm353_vm2, %v1849_v9  ;;  %2609 = vmatmul.msk.f32.gmra.mxu1 %vm353_vm2, %v1849_v9 }
 0x9c3   :  { %2625 = vmatmul.msk.f32.gmra.mxu2 %vm353_vm2, %v1849_v9  ;;  %2641 = vmatmul.msk.f32.gmra.mxu3 %vm353_vm2, %v1849_v9 }
 0x9c7   :  { %v1868_v20 = vpop.permute.xlu0 %1867 }
 0x9ca   :  { %2594 = vmatmul.msk.f32.gmra.mxu0 %vm353_vm2, %v1850_v32  ;;  %2610 = vmatmul.msk.f32.gmra.mxu1 %vm353_vm2, %v1850_v32 }
 0x9cb   :  { %2626 = vmatmul.msk.f32.gmra.mxu2 %vm353_vm2, %v1850_v32  ;;  %2642 = vmatmul.msk.f32.gmra.mxu3 %vm353_vm2, %v1850_v32 }
 0x9d2   :  { %2595 = vmatmul.msk.f32.gmra.mxu0 %vm353_vm2, %v1861_v34  ;;  %2611 = vmatmul.msk.f32.gmra.mxu1 %vm353_vm2, %v1861_v34 }
 0x9d3   :  { %2627 = vmatmul.msk.f32.gmra.mxu2 %vm353_vm2, %v1861_v34  ;;  %2643 = vmatmul.msk.f32.gmra.mxu3 %vm353_vm2, %v1861_v34 }
 0x9da   :  { %2596 = vmatmul.msk.f32.gmra.mxu0 %vm353_vm2, %v1862_v56  ;;  %2612 = vmatmul.msk.f32.gmra.mxu1 %vm353_vm2, %v1862_v56 }
 0x9db   :  { %2628 = vmatmul.msk.f32.gmra.mxu2 %vm353_vm2, %v1862_v56  ;;  %2644 = vmatmul.msk.f32.gmra.mxu3 %vm353_vm2, %v1862_v56 }
 0x9e2   :  { %2598 = vmatmul.msk.f32.gmra.mxu0 %vm3645_vm3, %v1866_v23  ;;  %2614 = vmatmul.msk.f32.gmra.mxu1 %vm3645_vm3, %v1866_v23 }
 0x9e3   :  { %2630 = vmatmul.msk.f32.gmra.mxu2 %vm3645_vm3, %v1866_v23  ;;  %2646 = vmatmul.msk.f32.gmra.mxu3 %vm3645_vm3, %v1866_v23 }
 0x9ea   :  { %2600 = vmatmul.msk.f32.gmra.mxu0 %vm3645_vm3, %v1868_v20  ;;  %2616 = vmatmul.msk.f32.gmra.mxu1 %vm3645_vm3, %v1868_v20 }
 0x9eb   :  { %2632 = vmatmul.msk.f32.gmra.mxu2 %vm3645_vm3, %v1868_v20  ;;  %2648 = vmatmul.msk.f32.gmra.mxu3 %vm3645_vm3, %v1868_v20 }
 0x9f2   :  { %2602 = vmatmul.msk.f32.gmra.mxu0 %vm3645_vm3, %v1874_v11  ;;  %2618 = vmatmul.msk.f32.gmra.mxu1 %vm3645_vm3, %v1874_v11 }
 0x9f3   :  { %2634 = vmatmul.msk.f32.gmra.mxu2 %vm3645_vm3, %v1874_v11  ;;  %2650 = vmatmul.msk.f32.gmra.mxu3 %vm3645_vm3, %v1874_v11 }
 0x9fa   :  { %2604 = vmatmul.msk.f32.gmra.mxu0 %vm3645_vm3, %v1876_v12  ;;  %2620 = vmatmul.msk.f32.gmra.mxu1 %vm3645_vm3, %v1876_v12 }
 0x9fb   :  { %2636 = vmatmul.msk.f32.gmra.mxu2 %vm3645_vm3, %v1876_v12  ;;  %2652 = vmatmul.msk.f32.gmra.mxu3 %vm3645_vm3, %v1876_v12 }
 0xa17   :  { %v4789_v36 = vpop.f32.mrf.mxu0  ;;  %v4791_v59 = vpop.f32.mrf.mxu1 }
 0xa1e   :  { %v4793_v48 = vpop.f32.mrf.mxu2  ;;  %v4795_v37 = vpop.f32.mrf.mxu3 }
 0xa37   :  { %v1907_v16 = vpop.f32.mrf.mxu0  ;;  %v1960_v22 = vpop.f32.mrf.mxu1 }
 0xa3e   :  { %v4797_v38 = vpop.f32.mrf.mxu2  ;;  %v4799_v47 = vpop.f32.mrf.mxu3 }
 0xa3f   :  { %v1910_v41 = vpop.f32.mrf.mxu0  ;;  %v1963_v27 = vpop.f32.mrf.mxu1 }
 0xa46   :  { %v4801_v25 = vpop.f32.mrf.mxu2  ;;  %v4803_v26 = vpop.f32.mrf.mxu3 }
 0xa47   :  { %v1913_v45 = vpop.f32.mrf.mxu0  ;;  %v1966_v46 = vpop.f32.mrf.mxu1 }
 0xa4e   :  { %v2019_v49 = vpop.f32.mrf.mxu2  ;;  %v2072_v50 = vpop.f32.mrf.mxu3 }
 0xa4f   :  { %v1916_v51 = vpop.f32.mrf.mxu0  ;;  %v1969_v43 = vpop.f32.mrf.mxu1 }
 0xa56   :  { %v2022_v52 = vpop.f32.mrf.mxu2  ;;  %v2075_v44 = vpop.f32.mrf.mxu3 }
 0xa57   :  { %v1919_v53 = vpop.f32.mrf.mxu0  ;;  %v1972_v55 = vpop.f32.mrf.mxu1 }
 0xa5e   :  { %v2025_v61 = vpop.f32.mrf.mxu2  ;;  %v2078_v63 = vpop.f32.mrf.mxu3 }
 0xa5f   :  { %v1922_v5 = vpop.f32.mrf.mxu0  ;;  %v1975_v6 = vpop.f32.mrf.mxu1 }
 0xa66   :  { %v2028_v7 = vpop.f32.mrf.mxu2  ;;  %v2081_v8 = vpop.f32.mrf.mxu3 }
 0xa67   :  { %v1925_v9 = vpop.f32.mrf.mxu0  ;;  %v1978_v10 = vpop.f32.mrf.mxu1 }
 0xa6e   :  { %v2031_v32 = vpop.f32.mrf.mxu2  ;;  %v2084_v35 = vpop.f32.mrf.mxu3 }
 0xa6f   :  { %v1928_v34 = vpop.f32.mrf.mxu0  ;;  %v1981_v40 = vpop.f32.mrf.mxu1 }
 0xa76   :  { %v2034_v56 = vpop.f32.mrf.mxu2  ;;  %v2087_v23 = vpop.f32.mrf.mxu3 }
 0xa77   :  { %v1931_v18 = vpop.f32.mrf.mxu0  ;;  %v1984_v20 = vpop.f32.mrf.mxu1 }
 0xa78   :  { %2205 = vmatpush.msra.mxu0 %v1931_v18  ;;  %2227 = vmatpush.msra.mxu1 %v1984_v20  ;;  %v2342_v18 = vld [vmem:[%s5043_s4 + $0x188] sm:$0xff] }
 0xa79   :  { %v2294_v20 = vld [vmem:[%s5043_s4 + $0x8] sm:$0xff] }
 0xa7a   :  { %2206 = vmatpush.msra.mxu0 %v1928_v34  ;;  %2228 = vmatpush.msra.mxu1 %v1981_v40  ;;  %v2326_v34 = vld [vmem:[%s5043_s4 + $0x108] sm:$0xff]  ;;  %v2295_v40 = vld [vmem:[%s5043_s4 + $0x10] sm:$0xff] }
 0xa7c   :  { %2207 = vmatpush.msra.mxu0 %v1925_v9  ;;  %2229 = vmatpush.msra.mxu1 %v1978_v10  ;;  %v2296_v9 = vld [vmem:[%s5043_s4 + $0x18] sm:$0xff] }
 0xa7d   :  { %v2312_v10 = vld [vmem:[%s5043_s4 + $0x98] sm:$0xff] }
 0xa7e   :  { %v2037_v11 = vpop.f32.mrf.mxu2  ;;  %v2090_v12 = vpop.f32.mrf.mxu3  ;;  %2208 = vmatpush.msra.mxu0 %v1922_v5  ;;  %2230 = vmatpush.msra.mxu1 %v1975_v6  ;;  %v2329_v5 = vld [vmem:[%s5043_s4 + $0x120] sm:$0xff] }
 0xa7f   :  { %2249 = vmatpush.msra.mxu2 %v2037_v11  ;;  %2271 = vmatpush.msra.mxu3 %v2090_v12  ;;  %v2345_v6 = vld [vmem:[%s5043_s4 + $0x1a0] sm:$0xff]  ;;  %v2310_v11 = vld [vmem:[%s5043_s4 + $0x88] sm:$0xff] }
 0xa80   :  { %2209 = vmatpush.msra.mxu0 %v1919_v53  ;;  %2231 = vmatpush.msra.mxu1 %v1972_v55  ;;  %v2330_v53 = vld [vmem:[%s5043_s4 + $0x128] sm:$0xff]  ;;  %v2341_v12 = vld [vmem:[%s5043_s4 + $0x180] sm:$0xff] }
 0xa81   :  { %2250 = vmatpush.msra.mxu2 %v2034_v56  ;;  %2272 = vmatpush.msra.mxu3 %v2087_v23  ;;  %v2346_v55 = vld [vmem:[%s5043_s4 + $0x1a8] sm:$0xff]  ;;  %v2311_v56 = vld [vmem:[%s5043_s4 + $0x90] sm:$0xff]  ;;  %v2325_v23 = vld [vmem:[%s5043_s4 + $0x100] sm:$0xff] }
 0xa82   :  { %2210 = vmatpush.msra.mxu0 %v1916_v51  ;;  %2232 = vmatpush.msra.mxu1 %v1969_v43  ;;  %v2298_v51 = vld [vmem:[%s5043_s4 + $0x28] sm:$0xff]  ;;  %v2331_v43 = vld [vmem:[%s5043_s4 + $0x130] sm:$0xff] }
 0xa83   :  { %2251 = vmatpush.msra.mxu2 %v2031_v32  ;;  %2273 = vmatpush.msra.mxu3 %v2084_v35  ;;  %v2327_v32 = vld [vmem:[%s5043_s4 + $0x110] sm:$0xff] }
 0xa84   :  { %2211 = vmatpush.msra.mxu0 %v1913_v45  ;;  %2233 = vmatpush.msra.mxu1 %v1966_v46  ;;  %v2315_v45 = vld [vmem:[%s5043_s4 + $0xb0] sm:$0xff]  ;;  %v2332_v46 = vld [vmem:[%s5043_s4 + $0x138] sm:$0xff] }
 0xa85   :  { %2252 = vmatpush.msra.mxu2 %v2028_v7  ;;  %2274 = vmatpush.msra.mxu3 %v2081_v8  ;;  %v2328_v7 = vld [vmem:[%s5043_s4 + $0x118] sm:$0xff]  ;;  %v2343_v35 = vld [vmem:[%s5043_s4 + $0x190] sm:$0xff] }
 0xa86   :  { %2212 = vmatpush.msra.mxu0 %v1910_v41  ;;  %2234 = vmatpush.msra.mxu1 %v1963_v27  ;;  %v2316_v41 = vld [vmem:[%s5043_s4 + $0xb8] sm:$0xff]  ;;  %v2333_v27 = vld [vmem:[%s5043_s4 + $0x140] sm:$0xff] }
 0xa87   :  { %2253 = vmatpush.msra.mxu2 %v2025_v61  ;;  %2275 = vmatpush.msra.mxu3 %v2078_v63  ;;  %v2297_v61 = vld [vmem:[%s5043_s4 + $0x20] sm:$0xff]  ;;  %v2344_v8 = vld [vmem:[%s5043_s4 + $0x198] sm:$0xff] }
 0xa88   :  { %2213 = vmatpush.msra.mxu0 %v1907_v16  ;;  %2235 = vmatpush.msra.mxu1 %v1960_v22  ;;  %v2317_v16 = vld [vmem:[%s5043_s4 + $0xc0] sm:$0xff]  ;;  %v2334_v22 = vld [vmem:[%s5043_s4 + $0x148] sm:$0xff] }
 0xa89   :  { %2254 = vmatpush.msra.mxu2 %v2022_v52  ;;  %2276 = vmatpush.msra.mxu3 %v2075_v44  ;;  %v2347_v52 = vld [vmem:[%s5043_s4 + $0x1b0] sm:$0xff]  ;;  %v2314_v44 = vld [vmem:[%s5043_s4 + $0xa8] sm:$0xff]  ;;  %v2313_v63 = vld [vmem:[%s5043_s4 + $0xa0] sm:$0xff] }
 0xa8a   :  { %2214 = vmatpush.msra.mxu0 %v4789_v36  ;;  %2236 = vmatpush.msra.mxu1 %v4791_v59  ;;  %v2318_v36 = vld [vmem:[%s5043_s4 + $0xc8] sm:$0xff]  ;;  %v2335_v59 = vld [vmem:[%s5043_s4 + $0x150] sm:$0xff] }
 0xa8b   :  { %2255 = vmatpush.msra.mxu2 %v2019_v49  ;;  %2277 = vmatpush.msra.mxu3 %v2072_v50  ;;  %v2348_v49 = vld [vmem:[%s5043_s4 + $0x1b8] sm:$0xff]  ;;  %v1644_v50 = vld [vmem:[%s5042_s5 + $0x28] sm:$0xff] }
 0xa8c   :  { %2215 = vmatpush.msra.mxu0 %v4781_v1  ;;  %2237 = vmatpush.msra.mxu1 %v4783_v17  ;;  %v2319_v1 = vld [vmem:[%s5043_s4 + $0xd0] sm:$0xff]  ;;  %v2336_v17 = vld [vmem:[%s5043_s4 + $0x158] sm:$0xff] }
 0xa8d   :  { %2256 = vmatpush.msra.mxu2 %v4801_v25  ;;  %2278 = vmatpush.msra.mxu3 %v4803_v26  ;;  %v2349_v25 = vld [vmem:[%s5043_s4 + $0x1c0] sm:$0xff]  ;;  %v2299_v26 = vld [vmem:[%s5043_s4 + $0x30] sm:$0xff] }
 0xa8e   :  { %2216 = vmatpush.msra.mxu0 %v4773_v14  ;;  %2238 = vmatpush.msra.mxu1 %v4775_v15  ;;  %v2320_v14 = vld [vmem:[%s5043_s4 + $0xd8] sm:$0xff]  ;;  %v2337_v15 = vld [vmem:[%s5043_s4 + $0x160] sm:$0xff] }
 0xa8f   :  { %2257 = vmatpush.msra.mxu2 %v4797_v38  ;;  %2279 = vmatpush.msra.mxu3 %v4799_v47  ;;  %v2350_v38 = vld [vmem:[%s5043_s4 + $0x1c8] sm:$0xff]  ;;  %v2300_v47 = vld [vmem:[%s5043_s4 + $0x38] sm:$0xff] }
 0xa90   :  { %2217 = vmatpush.msra.mxu0 %v4670_v30  ;;  %2239 = vmatpush.msra.mxu1 %v4673_v39  ;;  %v2321_v30 = vld [vmem:[%s5043_s4 + $0xe0] sm:$0xff]  ;;  %v2338_v39 = vld [vmem:[%s5043_s4 + $0x168] sm:$0xff] }
 0xa91   :  { %2258 = vmatpush.msra.mxu2 %v4793_v48  ;;  %2280 = vmatpush.msra.mxu3 %v4795_v37  ;;  %v2351_v48 = vld [vmem:[%s5043_s4 + $0x1d0] sm:$0xff]  ;;  %v2301_v37 = vld [vmem:[%s5043_s4 + $0x40] sm:$0xff] }
 0xa92   :  { %2218 = vmatpush.msra.mxu0 %v4654_v0  ;;  %2240 = vmatpush.msra.mxu1 %v4657_v33  ;;  %v1643_v0 = vld [vmem:[%s5042_s5 + $0x20] sm:$0xff]  ;;  %v2340_v33 = vld [vmem:[%s5043_s4 + $0x178] sm:$0xff] }
 0xa93   :  { %2259 = vmatpush.msra.mxu2 %v4785_v31  ;;  %2281 = vmatpush.msra.mxu3 %v4787_v24  ;;  %v2352_v31 = vld [vmem:[%s5043_s4 + $0x1d8] sm:$0xff]  ;;  %v2302_v24 = vld [vmem:[%s5043_s4 + $0x48] sm:$0xff] }
 0xa94   :  { %2219 = vmatpush.msra.mxu0 %v4638_v4  ;;  %2241 = vmatpush.msra.mxu1 %v4641_v13  ;;  %v2308_v4 = vld [vmem:[%s5043_s4 + $0x78] sm:$0xff] }
 0xa95   :  { %2260 = vmatpush.msra.mxu2 %v4777_v21  ;;  %2282 = vmatpush.msra.mxu3 %v4779_v3  ;;  %v2324_v13 = vld [vmem:[%s5043_s4 + $0xf8] sm:$0xff]  ;;  %v2353_v21 = vld [vmem:[%s5043_s4 + $0x1e0] sm:$0xff]  ;;  %v2303_v3 = vld [vmem:[%s5043_s4 + $0x50] sm:$0xff] }
 0xa96   :  { %2220 = vmatpush.msra.mxu0 %v4622_v54  ;;  %2242 = vmatpush.msra.mxu1 %v4625_v58  ;;  %v2307_v54 = vld [vmem:[%s5043_s4 + $0x70] sm:$0xff] }
 0xa97   :  { %2261 = vmatpush.msra.mxu2 %v4676_v60  ;;  %2283 = vmatpush.msra.mxu3 %v4679_v19  ;;  %v2323_v58 = vld [vmem:[%s5043_s4 + $0xf0] sm:$0xff]  ;;  %v2354_v60 = vld [vmem:[%s5043_s4 + $0x1e8] sm:$0xff]  ;;  %v2304_v19 = vld [vmem:[%s5043_s4 + $0x58] sm:$0xff] }
 0xa98   :  { %2221 = vmatmul.f32.vlgmr.msra.gmra.mxu0 %v1643_v0  ;;  %2243 = vmatmul.f32.vlgmr.msra.gmra.mxu1 %v1643_v0 }
 0xa99   :  { %2262 = vmatpush.msra.mxu2 %v4660_v57  ;;  %2284 = vmatpush.msra.mxu3 %v4663_v29  ;;  %v2356_v57 = vld [vmem:[%s5043_s4 + $0x1f8] sm:$0xff]  ;;  %v2339_v29 = vld [vmem:[%s5043_s4 + $0x170] sm:$0xff] }
 0xa9a   :  { %2357 = vmatpush.msrb.mxu0 %v2308_v4  ;;  %2377 = vmatpush.msrb.mxu1 %v2324_v13  ;;  %v2309_v4 = vld [vmem:[%s5043_s4 + $0x80] sm:$0xff] }
 0xa9b   :  { %2263 = vmatpush.msra.mxu2 %v4644_v42  ;;  %2285 = vmatpush.msra.mxu3 %v4647_v28  ;;  %v2306_v42 = vld [vmem:[%s5043_s4 + $0x68] sm:$0xff] }
 0xa9c   :  { %2358 = vmatpush.msrb.mxu0 %v2307_v54  ;;  %2378 = vmatpush.msrb.mxu1 %v2323_v58  ;;  %v2322_v28 = vld [vmem:[%s5043_s4 + $0xe8] sm:$0xff] }
 0xa9d   :  { %2264 = vmatpush.msra.mxu2 %v4628_v62  ;;  %2286 = vmatpush.msra.mxu3 %v4631_v2  ;;  %v2355_v62 = vld [vmem:[%s5043_s4 + $0x1f0] sm:$0xff]  ;;  %v2305_v2 = vld [vmem:[%s5043_s4 + $0x60] sm:$0xff] }
 0xa9e   :  { %2265 = vmatmul.f32.vlgmr.msra.gmra.mxu2 %v1643_v0  ;;  %2287 = vmatmul.f32.vlgmr.msra.gmra.mxu3 %v1643_v0  ;;  %v2293_v0 = vld [vmem:[%s5043_s4] sm:$0xff] }
 0xa9f   :  { %2397 = vmatpush.msrb.mxu2 %v2340_v33  ;;  %2417 = vmatpush.msrb.mxu3 %v2356_v57 }
 0xaa0   :  { %2359 = vmatpush.msrb.mxu0 %v2306_v42  ;;  %2379 = vmatpush.msrb.mxu1 %v2322_v28 }
 0xaa1   :  { %2398 = vmatpush.msrb.mxu2 %v2339_v29  ;;  %2418 = vmatpush.msrb.mxu3 %v2355_v62 }
 0xaa2   :  { %2360 = vmatpush.msrb.mxu0 %v2305_v2  ;;  %2380 = vmatpush.msrb.mxu1 %v2321_v30 }
 0xaa3   :  { %2399 = vmatpush.msrb.mxu2 %v2338_v39  ;;  %2419 = vmatpush.msrb.mxu3 %v2354_v60 }
 0xaa4   :  { %2361 = vmatpush.msrb.mxu0 %v2304_v19  ;;  %2381 = vmatpush.msrb.mxu1 %v2320_v14 }
 0xaa5   :  { %2400 = vmatpush.msrb.mxu2 %v2337_v15  ;;  %2420 = vmatpush.msrb.mxu3 %v2353_v21 }
 0xaa6   :  { %2362 = vmatpush.msrb.mxu0 %v2303_v3  ;;  %2382 = vmatpush.msrb.mxu1 %v2319_v1 }
 0xaa7   :  { %2401 = vmatpush.msrb.mxu2 %v2336_v17  ;;  %2421 = vmatpush.msrb.mxu3 %v2352_v31 }
 0xaa8   :  { %2363 = vmatpush.msrb.mxu0 %v2302_v24  ;;  %2383 = vmatpush.msrb.mxu1 %v2318_v36 }
 0xaa9   :  { %2402 = vmatpush.msrb.mxu2 %v2335_v59  ;;  %2422 = vmatpush.msrb.mxu3 %v2351_v48 }
 0xaaa   :  { %2364 = vmatpush.msrb.mxu0 %v2301_v37  ;;  %2384 = vmatpush.msrb.mxu1 %v2317_v16 }
 0xaab   :  { %2403 = vmatpush.msrb.mxu2 %v2334_v22  ;;  %2423 = vmatpush.msrb.mxu3 %v2350_v38 }
 0xaac   :  { %2365 = vmatpush.msrb.mxu0 %v2300_v47  ;;  %2385 = vmatpush.msrb.mxu1 %v2316_v41 }
 0xaad   :  { %2404 = vmatpush.msrb.mxu2 %v2333_v27  ;;  %2424 = vmatpush.msrb.mxu3 %v2349_v25 }
 0xaae   :  { %2366 = vmatpush.msrb.mxu0 %v2299_v26  ;;  %2386 = vmatpush.msrb.mxu1 %v2315_v45 }
 0xaaf   :  { %2405 = vmatpush.msrb.mxu2 %v2332_v46  ;;  %2425 = vmatpush.msrb.mxu3 %v2348_v49 }
 0xab0   :  { %2268 = vmatmul.f32.gmra.mxu2 %v1644_v50  ;;  %2367 = vmatpush.msrb.mxu0 %v2298_v51 }
 0xab1   :  { %2406 = vmatpush.msrb.mxu2 %v2331_v43  ;;  %2426 = vmatpush.msrb.mxu3 %v2347_v52 }
 0xab2   :  { %2387 = vmatpush.msrb.mxu1 %v2314_v44  ;;  %2290 = vmatmul.f32.gmra.mxu3 %v1644_v50 }
 0xab3   :  { %2407 = vmatpush.msrb.mxu2 %v2330_v53  ;;  %2427 = vmatpush.msrb.mxu3 %v2346_v55 }
 0xab4   :  { %2368 = vmatpush.msrb.mxu0 %v2297_v61  ;;  %2388 = vmatpush.msrb.mxu1 %v2313_v63 }
 0xab5   :  { %2408 = vmatpush.msrb.mxu2 %v2329_v5  ;;  %2428 = vmatpush.msrb.mxu3 %v2345_v6 }
 0xab6   :  { %2224 = vmatmul.f32.gmra.mxu0 %v1644_v50  ;;  %2246 = vmatmul.f32.gmra.mxu1 %v1644_v50 }
 0xab7   :  { %2409 = vmatpush.msrb.mxu2 %v2328_v7  ;;  %2429 = vmatpush.msrb.mxu3 %v2344_v8 }
 0xab8   :  { %2369 = vmatpush.msrb.mxu0 %v2296_v9  ;;  %2389 = vmatpush.msrb.mxu1 %v2312_v10 }
 0xab9   :  { %2410 = vmatpush.msrb.mxu2 %v2327_v32  ;;  %2430 = vmatpush.msrb.mxu3 %v2343_v35 }
 0xaba   :  { %2370 = vmatpush.msrb.mxu0 %v2295_v40  ;;  %2390 = vmatpush.msrb.mxu1 %v2311_v56 }
 0xabb   :  { %2411 = vmatpush.msrb.mxu2 %v2326_v34  ;;  %2431 = vmatpush.msrb.mxu3 %v2342_v18 }
 0xabc   :  { %2371 = vmatpush.msrb.mxu0 %v2294_v20  ;;  %2391 = vmatpush.msrb.mxu1 %v2310_v11 }
 0xabd   :  { %2412 = vmatpush.msrb.mxu2 %v2325_v23  ;;  %2432 = vmatpush.msrb.mxu3 %v2341_v12 }
 0xabe   :  { %2372 = vmatpush.msrb.mxu0 %v2293_v0  ;;  %2392 = vmatpush.msrb.mxu1 %v2309_v4 }
 0xb15   :  { %v2222_v13 = vpop.f32.mrf.mxu0  ;;  %v2244_v54 = vpop.f32.mrf.mxu1 }
 0xb16   :  { %2373 = vmatmul.f32.vlgmr.msrb.gmra.mxu0 %v2222_v13  ;;  %2393 = vmatmul.f32.vlgmr.msrb.gmra.mxu1 %v2244_v54 }
 0xb21   :  { %v2266_v58 = vpop.f32.mrf.mxu2  ;;  %v2288_v33 = vpop.f32.mrf.mxu3 }
 0xb22   :  { %2413 = vmatmul.f32.vlgmr.msrb.gmra.mxu2 %v2266_v58  ;;  %2433 = vmatmul.f32.vlgmr.msrb.gmra.mxu3 %v2288_v33 }
 0xb33   :  { %v2225_v57 = vpop.f32.mrf.mxu0  ;;  %v2247_v42 = vpop.f32.mrf.mxu1 }
 0xb34   :  { %v2269_v28 = vpop.f32.mrf.mxu2 }
 0xb35   :  { %v2291_v29 = vpop.f32.mrf.mxu3 }
 0xb93   :  { %v2374_v62 = vpop.f32.mrf.mxu0  ;;  %v2394_v2 = vpop.f32.mrf.mxu1 }
 0xb94   :  { %v2395_v30 = vadd.f32 %v2394_v2, %v2374_v62 }
 0xba5   :  { %v2414_v39 = vpop.f32.mrf.mxu2  ;;  %v2434_v60 = vpop.f32.mrf.mxu3 }
 0xba6   :  { %v2415_v19 = vadd.f32 %v2414_v39, %v2395_v30 }
 0xba8   :  { %v2435_v14 = vadd.f32 %v2434_v60, %v2415_v19 }
 0xbaa   :  { %v2653_v15 = vmul.f32 -1.442695, %v2435_v14 }
 0xbac   :  { %2668 = vpow2.f32 %v2653_v15 }
 0xbb2   :  { %v2669_v21 = vpop.eup %2668 }
 0xbb3   :  { %v2440_v3 = vadd.f32 1.0, %v2669_v21 }
 0xbb5   :  { %2670 = vrcp.f32 %v2440_v3  ;;  %v2452_v24 = vand.u32 2147483648, %v2440_v3  ;;  %v2450_v59 = vand.u32 2147483647, %v2440_v3  ;;  %vm2446_vm1 = vweird.f32 %v2440_v3 }
 0xbb7   :  { %v2453_v37 = vor.u32 1.1754944e-38, %v2452_v24  ;;  %vm2451_vm3 = vcmp.eq.f32.partialorder %v2450_v59, 8.507059e+37 }
 0xbbb   :  { %v2671_v1 = vpop.eup %2670 }
 0xbbc   :  { %v2442_v17 = vmul.f32 %v2671_v1, %v2440_v3  ;;  %vm2447_vm0 = vweird.f32 %v2671_v1 }
 0xbbd   :  { %vm2448_vm2 = vmor %vm2446_vm1, %vm2447_vm0 }
 0xbbe   :  { %v2443_v31 = vsub.f32 1.0, %v2442_v17 }
 0xbc0   :  { %v2444_v36 = vmul.f32 %v2671_v1, %v2443_v31 }
 0xbc2   :  { %v2445_v48 = vadd.f32 %v2671_v1, %v2444_v36 }
 0xbc4   :  { %v2449_v16 = vsel %vm2448_vm2, %v2671_v1, %v2445_v48 }
 0xbc5   :  { %v2454_v22 = vsel %vm2451_vm3, %v2453_v37, %v2449_v16 }
 0xbc6   :  { %2456 = vst [vmem:[%s5044_s6] sm:$0xff] %v2454_v22 }

</bundles_post_ra>
